<compile_context>
chip_gen: v5e
topology: v5e:2x2
jax: 0.10.0
libtpu: 0.0.40
codegen_flags: <defaults>
</compile_context>

<pallas_src>
import jax
import jax.numpy as jnp
from jax.experimental import pallas as pl
from jax.experimental.pallas import tpu as pltpu

LANE = 128
SUBLANE = 8


def _round_up(n, m):
    return (n + m - 1) // m * m


def mlp_kernel(x_ref, w1_ref, b1_ref, w2_ref, b2_ref, w3_ref, b3_ref, o_ref):
    # x / weights are bf16 (native MXU rate, half the HBM bytes); dots
    # accumulate in f32; bias add + ReLU stay in f32.
    x = x_ref[...]

    h1 = jnp.dot(x, w1_ref[...], preferred_element_type=jnp.float32) + b1_ref[...]
    h1 = jnp.maximum(h1, 0.0).astype(jnp.bfloat16)

    h2 = jnp.dot(h1, w2_ref[...], preferred_element_type=jnp.float32) + b2_ref[...]
    h2 = jnp.maximum(h2, 0.0).astype(jnp.bfloat16)

    h3 = jnp.dot(h2, w3_ref[...], preferred_element_type=jnp.float32) + b3_ref[...]
    h3 = jnp.maximum(h3, 0.0)   # Reg_model's Sequential ends with ReLU.

    o_ref[...] = h3.astype(o_ref.dtype)


def init_params(key, in_feat):
    """nn.Linear-style init (stored transposed as (in,out)), then pad feature
    dims to multiples of 128 and cast weights to bf16 once. Zero padding is
    exact: padded input columns hit zero weight rows, padded output columns
    get zero weight columns + zero bias."""
    hid = in_feat * 2
    in_p = _round_up(in_feat, LANE)    # 400 -> 512
    hid_p = _round_up(hid, LANE)       # 800 -> 896
    ks = jax.random.split(key, 6)

    def uniform_linear(kw, kb, fan_in, fan_out):
        bound = 1.0 / jnp.sqrt(fan_in)
        w = jax.random.uniform(kw, (fan_in, fan_out), jnp.float32, -bound, bound)
        b = jax.random.uniform(kb, (1, fan_out), jnp.float32, -bound, bound)
        return w, b

    w1, b1 = uniform_linear(ks[0], ks[1], in_feat, hid)
    w2, b2 = uniform_linear(ks[2], ks[3], hid, in_feat)
    w3, b3 = uniform_linear(ks[4], ks[5], in_feat, in_feat)

    def pad_w(w, rows, cols):
        return jnp.pad(w, ((0, rows - w.shape[0]),
                           (0, cols - w.shape[1]))).astype(jnp.bfloat16)

    def pad_b(b, cols):
        return jnp.pad(b, ((0, 0), (0, cols - b.shape[1])))   # stays f32

    return dict(
        w1=pad_w(w1, in_p, hid_p), b1=pad_b(b1, hid_p),
        w2=pad_w(w2, hid_p, in_p), b2=pad_b(b2, in_p),
        w3=pad_w(w3, in_p, in_p),  b3=pad_b(b3, in_p),
        in_feat=in_feat, hid=hid, in_p=in_p, hid_p=hid_p,
    )


def reg_model_forward(x, params, *, block_m=128):
    """x: (B, in_feat) float32 -> (B, in_feat) float32."""
    in_feat, in_p, hid_p = params["in_feat"], params["in_p"], params["hid_p"]
    B = x.shape[0]
    assert x.shape[1] == in_feat, x.shape

    # Batch tile: up to 128 rows per grid step (clamped for tiny batches).
    bm = min(block_m, _round_up(B, SUBLANE))
    b_pad = _round_up(B, bm)

    # Pad batch/feature dims and cast activations to bf16 once, outside kernel.
    x_p = jnp.pad(x, ((0, b_pad - B), (0, in_p - in_feat))).astype(jnp.bfloat16)

    w1, b1 = params["w1"], params["b1"]
    w2, b2 = params["w2"], params["b2"]
    w3, b3 = params["w3"], params["b3"]

    # Weights/biases: same block every grid step -> stay VMEM-resident.
    resident = lambda shape: pl.BlockSpec(shape, lambda i: (0, 0))

    flops = 2 * b_pad * (in_p * hid_p + hid_p * in_p + in_p * in_p)
    bytes_accessed = (
        x_p.size * 2
        + (w1.size + w2.size + w3.size) * 2
        + (b1.size + b2.size + b3.size) * 4
        + b_pad * in_p * 4
    )

    out_p = pl.pallas_call(
        mlp_kernel,
        out_shape=jax.ShapeDtypeStruct((b_pad, in_p), jnp.float32),
        grid=(b_pad // bm,),
        in_specs=[
            pl.BlockSpec((bm, in_p), lambda i: (i, 0)),
            resident((in_p, hid_p)), resident((1, hid_p)),
            resident((hid_p, in_p)), resident((1, in_p)),
            resident((in_p, in_p)),  resident((1, in_p)),
        ],
        out_specs=pl.BlockSpec((bm, in_p), lambda i: (i, 0)),
        compiler_params=pltpu.CompilerParams(
            dimension_semantics=("parallel",),   # shard batch across v7x's 2 TCs
            vmem_limit_bytes=16 << 20,           # working set ~6 MiB; keep headroom
        ),
        cost_estimate=pl.CostEstimate(
            flops=flops, transcendentals=0, bytes_accessed=bytes_accessed),
    )(x_p, w1, b1, w2, b2, w3, b3)

    return out_p[:B, :in_feat]


def reference_forward(x, params):
    """Same bf16-input / f32-accumulate path in plain jnp, for validation."""
    in_feat, in_p = params["in_feat"], params["in_p"]
    xb = jnp.pad(x, ((0, 0), (0, in_p - in_feat))).astype(jnp.bfloat16)

    def layer(h, w, b):
        return jnp.maximum(jnp.dot(h, w, preferred_element_type=jnp.float32) + b, 0.0)

    h1 = layer(xb, params["w1"], params["b1"]).astype(jnp.bfloat16)
    h2 = layer(h1, params["w2"], params["b2"]).astype(jnp.bfloat16)
    h3 = layer(h2, params["w3"], params["b3"])
    return h3[:, :in_feat]


if __name__ == "__main__":
    in_feat = 400   # module default
    batch = 16      # small example; wrapper handles any batch via the grid

    key = jax.random.PRNGKey(0)
    kx, kp = jax.random.split(key)
    x = jax.random.normal(kx, (batch, in_feat), dtype=jnp.float32)
    params = init_params(kp, in_feat)

    out = reg_model_forward(x, params)
    out = jax.block_until_ready(out)

    ref = reference_forward(x, params)
    assert out.shape == (batch, in_feat), out.shape
    assert jnp.allclose(out, ref, atol=1e-2, rtol=1e-2), "mismatch vs reference"

    print("KERNEL_OK")
</pallas_src>

<mosaic_0001>
module attributes {stable_mosaic.version = 11 : i64} {
  func.func @mlp_kernel(%arg0: i32, %arg1: memref<16x512xbf16, #tpu.memory_space<vmem>>, %arg2: memref<512x896xbf16, #tpu.memory_space<vmem>>, %arg3: memref<1x896xf32, #tpu.memory_space<vmem>>, %arg4: memref<896x512xbf16, #tpu.memory_space<vmem>>, %arg5: memref<1x512xf32, #tpu.memory_space<vmem>>, %arg6: memref<512x512xbf16, #tpu.memory_space<vmem>>, %arg7: memref<1x512xf32, #tpu.memory_space<vmem>>, %arg8: memref<16x512xf32, #tpu.memory_space<vmem>>) attributes {dimension_semantics = [#tpu.dimension_semantics<parallel>], iteration_bounds = array<i64: 1>, scalar_prefetch = 0 : i64, scratch_operands = 0 : i64, tpu.core_type = #tpu.core_type<tc>, window_params = [{transform_indices = @transform_0, window_bounds = array<i64: 16, 512>}, {pipeline_mode = #tpu.pipeline_mode<synchronous>, transform_indices = @transform_1, window_bounds = array<i64: 512, 896>}, {pipeline_mode = #tpu.pipeline_mode<synchronous>, transform_indices = @transform_2, window_bounds = array<i64: 1, 896>}, {pipeline_mode = #tpu.pipeline_mode<synchronous>, transform_indices = @transform_3, window_bounds = array<i64: 896, 512>}, {pipeline_mode = #tpu.pipeline_mode<synchronous>, transform_indices = @transform_4, window_bounds = array<i64: 1, 512>}, {pipeline_mode = #tpu.pipeline_mode<synchronous>, transform_indices = @transform_5, window_bounds = array<i64: 512, 512>}, {pipeline_mode = #tpu.pipeline_mode<synchronous>, transform_indices = @transform_6, window_bounds = array<i64: 1, 512>}, {transform_indices = @transform_7, window_bounds = array<i64: 16, 512>}]} {
    %c0 = arith.constant 0 : index
    %c0_0 = arith.constant 0 : index
    %0 = vector.load %arg1[%c0, %c0_0] : memref<16x512xbf16, #tpu.memory_space<vmem>>, vector<16x512xbf16>
    %c0_1 = arith.constant 0 : index
    %c0_2 = arith.constant 0 : index
    %1 = vector.load %arg2[%c0_1, %c0_2] : memref<512x896xbf16, #tpu.memory_space<vmem>>, vector<512x896xbf16>
    %cst = arith.constant dense<0.000000e+00> : vector<16x896xf32>
    %2 = tpu.matmul %0, %1, %cst {dimension_numbers = #tpu.dot_dimension_numbers<[1], [0], [0], [1], [0, 0, 1, 1], [], []>} : vector<16x512xbf16>, vector<512x896xbf16>, vector<16x896xf32> -> vector<16x896xf32>
    %c0_3 = arith.constant 0 : index
    %c0_4 = arith.constant 0 : index
    %3 = vector.load %arg3[%c0_3, %c0_4] : memref<1x896xf32, #tpu.memory_space<vmem>>, vector<1x896xf32>
    %4 = vector.broadcast %3 : vector<1x896xf32> to vector<16x896xf32>
    %5 = arith.addf %2, %4 : vector<16x896xf32>
    %cst_5 = arith.constant 0.000000e+00 : f32
    %6 = vector.broadcast %cst_5 : f32 to vector<16x896xf32>
    %7 = arith.maximumf %5, %6 : vector<16x896xf32>
    %8 = arith.truncf %7 : vector<16x896xf32> to vector<16x896xbf16>
    %c0_6 = arith.constant 0 : index
    %c0_7 = arith.constant 0 : index
    %9 = vector.load %arg4[%c0_6, %c0_7] : memref<896x512xbf16, #tpu.memory_space<vmem>>, vector<896x512xbf16>
    %cst_8 = arith.constant dense<0.000000e+00> : vector<16x512xf32>
    %10 = tpu.matmul %8, %9, %cst_8 {dimension_numbers = #tpu.dot_dimension_numbers<[1], [0], [0], [1], [0, 0, 1, 1], [], []>} : vector<16x896xbf16>, vector<896x512xbf16>, vector<16x512xf32> -> vector<16x512xf32>
    %c0_9 = arith.constant 0 : index
    %c0_10 = arith.constant 0 : index
    %11 = vector.load %arg5[%c0_9, %c0_10] : memref<1x512xf32, #tpu.memory_space<vmem>>, vector<1x512xf32>
    %12 = vector.broadcast %11 : vector<1x512xf32> to vector<16x512xf32>
    %13 = arith.addf %10, %12 : vector<16x512xf32>
    %cst_11 = arith.constant 0.000000e+00 : f32
    %14 = vector.broadcast %cst_11 : f32 to vector<16x512xf32>
    %15 = arith.maximumf %13, %14 : vector<16x512xf32>
    %16 = arith.truncf %15 : vector<16x512xf32> to vector<16x512xbf16>
    %c0_12 = arith.constant 0 : index
    %c0_13 = arith.constant 0 : index
    %17 = vector.load %arg6[%c0_12, %c0_13] : memref<512x512xbf16, #tpu.memory_space<vmem>>, vector<512x512xbf16>
    %cst_14 = arith.constant dense<0.000000e+00> : vector<16x512xf32>
    %18 = tpu.matmul %16, %17, %cst_14 {dimension_numbers = #tpu.dot_dimension_numbers<[1], [0], [0], [1], [0, 0, 1, 1], [], []>} : vector<16x512xbf16>, vector<512x512xbf16>, vector<16x512xf32> -> vector<16x512xf32>
    %c0_15 = arith.constant 0 : index
    %c0_16 = arith.constant 0 : index
    %19 = vector.load %arg7[%c0_15, %c0_16] : memref<1x512xf32, #tpu.memory_space<vmem>>, vector<1x512xf32>
    %20 = vector.broadcast %19 : vector<1x512xf32> to vector<16x512xf32>
    %21 = arith.addf %18, %20 : vector<16x512xf32>
    %cst_17 = arith.constant 0.000000e+00 : f32
    %22 = vector.broadcast %cst_17 : f32 to vector<16x512xf32>
    %23 = arith.maximumf %21, %22 : vector<16x512xf32>
    %c0_18 = arith.constant 0 : index
    %c0_19 = arith.constant 0 : index
    %24 = vector.load %arg8[%c0_18, %c0_19] : memref<16x512xf32, #tpu.memory_space<vmem>>, vector<16x512xf32>
    tpu.vector_store %arg8[%c0_18, %c0_19], %23 {strides = array<i32>} : memref<16x512xf32, #tpu.memory_space<vmem>>, vector<16x512xf32>,
    return
  }
  func.func @transform_0(%arg0: i32) -> (i32, i32) {
    %c0_i32 = arith.constant 0 : i32
    %c0_i32_0 = arith.constant 0 : i32
    return %arg0, %c0_i32 : i32, i32
  }
  func.func @transform_1(%arg0: i32) -> (i32, i32) {
    %c0_i32 = arith.constant 0 : i32
    %c0_i32_0 = arith.constant 0 : i32
    %c0_i32_1 = arith.constant 0 : i32
    return %c0_i32, %c0_i32_0 : i32, i32
  }
  func.func @transform_2(%arg0: i32) -> (i32, i32) {
    %c0_i32 = arith.constant 0 : i32
    %c0_i32_0 = arith.constant 0 : i32
    %c0_i32_1 = arith.constant 0 : i32
    return %c0_i32, %c0_i32_0 : i32, i32
  }
  func.func @transform_3(%arg0: i32) -> (i32, i32) {
    %c0_i32 = arith.constant 0 : i32
    %c0_i32_0 = arith.constant 0 : i32
    %c0_i32_1 = arith.constant 0 : i32
    return %c0_i32, %c0_i32_0 : i32, i32
  }
  func.func @transform_4(%arg0: i32) -> (i32, i32) {
    %c0_i32 = arith.constant 0 : i32
    %c0_i32_0 = arith.constant 0 : i32
    %c0_i32_1 = arith.constant 0 : i32
    return %c0_i32, %c0_i32_0 : i32, i32
  }
  func.func @transform_5(%arg0: i32) -> (i32, i32) {
    %c0_i32 = arith.constant 0 : i32
    %c0_i32_0 = arith.constant 0 : i32
    %c0_i32_1 = arith.constant 0 : i32
    return %c0_i32, %c0_i32_0 : i32, i32
  }
  func.func @transform_6(%arg0: i32) -> (i32, i32) {
    %c0_i32 = arith.constant 0 : i32
    %c0_i32_0 = arith.constant 0 : i32
    %c0_i32_1 = arith.constant 0 : i32
    return %c0_i32, %c0_i32_0 : i32, i32
  }
  func.func @transform_7(%arg0: i32) -> (i32, i32) {
    %c0_i32 = arith.constant 0 : i32
    %c0_i32_0 = arith.constant 0 : i32
    return %arg0, %c0_i32 : i32, i32
  }
}

</mosaic_0001>

<bundles_post_ra>
// kernel: tpu_custom_call.1
= control target key start
LH: loop header
LB: loop body
LE: loop exit
PB: predicated region body
PF: predicated region fallthrough
CT: control target
= control target key end

     0   :  { %12 = vsyncpa [#allocation3], 0  ;;  %s8136_s0 = inlined_call_operand.hbm [shape: bf16[16,512], index: 0, kind: input, shape index: {}]   ;;  %s8137_s1 = inlined_call_operand.hbm [shape: bf16[512,896], index: 1, kind: input, shape index: {}]   ;;  %s8138_s2 = inlined_call_operand.hbm [shape: f32[1,896], index: 2, kind: input, shape index: {}]   ;;  %s8139_s3 = inlined_call_operand.hbm [shape: bf16[896,512], index: 3, kind: input, shape index: {}]   ;;  %s8140_s4 = inlined_call_operand.hbm [shape: f32[1,512], index: 4, kind: input, shape index: {}]   ;;  %s8141_s5 = inlined_call_operand.hbm [shape: bf16[512,512], index: 5, kind: input, shape index: {}]   ;;  %s8142_s6 = inlined_call_operand.vmem [shape: f32[1,512], index: 6, kind: input, shape index: {}]   ;;  %s8143_s7 = inlined_call_operand.hbm [shape: f32[16,512], index: 7, kind: output, shape index: {}]  }
   0x1   :  { %13 = vsyncpa [#allocation6], 0 }
   0x2   :  { %14 = vsyncpa [#allocation9], 0 }
   0x3   :  { %15 = vsyncpa [#allocation12], 0  ;;  %s34_s26 = sshll.u32 %s8137_s1, 4  ;;  %s35_s26 = int_to_ptr.hbm [resolvable:$true] %s34_s26 }
   0x4   :  { %16 = vsyncpa [#allocation4], 0  ;;  %s7868_s27 = smov [#allocation5]   ;;  %s7869_s29 = smov 448  }
   0x5   :  { %s36_s28 = sshll.u32 %s7868_s27, 4  ;;  %s7870_s30 = smov 28   ;;  %s37_s28 = int_to_ptr.vmem [resolvable:$true] %s36_s28 }
   0x6   :  { %42 = dma.hbm_to_vmem [thread:$0]  %s35_s26, 28672, %s37_s28, [#allocation6], %s7869_s29, %s7869_s29, %s7870_s30  }
   0x7   :  { %s58_s10 = sshll.u32 %s8139_s3, 4  ;;  %s7871_s11 = smov [#allocation8]   ;;  %s59_s10 = int_to_ptr.hbm [resolvable:$true] %s58_s10 }
   0x8   :  { %s60_s12 = sshll.u32 %s7871_s11, 4  ;;  %s21_s15 = sshll.u32 %s8136_s0, 4  ;;  %s61_s12 = int_to_ptr.vmem [resolvable:$true] %s60_s12  ;;  %s22_s15 = int_to_ptr.hbm [resolvable:$true] %s21_s15 }
   0x9   :  { %s7872_s1 = smov 256   ;;  %s7873_s16 = smov 16  }
   0xa   :  { %66 = dma.hbm_to_vmem [thread:$0]  %s59_s10, 28672, %s61_s12, [#allocation9], %s7872_s1, %s7872_s1, %s7873_s16  }
   0xb   :  { %s48_s19 = sshll.u32 %s8138_s2, 4  ;;  %s7874_s20 = smov [#allocation2]   ;;  %s49_s19 = int_to_ptr.hbm [resolvable:$true] %s48_s19 }
   0xc   :  { %s23_s21 = sshll.u32 %s7874_s20, 4  ;;  %s7875_s3 = smov [#allocation7]   ;;  %s24_s21 = int_to_ptr.vmem [resolvable:$true] %s23_s21 }
   0xd   :  { %29 = dma.hbm_to_vmem [thread:$0]  %s22_s15, 512, %s24_s21, [#allocation3], %s7872_s1, %s7872_s1, %s7873_s16  }
   0xe   :  { %s50_s22 = sshll.u32 %s7875_s3, 4  ;;  %s72_s0 = sshll.u32 %s8140_s4, 4  ;;  %s51_s22 = int_to_ptr.vmem [resolvable:$true] %s50_s22  ;;  %s73_s0 = int_to_ptr.hbm [resolvable:$true] %s72_s0 }
   0xf   :  { %53 = dma.hbm_to_vmem [thread:$0]  %s49_s19, 112, %s51_s22, [#allocation6]  }
  0x10   :  { %s82_s27 = sshll.u32 %s8141_s5, 4  ;;  %s7876_s28 = smov [#allocation10]   ;;  %s83_s27 = int_to_ptr.hbm [resolvable:$true] %s82_s27 }
  0x11   :  { %s74_s2 = sshll.u32 %s7876_s28, 4  ;;  %s7877_s29 = smov [#allocation11]   ;;  %s75_s2 = int_to_ptr.vmem [resolvable:$true] %s74_s2 }
  0x12   :  { %77 = dma.hbm_to_vmem [thread:$0]  %s73_s0, 64, %s75_s2, [#allocation9]  }
  0x13   :  { %s84_s30 = sshll.u32 %s7877_s29, 4  ;;  %s85_s30 = int_to_ptr.vmem [resolvable:$true] %s84_s30 }
  0x14   :  { %90 = dma.hbm_to_vmem [thread:$0]  %s83_s27, 16384, %s85_s30, [#allocation12], %s7872_s1, %s7872_s1, %s7873_s16  }
  0x15   :  { %7858 = dma.done.wait [#allocation3], 512  }
  0x16   :  { %7859 = vsyncadd [#allocation3], 4294966784 }
  0x17   :  { %7860 = dma.done.wait [#allocation6], 28784  }
  0x18   :  { %7861 = vsyncadd [#allocation6], 4294938512 }
  0x19   :  { %7862 = dma.done.wait [#allocation9], 28736  }
  0x1a   :  { %7863 = vsyncadd [#allocation9], 4294938560 }
  0x1b   :  { %7864 = dma.done.wait [#allocation12], 16384  }
  0x1c   :  { %7865 = vsyncadd [#allocation12], 4294950912  ;;  %v4990_v0 = vld [vmem:[#allocation5 + $0x188] sm:$0xf]  ;;  %v7152_v1 = vld [vmem:[#allocation5 + $0x1a0] sm:$0xf0] }
  0x1d   :  { %v5214_v2 = vld [vmem:[#allocation5 + $0x348] sm:$0xf]  ;;  %v4991_v3 = vor.u32 %v7152_v1, %v4990_v0  ;;  %v7208_v4 = vld [vmem:[#allocation5 + $0x360] sm:$0xf0]  ;;  %v4962_v11 = vld [vmem:[#allocation5 + $0x150] sm:$0xf] }
  0x1e   :  { %v5438_v5 = vld [vmem:[#allocation5 + $0x508] sm:$0xf]  ;;  %v7264_v6 = vld [vmem:[#allocation5 + $0x520] sm:$0xf0]  ;;  %v5215_v7 = vor.u32 %v7208_v4, %v5214_v2  ;;  %v7145_v13 = vld [vmem:[#allocation5 + $0x168] sm:$0xf0] }
  0x1f   :  { %v5439_v8 = vor.u32 %v7264_v6, %v5438_v5  ;;  %v5662_v9 = vld [vmem:[#allocation5 + $0x6c8] sm:$0xf]  ;;  %v7320_v10 = vld [vmem:[#allocation5 + $0x6e0] sm:$0xf0]  ;;  %1565 = vmatpush.bf16.msra.mxu0 %v4991_v3  ;;  %v5186_v14 = vld [vmem:[#allocation5 + $0x310] sm:$0xf]  ;;  %v4963_v16 = vor.u32 %v7145_v13, %v4962_v11 }
  0x20   :  { %v5663_v12 = vor.u32 %v7320_v10, %v5662_v9  ;;  %v7201_v15 = vld [vmem:[#allocation5 + $0x328] sm:$0xf0]  ;;  %1579 = vmatpush.bf16.msra.mxu1 %v5215_v7  ;;  %v5410_v18 = vld [vmem:[#allocation5 + $0x4d0] sm:$0xf]  ;;  %v4934_v23 = vld [vmem:[#allocation5 + $0x118] sm:$0xf] }
  0x21   :  { %1593 = vmatpush.bf16.msra.mxu2 %v5439_v8  ;;  %v5187_v17 = vor.u32 %v7201_v15, %v5186_v14  ;;  %v7257_v19 = vld [vmem:[#allocation5 + $0x4e8] sm:$0xf0]  ;;  %v5634_v20 = vld [vmem:[#allocation5 + $0x690] sm:$0xf]  ;;  %v7138_v24 = vld [vmem:[#allocation5 + $0x130] sm:$0xf0] }
  0x22   :  { %1607 = vmatpush.bf16.msra.mxu3 %v5663_v12  ;;  %v5411_v21 = vor.u32 %v7257_v19, %v5410_v18  ;;  %v7313_v22 = vld [vmem:[#allocation5 + $0x6a8] sm:$0xf0]  ;;  %v5158_v26 = vld [vmem:[#allocation5 + $0x2d8] sm:$0xf]  ;;  %v7194_v27 = vld [vmem:[#allocation5 + $0x2f0] sm:$0xf0]  ;;  %v4935_v29 = vor.u32 %v7138_v24, %v4934_v23 }
  0x23   :  { %v5635_v25 = vor.u32 %v7313_v22, %v5634_v20  ;;  %v5382_v28 = vld [vmem:[#allocation5 + $0x498] sm:$0xf]  ;;  %1566 = vmatpush.bf16.msra.mxu0 %v4963_v16  ;;  %v7250_v30 = vld [vmem:[#allocation5 + $0x4b0] sm:$0xf0]  ;;  %v5159_v33 = vor.u32 %v7194_v27, %v5158_v26  ;;  %v4906_v35 = vld [vmem:[#allocation5 + $0xe0] sm:$0xf] }
  0x24   :  { %v5606_v31 = vld [vmem:[#allocation5 + $0x658] sm:$0xf]  ;;  %v7306_v32 = vld [vmem:[#allocation5 + $0x670] sm:$0xf0]  ;;  %1580 = vmatpush.bf16.msra.mxu1 %v5187_v17  ;;  %v5383_v34 = vor.u32 %v7250_v30, %v5382_v28  ;;  %v7131_v36 = vld [vmem:[#allocation5 + $0xf8] sm:$0xf0] }
  0x25   :  { %1594 = vmatpush.bf16.msra.mxu2 %v5411_v21  ;;  %v5130_v37 = vld [vmem:[#allocation5 + $0x2a0] sm:$0xf]  ;;  %v5607_v38 = vor.u32 %v7306_v32, %v5606_v31  ;;  %v7187_v39 = vld [vmem:[#allocation5 + $0x2b8] sm:$0xf0]  ;;  %v4907_v44 = vor.u32 %v7131_v36, %v4906_v35  ;;  %v4878_v47 = vld [vmem:[#allocation5 + $0xa8] sm:$0xf] }
  0x26   :  { %1608 = vmatpush.bf16.msra.mxu3 %v5635_v25  ;;  %v5354_v40 = vld [vmem:[#allocation5 + $0x460] sm:$0xf]  ;;  %v7243_v41 = vld [vmem:[#allocation5 + $0x478] sm:$0xf0]  ;;  %v5131_v45 = vor.u32 %v7187_v39, %v5130_v37  ;;  %v7124_v48 = vld [vmem:[#allocation5 + $0xc0] sm:$0xf0] }
  0x27   :  { %v5578_v42 = vld [vmem:[#allocation5 + $0x620] sm:$0xf]  ;;  %v7299_v43 = vld [vmem:[#allocation5 + $0x638] sm:$0xf0]  ;;  %1567 = vmatpush.bf16.msra.mxu0 %v4935_v29  ;;  %v5355_v46 = vor.u32 %v7243_v41, %v5354_v40  ;;  %v5102_v49 = vld [vmem:[#allocation5 + $0x268] sm:$0xf]  ;;  %v4879_v56 = vor.u32 %v7124_v48, %v4878_v47 }
  0x28   :  { %1581 = vmatpush.bf16.msra.mxu1 %v5159_v33  ;;  %v5579_v50 = vor.u32 %v7299_v43, %v5578_v42  ;;  %v7180_v51 = vld [vmem:[#allocation5 + $0x280] sm:$0xf0]  ;;  %v5326_v52 = vld [vmem:[#allocation5 + $0x428] sm:$0xf]  ;;  %v4850_v59 = vld [vmem:[#allocation5 + $0x70] sm:$0xf] }
  0x29   :  { %1595 = vmatpush.bf16.msra.mxu2 %v5383_v34  ;;  %v7236_v53 = vld [vmem:[#allocation5 + $0x440] sm:$0xf0]  ;;  %v5550_v54 = vld [vmem:[#allocation5 + $0x5e8] sm:$0xf]  ;;  %v5103_v57 = vor.u32 %v7180_v51, %v5102_v49  ;;  %v7117_v60 = vld [vmem:[#allocation5 + $0x88] sm:$0xf0] }
  0x2a   :  { %1609 = vmatpush.bf16.msra.mxu3 %v5607_v38  ;;  %v7292_v55 = vld [vmem:[#allocation5 + $0x600] sm:$0xf0]  ;;  %v5327_v58 = vor.u32 %v7236_v53, %v5326_v52  ;;  %v5074_v61 = vld [vmem:[#allocation5 + $0x230] sm:$0xf]  ;;  %v7173_v63 = vld [vmem:[#allocation5 + $0x248] sm:$0xf0]  ;;  %v4851_v4 = vor.u32 %v7117_v60, %v4850_v59 }
  0x2b   :  { %1568 = vmatpush.bf16.msra.mxu0 %v4907_v44  ;;  %v5551_v62 = vor.u32 %v7292_v55, %v5550_v54  ;;  %v5298_v0 = vld [vmem:[#allocation5 + $0x3f0] sm:$0xf]  ;;  %v7229_v1 = vld [vmem:[#allocation5 + $0x408] sm:$0xf0]  ;;  %v5075_v5 = vor.u32 %v7173_v63, %v5074_v61  ;;  %v4822_v7 = vld [vmem:[#allocation5 + $0x38] sm:$0xf] }
  0x2c   :  { %1582 = vmatpush.bf16.msra.mxu1 %v5131_v45  ;;  %v5522_v2 = vld [vmem:[#allocation5 + $0x5b0] sm:$0xf]  ;;  %v7285_v3 = vld [vmem:[#allocation5 + $0x5c8] sm:$0xf0]  ;;  %v5299_v6 = vor.u32 %v7229_v1, %v5298_v0  ;;  %v7110_v8 = vld [vmem:[#allocation5 + $0x50] sm:$0xf0] }
  0x2d   :  { %1596 = vmatpush.bf16.msra.mxu2 %v5355_v46  ;;  %v5046_v9 = vld [vmem:[#allocation5 + $0x1f8] sm:$0xf]  ;;  %v5523_v10 = vor.u32 %v7285_v3, %v5522_v2  ;;  %v7166_v11 = vld [vmem:[#allocation5 + $0x210] sm:$0xf0]  ;;  %v4823_v16 = vor.u32 %v7110_v8, %v4822_v7  ;;  %v4794_v17 = vld [vmem:[#allocation5] sm:$0xf] }
  0x2e   :  { %1610 = vmatpush.bf16.msra.mxu3 %v5579_v50  ;;  %v5270_v12 = vld [vmem:[#allocation5 + $0x3b8] sm:$0xf]  ;;  %v7222_v13 = vld [vmem:[#allocation5 + $0x3d0] sm:$0xf0]  ;;  %v7103_v18 = vld [vmem:[#allocation5 + $0x18] sm:$0xf0]  ;;  %v5047_v19 = vor.u32 %v7166_v11, %v5046_v9 }
  0x2f   :  { %1569 = vmatpush.bf16.msra.mxu0 %v4879_v56  ;;  %v5494_v14 = vld [vmem:[#allocation5 + $0x578] sm:$0xf]  ;;  %v7278_v15 = vld [vmem:[#allocation5 + $0x590] sm:$0xf0]  ;;  %v5271_v20 = vor.u32 %v7222_v13, %v5270_v12  ;;  %v5018_v21 = vld [vmem:[#allocation5 + $0x1c0] sm:$0xf]  ;;  %v4795_v31 = vor.u32 %v7103_v18, %v4794_v17 }
  0x30   :  { %1583 = vmatpush.bf16.msra.mxu1 %v5103_v57  ;;  %v7159_v22 = vld [vmem:[#allocation5 + $0x1d8] sm:$0xf0]  ;;  %v5242_v23 = vld [vmem:[#allocation5 + $0x380] sm:$0xf]  ;;  %v5495_v24 = vor.u32 %v7278_v15, %v5494_v14  ;;  %v7149_v28 = vld [vmem:[#allocation5 + $0x18c] sm:$0xf] }
  0x31   :  { %1597 = vmatpush.bf16.msra.mxu2 %v5327_v58  ;;  %v7215_v25 = vld [vmem:[#allocation5 + $0x398] sm:$0xf0]  ;;  %v5466_v26 = vld [vmem:[#allocation5 + $0x540] sm:$0xf]  ;;  %v4992_v29 = vld [vmem:[#allocation5 + $0x1a4] sm:$0xf0]  ;;  %v5019_v35 = vor.u32 %v7159_v22, %v5018_v21 }
  0x32   :  { %1611 = vmatpush.bf16.msra.mxu3 %v5551_v62  ;;  %v7271_v27 = vld [vmem:[#allocation5 + $0x558] sm:$0xf0]  ;;  %v7205_v30 = vld [vmem:[#allocation5 + $0x34c] sm:$0xf]  ;;  %v5216_v32 = vld [vmem:[#allocation5 + $0x364] sm:$0xf0]  ;;  %v5243_v36 = vor.u32 %v7215_v25, %v5242_v23  ;;  %v4995_v40 = vor.u32 %v7149_v28, %v4992_v29 }
  0x33   :  { %1570 = vmatpush.bf16.msra.mxu0 %v4851_v4  ;;  %v7261_v33 = vld [vmem:[#allocation5 + $0x50c] sm:$0xf]  ;;  %v5440_v34 = vld [vmem:[#allocation5 + $0x524] sm:$0xf0]  ;;  %v5467_v39 = vor.u32 %v7271_v27, %v5466_v26  ;;  %v5219_v41 = vor.u32 %v7205_v30, %v5216_v32  ;;  %v7142_v43 = vld [vmem:[#allocation5 + $0x154] sm:$0xf] }
  0x34   :  { %1584 = vmatpush.bf16.msra.mxu1 %v5075_v5  ;;  %v7317_v37 = vld [vmem:[#allocation5 + $0x6cc] sm:$0xf]  ;;  %v5664_v38 = vld [vmem:[#allocation5 + $0x6e4] sm:$0xf0]  ;;  %v5443_v42 = vor.u32 %v7261_v33, %v5440_v34  ;;  %v4964_v44 = vld [vmem:[#allocation5 + $0x16c] sm:$0xf0] }
  0x35   :  { %1598 = vmatpush.bf16.msra.mxu2 %v5299_v6  ;;  %v7198_v45 = vld [vmem:[#allocation5 + $0x314] sm:$0xf]  ;;  %v5667_v46 = vor.u32 %v7317_v37, %v5664_v38  ;;  %v5188_v47 = vld [vmem:[#allocation5 + $0x32c] sm:$0xf0]  ;;  %v4967_v52 = vor.u32 %v7142_v43, %v4964_v44  ;;  %v7135_v53 = vld [vmem:[#allocation5 + $0x11c] sm:$0xf] }
  0x36   :  { %1612 = vmatpush.bf16.msra.mxu3 %v5523_v10  ;;  %v7254_v48 = vld [vmem:[#allocation5 + $0x4d4] sm:$0xf]  ;;  %v5412_v49 = vld [vmem:[#allocation5 + $0x4ec] sm:$0xf0]  ;;  %v5191_v54 = vor.u32 %v7198_v45, %v5188_v47  ;;  %v4936_v56 = vld [vmem:[#allocation5 + $0x134] sm:$0xf0] }
  0x37   :  { %1571 = vmatpush.bf16.msra.mxu0 %v4823_v16  ;;  %v7310_v50 = vld [vmem:[#allocation5 + $0x694] sm:$0xf]  ;;  %v5636_v51 = vld [vmem:[#allocation5 + $0x6ac] sm:$0xf0]  ;;  %v5415_v55 = vor.u32 %v7254_v48, %v5412_v49  ;;  %v7191_v57 = vld [vmem:[#allocation5 + $0x2dc] sm:$0xf]  ;;  %v4939_v2 = vor.u32 %v7135_v53, %v4936_v56 }
  0x38   :  { %1585 = vmatpush.bf16.msra.mxu1 %v5047_v19  ;;  %v5160_v58 = vld [vmem:[#allocation5 + $0x2f4] sm:$0xf0]  ;;  %v5639_v59 = vor.u32 %v7310_v50, %v5636_v51  ;;  %v7247_v60 = vld [vmem:[#allocation5 + $0x49c] sm:$0xf]  ;;  %v7128_v0 = vld [vmem:[#allocation5 + $0xe4] sm:$0xf] }
  0x39   :  { %1599 = vmatpush.bf16.msra.mxu2 %v5271_v20  ;;  %v5384_v61 = vld [vmem:[#allocation5 + $0x4b4] sm:$0xf0]  ;;  %v7303_v62 = vld [vmem:[#allocation5 + $0x65c] sm:$0xf]  ;;  %v4908_v1 = vld [vmem:[#allocation5 + $0xfc] sm:$0xf0]  ;;  %v5163_v7 = vor.u32 %v7191_v57, %v5160_v58 }
  0x3a   :  { %1613 = vmatpush.bf16.msra.mxu3 %v5495_v24  ;;  %v5608_v63 = vld [vmem:[#allocation5 + $0x674] sm:$0xf0]  ;;  %v7184_v3 = vld [vmem:[#allocation5 + $0x2a4] sm:$0xf]  ;;  %v5132_v4 = vld [vmem:[#allocation5 + $0x2bc] sm:$0xf0]  ;;  %v5387_v8 = vor.u32 %v7247_v60, %v5384_v61  ;;  %v4911_v21 = vor.u32 %v7128_v0, %v4908_v1 }
  0x3b   :  { %1572 = vmatpush.bf16.msra.mxu0 %v4795_v31  ;;  %v4786_v5 = vld [vmem:[#allocation2 + $0x8] sm:$0xf]  ;;  %v7099_v6 = vld [vmem:[#allocation2 + $0x14] sm:$0xf0]  ;;  %v4778_v10 = vld [vmem:[#allocation2] sm:$0xf]  ;;  %v5611_v13 = vor.u32 %v7303_v62, %v5608_v63  ;;  %v5135_v24 = vor.u32 %v7184_v3, %v5132_v4 }
  0x3c   :  { %1586 = vmatpush.bf16.msra.mxu1 %v5019_v35  ;;  %v7939_v9 = vor.u32 %v7099_v6, %v4786_v5  ;;  %v7098_v11 = vld [vmem:[#allocation2 + $0xc] sm:$0xf0]  ;;  %v7097_v12 = vld [vmem:[#allocation2 + $0xc] sm:$0xf]  ;;  %v7240_v14 = vld [vmem:[#allocation5 + $0x464] sm:$0xf] }
  0x3d   :  { %1600 = vmatpush.bf16.msra.mxu2 %v5243_v36  ;;  %v5356_v15 = vld [vmem:[#allocation5 + $0x47c] sm:$0xf0]  ;;  %v7941_v16 = vor.u32 %v7098_v11, %v4778_v10  ;;  %v4788_v17 = vld [vmem:[#allocation2 + $0x18] sm:$0xf0]  ;;  %v7296_v18 = vld [vmem:[#allocation5 + $0x624] sm:$0xf] }
  0x3e   :  { %1614 = vmatpush.bf16.msra.mxu3 %v5467_v39  ;;  %v5580_v19 = vld [vmem:[#allocation5 + $0x63c] sm:$0xf0]  ;;  %v7944_v20 = vor.u32 %v7097_v12, %v4788_v17  ;;  %v7121_v22 = vld [vmem:[#allocation5 + $0xac] sm:$0xf]  ;;  %v4880_v23 = vld [vmem:[#allocation5 + $0xc4] sm:$0xf0]  ;;  %v5359_v25 = vor.u32 %v7240_v14, %v5356_v15 }
  0x3f   :  { %1621 = vmatpush.bf16.msrb.mxu0 %v4995_v40  ;;  %v7177_v26 = vld [vmem:[#allocation5 + $0x26c] sm:$0xf]  ;;  %v7096_v27 = vld [vmem:[#allocation2 + $0x4] sm:$0xf]  ;;  %v4780_v28 = vld [vmem:[#allocation2 + $0x10] sm:$0xf0]  ;;  %v5583_v29 = vor.u32 %v7296_v18, %v5580_v19  ;;  %v4883_v36 = vor.u32 %v7121_v22, %v4880_v23 }
  0x40   :  { %1635 = vmatpush.bf16.msrb.mxu1 %v5219_v41  ;;  %1601 = vmatmul.bf16.vlgmr.msra.gmra.mxu2 %v7939_v9  ;;  %v5104_v30 = vld [vmem:[#allocation5 + $0x284] sm:$0xf0]  ;;  %v7233_v31 = vld [vmem:[#allocation5 + $0x42c] sm:$0xf]  ;;  %v7947_v33 = vor.u32 %v7096_v27, %v4780_v28  ;;  %v7114_v39 = vld [vmem:[#allocation5 + $0x74] sm:$0xf] }
  0x41   :  { %1649 = vmatpush.bf16.msrb.mxu2 %v5443_v42  ;;  %v5328_v32 = vld [vmem:[#allocation5 + $0x444] sm:$0xf0]  ;;  %1573 = vmatmul.bf16.vlgmr.msra.gmra.mxu0 %v7941_v16  ;;  %v7289_v34 = vld [vmem:[#allocation5 + $0x5ec] sm:$0xf]  ;;  %v5107_v37 = vor.u32 %v7177_v26, %v5104_v30  ;;  %v4852_v40 = vld [vmem:[#allocation5 + $0x8c] sm:$0xf0] }
  0x42   :  { %1663 = vmatpush.bf16.msrb.mxu3 %v5667_v46  ;;  %v5552_v35 = vld [vmem:[#allocation5 + $0x604] sm:$0xf0]  ;;  %1587 = vmatmul.bf16.vlgmr.msra.gmra.mxu1 %v7947_v33  ;;  %v5331_v38 = vor.u32 %v7233_v31, %v5328_v32  ;;  %v7170_v41 = vld [vmem:[#allocation5 + $0x234] sm:$0xf]  ;;  %v5076_v43 = vld [vmem:[#allocation5 + $0x24c] sm:$0xf0]  ;;  %v4855_v48 = vor.u32 %v7114_v39, %v4852_v40 }
  0x43   :  { %1622 = vmatpush.bf16.msrb.mxu0 %v4967_v52  ;;  %1615 = vmatmul.bf16.vlgmr.msra.gmra.mxu3 %v7944_v20  ;;  %v5555_v42 = vor.u32 %v7289_v34, %v5552_v35  ;;  %v7226_v44 = vld [vmem:[#allocation5 + $0x3f4] sm:$0xf]  ;;  %v5300_v45 = vld [vmem:[#allocation5 + $0x40c] sm:$0xf0]  ;;  %v5079_v49 = vor.u32 %v7170_v41, %v5076_v43  ;;  %v7107_v51 = vld [vmem:[#allocation5 + $0x3c] sm:$0xf] }
  0x44   :  { %1636 = vmatpush.bf16.msrb.mxu1 %v5191_v54  ;;  %v7282_v46 = vld [vmem:[#allocation5 + $0x5b4] sm:$0xf]  ;;  %v5524_v47 = vld [vmem:[#allocation5 + $0x5cc] sm:$0xf0]  ;;  %v5303_v50 = vor.u32 %v7226_v44, %v5300_v45  ;;  %v4824_v52 = vld [vmem:[#allocation5 + $0x54] sm:$0xf0] }
  0x45   :  { %1650 = vmatpush.bf16.msrb.mxu2 %v5415_v55  ;;  %v7163_v53 = vld [vmem:[#allocation5 + $0x1fc] sm:$0xf]  ;;  %v5527_v54 = vor.u32 %v7282_v46, %v5524_v47  ;;  %v5048_v55 = vld [vmem:[#allocation5 + $0x214] sm:$0xf0]  ;;  %v4827_v60 = vor.u32 %v7107_v51, %v4824_v52  ;;  %v7100_v61 = vld [vmem:[#allocation5 + $0x4] sm:$0xf] }
  0x46   :  { %1664 = vmatpush.bf16.msrb.mxu3 %v5639_v59  ;;  %v7219_v56 = vld [vmem:[#allocation5 + $0x3bc] sm:$0xf]  ;;  %v5272_v57 = vld [vmem:[#allocation5 + $0x3d4] sm:$0xf0]  ;;  %v4796_v62 = vld [vmem:[#allocation5 + $0x1c] sm:$0xf0]  ;;  %v5051_v63 = vor.u32 %v7163_v53, %v5048_v55 }
  0x47   :  { %1623 = vmatpush.bf16.msrb.mxu0 %v4939_v2  ;;  %v7275_v58 = vld [vmem:[#allocation5 + $0x57c] sm:$0xf]  ;;  %v5496_v59 = vld [vmem:[#allocation5 + $0x594] sm:$0xf0]  ;;  %v5275_v0 = vor.u32 %v7219_v56, %v5272_v57  ;;  %v7156_v1 = vld [vmem:[#allocation5 + $0x1c4] sm:$0xf]  ;;  %v4799_v12 = vor.u32 %v7100_v61, %v4796_v62 }
  0x48   :  { %1637 = vmatpush.bf16.msrb.mxu1 %v5163_v7  ;;  %v5020_v2 = vld [vmem:[#allocation5 + $0x1dc] sm:$0xf0]  ;;  %v7212_v3 = vld [vmem:[#allocation5 + $0x384] sm:$0xf]  ;;  %v5499_v4 = vor.u32 %v7275_v58, %v5496_v59  ;;  %v7153_v10 = vld [vmem:[#allocation5 + $0x1a8] sm:$0xf0] }
  0x49   :  { %1651 = vmatpush.bf16.msrb.mxu2 %v5387_v8  ;;  %v5244_v5 = vld [vmem:[#allocation5 + $0x39c] sm:$0xf0]  ;;  %v7268_v6 = vld [vmem:[#allocation5 + $0x544] sm:$0xf]  ;;  %v4998_v8 = vld [vmem:[#allocation5 + $0x190] sm:$0xf]  ;;  %v5023_v17 = vor.u32 %v7156_v1, %v5020_v2 }
  0x4a   :  { %1665 = vmatpush.bf16.msrb.mxu3 %v5611_v13  ;;  %v5468_v7 = vld [vmem:[#allocation5 + $0x55c] sm:$0xf0]  ;;  %v5222_v11 = vld [vmem:[#allocation5 + $0x350] sm:$0xf]  ;;  %v7209_v13 = vld [vmem:[#allocation5 + $0x368] sm:$0xf0]  ;;  %v5247_v18 = vor.u32 %v7212_v3, %v5244_v5  ;;  %v4999_v23 = vor.u32 %v7153_v10, %v4998_v8 }
  0x4b   :  { %1624 = vmatpush.bf16.msrb.mxu0 %v4911_v21  ;;  %v5446_v14 = vld [vmem:[#allocation5 + $0x510] sm:$0xf]  ;;  %v7265_v15 = vld [vmem:[#allocation5 + $0x528] sm:$0xf0]  ;;  %v5471_v22 = vor.u32 %v7268_v6, %v5468_v7  ;;  %v4970_v26 = vld [vmem:[#allocation5 + $0x158] sm:$0xf] }
  0x4c   :  { %1638 = vmatpush.bf16.msrb.mxu1 %v5135_v24  ;;  %v5670_v19 = vld [vmem:[#allocation5 + $0x6d0] sm:$0xf]  ;;  %v7321_v21 = vld [vmem:[#allocation5 + $0x6e8] sm:$0xf0]  ;;  %v5223_v24 = vor.u32 %v7209_v13, %v5222_v11  ;;  %v7146_v27 = vld [vmem:[#allocation5 + $0x170] sm:$0xf0] }
  0x4d   :  { %1652 = vmatpush.bf16.msrb.mxu2 %v5359_v25  ;;  %v5447_v25 = vor.u32 %v7265_v15, %v5446_v14  ;;  %v5194_v28 = vld [vmem:[#allocation5 + $0x318] sm:$0xf]  ;;  %v7202_v30 = vld [vmem:[#allocation5 + $0x330] sm:$0xf0]  ;;  %v4942_v39 = vld [vmem:[#allocation5 + $0x120] sm:$0xf] }
  0x4e   :  { %1666 = vmatpush.bf16.msrb.mxu3 %v5583_v29  ;;  %v5671_v29 = vor.u32 %v7321_v21, %v5670_v19  ;;  %v5418_v31 = vld [vmem:[#allocation5 + $0x4d8] sm:$0xf]  ;;  %v7258_v32 = vld [vmem:[#allocation5 + $0x4f0] sm:$0xf0]  ;;  %v7139_v40 = vld [vmem:[#allocation5 + $0x138] sm:$0xf0] }
  0x4f   :  { %1625 = vmatpush.bf16.msrb.mxu0 %v4883_v36  ;;  %v5642_v34 = vld [vmem:[#allocation5 + $0x698] sm:$0xf]  ;;  %v7314_v35 = vld [vmem:[#allocation5 + $0x6b0] sm:$0xf0]  ;;  %v4971_v36 = vor.u32 %v7146_v27, %v4970_v26  ;;  %v5166_v41 = vld [vmem:[#allocation5 + $0x2e0] sm:$0xf] }
  0x50   :  { %1639 = vmatpush.bf16.msrb.mxu1 %v5107_v37  ;;  %v5195_v37 = vor.u32 %v7202_v30, %v5194_v28  ;;  %v7195_v43 = vld [vmem:[#allocation5 + $0x2f8] sm:$0xf0]  ;;  %v5390_v44 = vld [vmem:[#allocation5 + $0x4a0] sm:$0xf]  ;;  %v4914_v51 = vld [vmem:[#allocation5 + $0xe8] sm:$0xf] }
  0x51   :  { %1653 = vmatpush.bf16.msrb.mxu2 %v5331_v38  ;;  %v5419_v38 = vor.u32 %v7258_v32, %v5418_v31  ;;  %v7251_v45 = vld [vmem:[#allocation5 + $0x4b8] sm:$0xf0]  ;;  %v5614_v46 = vld [vmem:[#allocation5 + $0x660] sm:$0xf]  ;;  %v7132_v52 = vld [vmem:[#allocation5 + $0x100] sm:$0xf0] }
  0x52   :  { %1667 = vmatpush.bf16.msrb.mxu3 %v5555_v42  ;;  %v5643_v42 = vor.u32 %v7314_v35, %v5642_v34  ;;  %v7307_v47 = vld [vmem:[#allocation5 + $0x678] sm:$0xf0]  ;;  %v5138_v53 = vld [vmem:[#allocation5 + $0x2a8] sm:$0xf]  ;;  %v7188_v55 = vld [vmem:[#allocation5 + $0x2c0] sm:$0xf0] }
  0x53   :  { %1626 = vmatpush.bf16.msrb.mxu0 %v4855_v48  ;;  %v4943_v48 = vor.u32 %v7139_v40, %v4942_v39  ;;  %v5362_v56 = vld [vmem:[#allocation5 + $0x468] sm:$0xf]  ;;  %v7244_v57 = vld [vmem:[#allocation5 + $0x480] sm:$0xf0]  ;;  %v5139_v61 = vor.u32 %v7188_v55, %v5138_v53  ;;  %v5110_v1 = vld [vmem:[#allocation5 + $0x270] sm:$0xf] }
  0x54   :  { %1640 = vmatpush.bf16.msrb.mxu1 %v5079_v49  ;;  %v5167_v49 = vor.u32 %v7195_v43, %v5166_v41  ;;  %v5586_v58 = vld [vmem:[#allocation5 + $0x628] sm:$0xf]  ;;  %v7300_v59 = vld [vmem:[#allocation5 + $0x640] sm:$0xf0]  ;;  %v5363_v62 = vor.u32 %v7244_v57, %v5362_v56  ;;  %v7181_v3 = vld [vmem:[#allocation5 + $0x288] sm:$0xf0] }
  0x55   :  { %1654 = vmatpush.bf16.msrb.mxu2 %v5303_v50  ;;  %v5391_v50 = vor.u32 %v7251_v45, %v5390_v44  ;;  %v5587_v2 = vor.u32 %v7300_v59, %v5586_v58  ;;  %v7237_v5 = vld [vmem:[#allocation5 + $0x448] sm:$0xf0]  ;;  %v5558_v6 = vld [vmem:[#allocation5 + $0x5f0] sm:$0xf]  ;;  %v5111_v10 = vor.u32 %v7181_v3, %v5110_v1  ;;  %v7118_v13 = vld [vmem:[#allocation5 + $0x90] sm:$0xf0] }
  0x56   :  { %1668 = vmatpush.bf16.msrb.mxu3 %v5527_v54  ;;  %v5615_v54 = vor.u32 %v7307_v47, %v5614_v46  ;;  %v7293_v7 = vld [vmem:[#allocation5 + $0x608] sm:$0xf0]  ;;  %v5082_v14 = vld [vmem:[#allocation5 + $0x238] sm:$0xf]  ;;  %v7230_v19 = vld [vmem:[#allocation5 + $0x410] sm:$0xf0] }
  0x57   :  { %1627 = vmatpush.bf16.msrb.mxu0 %v4827_v60  ;;  %v4915_v60 = vor.u32 %v7132_v52, %v4914_v51  ;;  %v5559_v15 = vor.u32 %v7293_v7, %v5558_v6  ;;  %v5530_v21 = vld [vmem:[#allocation5 + $0x5b8] sm:$0xf]  ;;  %v4830_v26 = vld [vmem:[#allocation5 + $0x40] sm:$0xf]  ;;  %v7111_v27 = vld [vmem:[#allocation5 + $0x58] sm:$0xf0] }
  0x58   :  { %1641 = vmatpush.bf16.msrb.mxu1 %v5051_v63  ;;  %v4886_v63 = vld [vmem:[#allocation5 + $0xb0] sm:$0xf]  ;;  %v5054_v28 = vld [vmem:[#allocation5 + $0x200] sm:$0xf]  ;;  %v7167_v30 = vld [vmem:[#allocation5 + $0x218] sm:$0xf0] }
  0x59   :  { %1655 = vmatpush.bf16.msrb.mxu2 %v5275_v0  ;;  %v7125_v0 = vld [vmem:[#allocation5 + $0xc8] sm:$0xf0]  ;;  %v5278_v31 = vld [vmem:[#allocation5 + $0x3c0] sm:$0xf]  ;;  %v7223_v32 = vld [vmem:[#allocation5 + $0x3d8] sm:$0xf0]  ;;  %v5055_v39 = vor.u32 %v7167_v30, %v5054_v28 }
  0x5a   :  { %1669 = vmatpush.bf16.msrb.mxu3 %v5499_v4  ;;  %v5334_v4 = vld [vmem:[#allocation5 + $0x430] sm:$0xf]  ;;  %v4887_v8 = vor.u32 %v7125_v0, %v4886_v63  ;;  %v5502_v34 = vld [vmem:[#allocation5 + $0x580] sm:$0xf]  ;;  %v7279_v35 = vld [vmem:[#allocation5 + $0x598] sm:$0xf0]  ;;  %v5279_v40 = vor.u32 %v7223_v32, %v5278_v31 }
  0x5b   :  { %1628 = vmatpush.bf16.msrb.mxu0 %v4799_v12  ;;  %v5335_v11 = vor.u32 %v7237_v5, %v5334_v4  ;;  %v4858_v12 = vld [vmem:[#allocation5 + $0x78] sm:$0xf]  ;;  %v5026_v41 = vld [vmem:[#allocation5 + $0x1c8] sm:$0xf]  ;;  %v5503_v44 = vor.u32 %v7279_v35, %v5502_v34  ;;  %v7216_v45 = vld [vmem:[#allocation5 + $0x3a0] sm:$0xf0] }
  0x5c   :  { %1642 = vmatpush.bf16.msrb.mxu1 %v5023_v17  ;;  %v7174_v17 = vld [vmem:[#allocation5 + $0x250] sm:$0xf0]  ;;  %v5250_v43 = vld [vmem:[#allocation5 + $0x388] sm:$0xf]  ;;  %v7272_v47 = vld [vmem:[#allocation5 + $0x560] sm:$0xf0] }
  0x5d   :  { %1656 = vmatpush.bf16.msrb.mxu2 %v5247_v18  ;;  %v5306_v18 = vld [vmem:[#allocation5 + $0x3f8] sm:$0xf]  ;;  %v5474_v46 = vld [vmem:[#allocation5 + $0x548] sm:$0xf]  ;;  %v5224_v52 = vld [vmem:[#allocation5 + $0x36c] sm:$0xf0]  ;;  %v5251_v56 = vor.u32 %v7216_v45, %v5250_v43 }
  0x5e   :  { %1670 = vmatpush.bf16.msrb.mxu3 %v5471_v22  ;;  %1629 = vmatmul.bf16.vlgmr.msrb.gmra.mxu0 %v7941_v16  ;;  %v7286_v22 = vld [vmem:[#allocation5 + $0x5d0] sm:$0xf0]  ;;  %v5672_v58 = vld [vmem:[#allocation5 + $0x6ec] sm:$0xf0]  ;;  %v5475_v59 = vor.u32 %v7272_v47, %v5474_v46  ;;  %v7143_v63 = vld [vmem:[#allocation5 + $0x15c] sm:$0xf] }
  0x5f   :  { %1677 = vmatpush.bf16.msra.mxu0 %v4999_v23  ;;  %1643 = vmatmul.bf16.vlgmr.msrb.gmra.mxu1 %v7947_v33  ;;  %v4859_v23 = vor.u32 %v7118_v13, %v4858_v12  ;;  %v7262_v53 = vld [vmem:[#allocation5 + $0x514] sm:$0xf]  ;;  %v4972_v0 = vld [vmem:[#allocation5 + $0x174] sm:$0xf0]  ;;  %v7199_v1 = vld [vmem:[#allocation5 + $0x31c] sm:$0xf] }
  0x60   :  { %1691 = vmatpush.bf16.msra.mxu1 %v5223_v24  ;;  %1657 = vmatmul.bf16.vlgmr.msrb.gmra.mxu2 %v7939_v9  ;;  %v5083_v24 = vor.u32 %v7174_v17, %v5082_v14  ;;  %v7318_v57 = vld [vmem:[#allocation5 + $0x6d4] sm:$0xf]  ;;  %v5196_v3 = vld [vmem:[#allocation5 + $0x334] sm:$0xf0]  ;;  %v7255_v4 = vld [vmem:[#allocation5 + $0x4dc] sm:$0xf] }
  0x61   :  { %1705 = vmatpush.bf16.msra.mxu2 %v5447_v25  ;;  %1671 = vmatmul.bf16.vlgmr.msrb.gmra.mxu3 %v7944_v20  ;;  %v5307_v25 = vor.u32 %v7230_v19, %v5306_v18  ;;  %v5420_v5 = vld [vmem:[#allocation5 + $0x4f4] sm:$0xf0]  ;;  %v7311_v6 = vld [vmem:[#allocation5 + $0x69c] sm:$0xf]  ;;  %v7136_v12 = vld [vmem:[#allocation5 + $0x124] sm:$0xf] }
  0x62   :  { %1719 = vmatpush.bf16.msra.mxu3 %v5671_v29  ;;  %v5531_v29 = vor.u32 %v7286_v22, %v5530_v21  ;;  %v5644_v7 = vld [vmem:[#allocation5 + $0x6b4] sm:$0xf0]  ;;  %v4944_v13 = vld [vmem:[#allocation5 + $0x13c] sm:$0xf0]  ;;  %v7192_v14 = vld [vmem:[#allocation5 + $0x2e4] sm:$0xf] }
  0x63   :  { %1678 = vmatpush.bf16.msra.mxu0 %v4971_v36  ;;  %v4831_v36 = vor.u32 %v7111_v27, %v4830_v26  ;;  %v5168_v17 = vld [vmem:[#allocation5 + $0x2fc] sm:$0xf0]  ;;  %v7248_v18 = vld [vmem:[#allocation5 + $0x4a4] sm:$0xf]  ;;  %v7129_v26 = vld [vmem:[#allocation5 + $0xec] sm:$0xf] }
  0x64   :  { %1692 = vmatpush.bf16.msra.mxu1 %v5195_v37  ;;  %v4802_v37 = vld [vmem:[#allocation5 + $0x8] sm:$0xf]  ;;  %v5392_v19 = vld [vmem:[#allocation5 + $0x4bc] sm:$0xf0]  ;;  %v7304_v21 = vld [vmem:[#allocation5 + $0x664] sm:$0xf] }
  0x65   :  { %1706 = vmatpush.bf16.msra.mxu2 %v5419_v38  ;;  %v7104_v38 = vld [vmem:[#allocation5 + $0x20] sm:$0xf0]  ;;  %v5616_v22 = vld [vmem:[#allocation5 + $0x67c] sm:$0xf0]  ;;  %v4916_v27 = vld [vmem:[#allocation5 + $0x104] sm:$0xf0] }
  0x66   :  { %1720 = vmatpush.bf16.msra.mxu3 %v5643_v42  ;;  %v7160_v42 = vld [vmem:[#allocation5 + $0x1e0] sm:$0xf0]  ;;  %v4803_v51 = vor.u32 %v7104_v38, %v4802_v37  ;;  %v7185_v28 = vld [vmem:[#allocation5 + $0x2ac] sm:$0xf]  ;;  %v5140_v30 = vld [vmem:[#allocation5 + $0x2c4] sm:$0xf0] }
  0x67   :  { %1679 = vmatpush.bf16.msra.mxu0 %v4943_v48  ;;  %v7150_v48 = vld [vmem:[#allocation5 + $0x194] sm:$0xf]  ;;  %v5027_v55 = vor.u32 %v7160_v42, %v5026_v41  ;;  %v7241_v31 = vld [vmem:[#allocation5 + $0x46c] sm:$0xf]  ;;  %v5364_v32 = vld [vmem:[#allocation5 + $0x484] sm:$0xf0]  ;;  %v5143_v37 = vor.u32 %v7185_v28, %v5140_v30 }
  0x68   :  { %1693 = vmatpush.bf16.msra.mxu1 %v5167_v49  ;;  %v5000_v49 = vld [vmem:[#allocation5 + $0x1ac] sm:$0xf0]  ;;  %v7297_v34 = vld [vmem:[#allocation5 + $0x62c] sm:$0xf]  ;;  %v5588_v35 = vld [vmem:[#allocation5 + $0x644] sm:$0xf0]  ;;  %v5367_v38 = vor.u32 %v7241_v31, %v5364_v32 }
  0x69   :  { %1707 = vmatpush.bf16.msra.mxu2 %v5391_v50  ;;  %v7206_v50 = vld [vmem:[#allocation5 + $0x354] sm:$0xf]  ;;  %v5591_v42 = vor.u32 %v7297_v34, %v5588_v35  ;;  %v5112_v43 = vld [vmem:[#allocation5 + $0x28c] sm:$0xf0]  ;;  %v5454_v28 = vld [vmem:[#allocation5 + $0x518] sm:$0xf] }
  0x6a   :  { %1721 = vmatpush.bf16.msra.mxu3 %v5615_v54  ;;  %v5448_v54 = vld [vmem:[#allocation5 + $0x52c] sm:$0xf0]  ;;  %v7178_v41 = vld [vmem:[#allocation5 + $0x274] sm:$0xf]  ;;  %v5678_v32 = vld [vmem:[#allocation5 + $0x6d8] sm:$0xf] }
  0x6b   :  { %1680 = vmatpush.bf16.msra.mxu0 %v4915_v60  ;;  %v5003_v60 = vor.u32 %v7150_v48, %v5000_v49  ;;  %v5336_v45 = vld [vmem:[#allocation5 + $0x44c] sm:$0xf0]  ;;  %v7290_v46 = vld [vmem:[#allocation5 + $0x5f4] sm:$0xf]  ;;  %v5115_v49 = vor.u32 %v7178_v41, %v5112_v43  ;;  %v5202_v41 = vld [vmem:[#allocation5 + $0x320] sm:$0xf] }
  0x6c   :  { %1694 = vmatpush.bf16.msra.mxu1 %v5139_v61  ;;  %v5227_v61 = vor.u32 %v7206_v50, %v5224_v52  ;;  %v5560_v47 = vld [vmem:[#allocation5 + $0x60c] sm:$0xf0]  ;;  %v4860_v52 = vld [vmem:[#allocation5 + $0x94] sm:$0xf0]  ;;  %v7322_v34 = vld [vmem:[#allocation5 + $0x6f0] sm:$0xf0] }
  0x6d   :  { %1708 = vmatpush.bf16.msra.mxu2 %v5363_v62  ;;  %v5451_v62 = vor.u32 %v7262_v53, %v5448_v54  ;;  %v7171_v53 = vld [vmem:[#allocation5 + $0x23c] sm:$0xf]  ;;  %v5563_v54 = vor.u32 %v7290_v46, %v5560_v47  ;;  %v5650_v46 = vld [vmem:[#allocation5 + $0x6a0] sm:$0xf]  ;;  %s4760_s11 = sshll.u32 %s8143_s7, 4  ;;  %s7879_s12 = smov 512   ;;  %s4761_s11 = int_to_ptr.hbm [resolvable:$true] %s4760_s11 }
  0x6e   :  { %1722 = vmatpush.bf16.msra.mxu3 %v5587_v2  ;;  %v5675_v2 = vor.u32 %v7318_v57, %v5672_v58  ;;  %v5308_v57 = vld [vmem:[#allocation5 + $0x414] sm:$0xf0]  ;;  %v7283_v58 = vld [vmem:[#allocation5 + $0x5bc] sm:$0xf]  ;;  %s7880_s13 = smov 32  }
  0x6f   :  { %1681 = vmatpush.bf16.msra.mxu0 %v4887_v8  ;;  %v4975_v8 = vor.u32 %v7143_v63, %v4972_v0  ;;  %v7108_v63 = vld [vmem:[#allocation5 + $0x44] sm:$0xf]  ;;  %v4832_v0 = vld [vmem:[#allocation5 + $0x5c] sm:$0xf0]  ;;  %v7203_v43 = vld [vmem:[#allocation5 + $0x338] sm:$0xf0] }
  0x70   :  { %1695 = vmatpush.bf16.msra.mxu1 %v5111_v10  ;;  %v5199_v10 = vor.u32 %v7199_v1, %v5196_v3  ;;  %v7164_v1 = vld [vmem:[#allocation5 + $0x204] sm:$0xf]  ;;  %v5056_v3 = vld [vmem:[#allocation5 + $0x21c] sm:$0xf0]  ;;  %v7315_v47 = vld [vmem:[#allocation5 + $0x6b8] sm:$0xf0] }
  0x71   :  { %1709 = vmatpush.bf16.msra.mxu2 %v5335_v11  ;;  %v5423_v11 = vor.u32 %v7255_v4, %v5420_v5  ;;  %v7220_v4 = vld [vmem:[#allocation5 + $0x3c4] sm:$0xf]  ;;  %v5280_v5 = vld [vmem:[#allocation5 + $0x3dc] sm:$0xf0] }
  0x72   :  { %1723 = vmatpush.bf16.msra.mxu3 %v5559_v15  ;;  %v5647_v15 = vor.u32 %v7311_v6, %v5644_v7  ;;  %v7276_v6 = vld [vmem:[#allocation5 + $0x584] sm:$0xf]  ;;  %v5504_v7 = vld [vmem:[#allocation5 + $0x59c] sm:$0xf0] }
  0x73   :  { %1682 = vmatpush.bf16.msra.mxu0 %v4859_v23  ;;  %v4947_v23 = vor.u32 %v7136_v12, %v4944_v13  ;;  %v5059_v12 = vor.u32 %v7164_v1, %v5056_v3  ;;  %v5283_v13 = vor.u32 %v7220_v4, %v5280_v5  ;;  %v5146_v1 = vld [vmem:[#allocation5 + $0x2b0] sm:$0xf]  ;;  %v7189_v3 = vld [vmem:[#allocation5 + $0x2c8] sm:$0xf0] }
  0x74   :  { %1696 = vmatpush.bf16.msra.mxu1 %v5083_v24  ;;  %v5171_v24 = vor.u32 %v7192_v14, %v5168_v17  ;;  %v7157_v14 = vld [vmem:[#allocation5 + $0x1cc] sm:$0xf]  ;;  %v5370_v4 = vld [vmem:[#allocation5 + $0x470] sm:$0xf] }
  0x75   :  { %1710 = vmatpush.bf16.msra.mxu2 %v5307_v25  ;;  %v5395_v25 = vor.u32 %v7248_v18, %v5392_v19  ;;  %v7213_v17 = vld [vmem:[#allocation5 + $0x38c] sm:$0xf]  ;;  %v5507_v18 = vor.u32 %v7276_v6, %v5504_v7  ;;  %v5252_v19 = vld [vmem:[#allocation5 + $0x3a4] sm:$0xf0]  ;;  %v5594_v6 = vld [vmem:[#allocation5 + $0x630] sm:$0xf] }
  0x76   :  { %1724 = vmatpush.bf16.msra.mxu3 %v5531_v29  ;;  %v5619_v29 = vor.u32 %v7304_v21, %v5616_v22  ;;  %v7269_v21 = vld [vmem:[#allocation5 + $0x54c] sm:$0xf]  ;;  %v5476_v22 = vld [vmem:[#allocation5 + $0x564] sm:$0xf0]  ;;  %v5255_v31 = vor.u32 %v7213_v17, %v5252_v19  ;;  %v7182_v17 = vld [vmem:[#allocation5 + $0x290] sm:$0xf0] }
  0x77   :  { %1683 = vmatpush.bf16.msra.mxu0 %v4831_v36  ;;  %v4919_v36 = vor.u32 %v7129_v26, %v4916_v27  ;;  %v7210_v27 = vld [vmem:[#allocation5 + $0x370] sm:$0xf0]  ;;  %v5479_v35 = vor.u32 %v7269_v21, %v5476_v22  ;;  %v7245_v5 = vld [vmem:[#allocation5 + $0x488] sm:$0xf0]  ;;  %v5566_v21 = vld [vmem:[#allocation5 + $0x5f8] sm:$0xf] }
  0x78   :  { %1697 = vmatpush.bf16.msra.mxu1 %v5055_v39  ;;  %v7122_v39 = vld [vmem:[#allocation5 + $0xb4] sm:$0xf]  ;;  %v7301_v7 = vld [vmem:[#allocation5 + $0x648] sm:$0xf0] }
  0x79   :  { %1711 = vmatpush.bf16.msra.mxu2 %v5279_v40  ;;  %v4888_v40 = vld [vmem:[#allocation5 + $0xcc] sm:$0xf0]  ;;  %v7238_v19 = vld [vmem:[#allocation5 + $0x450] sm:$0xf0] }
  0x7a   :  { %1725 = vmatpush.bf16.msra.mxu3 %v5503_v44  ;;  %v7234_v44 = vld [vmem:[#allocation5 + $0x434] sm:$0xf]  ;;  %v4891_v48 = vor.u32 %v7122_v39, %v4888_v40  ;;  %v4978_v39 = vld [vmem:[#allocation5 + $0x160] sm:$0xf]  ;;  %v7147_v40 = vld [vmem:[#allocation5 + $0x178] sm:$0xf0] }
  0x7b   :  { %1684 = vmatpush.bf16.msra.mxu0 %v4803_v51  ;;  %v5339_v50 = vor.u32 %v7234_v44, %v5336_v45  ;;  %v7115_v51 = vld [vmem:[#allocation5 + $0x7c] sm:$0xf]  ;;  %v5426_v44 = vld [vmem:[#allocation5 + $0x4e0] sm:$0xf]  ;;  %v7294_v22 = vld [vmem:[#allocation5 + $0x610] sm:$0xf0] }
  0x7c   :  { %1698 = vmatpush.bf16.msra.mxu1 %v5027_v55  ;;  %v5084_v55 = vld [vmem:[#allocation5 + $0x254] sm:$0xf0]  ;;  %v7259_v45 = vld [vmem:[#allocation5 + $0x4f8] sm:$0xf0] }
  0x7d   :  { %1712 = vmatpush.bf16.msra.mxu2 %v5251_v56  ;;  %v7227_v56 = vld [vmem:[#allocation5 + $0x3fc] sm:$0xf] }
  0x7e   :  { %1726 = vmatpush.bf16.msra.mxu3 %v5475_v59  ;;  %1685 = vmatmul.bf16.vlgmr.msra.gmra.mxu0 %v7941_v16  ;;  %v5532_v59 = vld [vmem:[#allocation5 + $0x5d4] sm:$0xf0] }
  0x7f   :  { %1733 = vmatpush.bf16.msrb.mxu0 %v5003_v60  ;;  %1699 = vmatmul.bf16.vlgmr.msra.gmra.mxu1 %v7947_v33  ;;  %v4863_v60 = vor.u32 %v7115_v51, %v4860_v52  ;;  %v4950_v51 = vld [vmem:[#allocation5 + $0x128] sm:$0xf]  ;;  %v7140_v52 = vld [vmem:[#allocation5 + $0x140] sm:$0xf0] }
  0x80   :  { %1747 = vmatpush.bf16.msrb.mxu1 %v5227_v61  ;;  %1713 = vmatmul.bf16.vlgmr.msra.gmra.mxu2 %v7939_v9  ;;  %v5087_v61 = vor.u32 %v7171_v53, %v5084_v55  ;;  %v5174_v53 = vld [vmem:[#allocation5 + $0x2e8] sm:$0xf]  ;;  %v7196_v55 = vld [vmem:[#allocation5 + $0x300] sm:$0xf0] }
  0x81   :  { %1761 = vmatpush.bf16.msrb.mxu2 %v5451_v62  ;;  %1727 = vmatmul.bf16.vlgmr.msra.gmra.mxu3 %v7944_v20  ;;  %v5311_v62 = vor.u32 %v7227_v56, %v5308_v57  ;;  %v5398_v56 = vld [vmem:[#allocation5 + $0x4a8] sm:$0xf]  ;;  %v7252_v57 = vld [vmem:[#allocation5 + $0x4c0] sm:$0xf0] }
  0x82   :  { %1775 = vmatpush.bf16.msrb.mxu3 %v5675_v2  ;;  %v5535_v2 = vor.u32 %v7283_v58, %v5532_v59  ;;  %v5622_v58 = vld [vmem:[#allocation5 + $0x668] sm:$0xf]  ;;  %v7308_v59 = vld [vmem:[#allocation5 + $0x680] sm:$0xf0] }
  0x83   :  { %1734 = vmatpush.bf16.msrb.mxu0 %v4975_v8  ;;  %v4835_v8 = vor.u32 %v7108_v63, %v4832_v0  ;;  %v4922_v63 = vld [vmem:[#allocation5 + $0xf0] sm:$0xf]  ;;  %v7133_v0 = vld [vmem:[#allocation5 + $0x108] sm:$0xf0] }
  0x84   :  { %1748 = vmatpush.bf16.msrb.mxu1 %v5199_v10  ;;  %v7101_v10 = vld [vmem:[#allocation5 + $0xc] sm:$0xf] }
  0x85   :  { %1762 = vmatpush.bf16.msrb.mxu2 %v5423_v11  ;;  %v4804_v11 = vld [vmem:[#allocation5 + $0x24] sm:$0xf0] }
  0x86   :  { %1776 = vmatpush.bf16.msrb.mxu3 %v5647_v15  ;;  %v5028_v15 = vld [vmem:[#allocation5 + $0x1e4] sm:$0xf0]  ;;  %v4807_v26 = vor.u32 %v7101_v10, %v4804_v11  ;;  %v5147_v10 = vor.u32 %v7189_v3, %v5146_v1  ;;  %v5371_v11 = vor.u32 %v7245_v5, %v5370_v4  ;;  %v7263_v1 = vld [vmem:[#allocation5 + $0x51c] sm:$0xf] }
  0x87   :  { %1735 = vmatpush.bf16.msrb.mxu0 %v4947_v23  ;;  %v5006_v23 = vld [vmem:[#allocation5 + $0x198] sm:$0xf]  ;;  %v5031_v30 = vor.u32 %v7157_v14, %v5028_v15  ;;  %v5595_v15 = vor.u32 %v7301_v7, %v5594_v6  ;;  %v7319_v5 = vld [vmem:[#allocation5 + $0x6dc] sm:$0xf] }
  0x88   :  { %1749 = vmatpush.bf16.msrb.mxu1 %v5171_v24  ;;  %v7154_v24 = vld [vmem:[#allocation5 + $0x1b0] sm:$0xf0]  ;;  %v5118_v14 = vld [vmem:[#allocation5 + $0x278] sm:$0xf] }
  0x89   :  { %1763 = vmatpush.bf16.msrb.mxu2 %v5395_v25  ;;  %v5230_v25 = vld [vmem:[#allocation5 + $0x358] sm:$0xf] }
  0x8a   :  { %1777 = vmatpush.bf16.msrb.mxu3 %v5619_v29  ;;  %v7266_v29 = vld [vmem:[#allocation5 + $0x530] sm:$0xf0]  ;;  %v5680_v6 = vld [vmem:[#allocation5 + $0x6f4] sm:$0xf0] }
  0x8b   :  { %1736 = vmatpush.bf16.msrb.mxu0 %v4919_v36  ;;  %v5007_v36 = vor.u32 %v7154_v24, %v5006_v23  ;;  %v5119_v24 = vor.u32 %v7182_v17, %v5118_v14  ;;  %v7200_v14 = vld [vmem:[#allocation5 + $0x324] sm:$0xf]  ;;  %v5204_v17 = vld [vmem:[#allocation5 + $0x33c] sm:$0xf0] }
  0x8c   :  { %1750 = vmatpush.bf16.msrb.mxu1 %v5143_v37  ;;  %v5231_v37 = vor.u32 %v7210_v27, %v5230_v25  ;;  %v7119_v27 = vld [vmem:[#allocation5 + $0x98] sm:$0xf0] }
  0x8d   :  { %1764 = vmatpush.bf16.msrb.mxu2 %v5367_v38  ;;  %v5455_v38 = vor.u32 %v7266_v29, %v5454_v28  ;;  %v5090_v28 = vld [vmem:[#allocation5 + $0x240] sm:$0xf]  ;;  %v5567_v29 = vor.u32 %v7294_v22, %v5566_v21  ;;  %v7312_v21 = vld [vmem:[#allocation5 + $0x6a4] sm:$0xf] }
  0x8e   :  { %1778 = vmatpush.bf16.msrb.mxu3 %v5591_v42  ;;  %v5679_v42 = vor.u32 %v7322_v34, %v5678_v32  ;;  %v7231_v32 = vld [vmem:[#allocation5 + $0x418] sm:$0xf0]  ;;  %v5538_v34 = vld [vmem:[#allocation5 + $0x5c0] sm:$0xf] }
  0x8f   :  { %1737 = vmatpush.bf16.msrb.mxu0 %v4891_v48  ;;  %v4979_v48 = vor.u32 %v7147_v40, %v4978_v39  ;;  %v4838_v39 = vld [vmem:[#allocation5 + $0x48] sm:$0xf]  ;;  %v7112_v40 = vld [vmem:[#allocation5 + $0x60] sm:$0xf0]  ;;  %v5652_v22 = vld [vmem:[#allocation5 + $0x6bc] sm:$0xf0] }
  0x90   :  { %1751 = vmatpush.bf16.msrb.mxu1 %v5115_v49  ;;  %v5203_v49 = vor.u32 %v7203_v43, %v5202_v41  ;;  %v5062_v41 = vld [vmem:[#allocation5 + $0x208] sm:$0xf]  ;;  %v7168_v43 = vld [vmem:[#allocation5 + $0x220] sm:$0xf0] }
  0x91   :  { %1765 = vmatpush.bf16.msrb.mxu2 %v5339_v50  ;;  %v5427_v50 = vor.u32 %v7259_v45, %v5426_v44  ;;  %v5286_v44 = vld [vmem:[#allocation5 + $0x3c8] sm:$0xf]  ;;  %v7224_v45 = vld [vmem:[#allocation5 + $0x3e0] sm:$0xf0] }
  0x92   :  { %1779 = vmatpush.bf16.msrb.mxu3 %v5563_v54  ;;  %v5651_v54 = vor.u32 %v7315_v47, %v5650_v46  ;;  %v5510_v46 = vld [vmem:[#allocation5 + $0x588] sm:$0xf]  ;;  %v7280_v47 = vld [vmem:[#allocation5 + $0x5a0] sm:$0xf0] }
  0x93   :  { %1738 = vmatpush.bf16.msrb.mxu0 %v4863_v60  ;;  %v4951_v60 = vor.u32 %v7140_v52, %v4950_v51  ;;  %v5063_v51 = vor.u32 %v7168_v43, %v5062_v41  ;;  %v5287_v52 = vor.u32 %v7224_v45, %v5286_v44  ;;  %v7186_v41 = vld [vmem:[#allocation5 + $0x2b4] sm:$0xf]  ;;  %v5148_v43 = vld [vmem:[#allocation5 + $0x2cc] sm:$0xf0] }
  0x94   :  { %1752 = vmatpush.bf16.msrb.mxu1 %v5087_v61  ;;  %v5175_v61 = vor.u32 %v7196_v55, %v5174_v53  ;;  %v5034_v53 = vld [vmem:[#allocation5 + $0x1d0] sm:$0xf]  ;;  %v7242_v44 = vld [vmem:[#allocation5 + $0x474] sm:$0xf] }
  0x95   :  { %1766 = vmatpush.bf16.msrb.mxu2 %v5311_v62  ;;  %v5399_v62 = vor.u32 %v7252_v57, %v5398_v56  ;;  %v5258_v55 = vld [vmem:[#allocation5 + $0x390] sm:$0xf]  ;;  %v5511_v56 = vor.u32 %v7280_v47, %v5510_v46  ;;  %v7217_v57 = vld [vmem:[#allocation5 + $0x3a8] sm:$0xf0]  ;;  %v7298_v46 = vld [vmem:[#allocation5 + $0x634] sm:$0xf] }
  0x96   :  { %1780 = vmatpush.bf16.msrb.mxu3 %v5535_v2  ;;  %v5623_v2 = vor.u32 %v7308_v59, %v5622_v58  ;;  %v5482_v58 = vld [vmem:[#allocation5 + $0x550] sm:$0xf]  ;;  %v7273_v59 = vld [vmem:[#allocation5 + $0x568] sm:$0xf0]  ;;  %v5259_v4 = vor.u32 %v7217_v57, %v5258_v55  ;;  %v5120_v55 = vld [vmem:[#allocation5 + $0x294] sm:$0xf0] }
  0x97   :  { %1739 = vmatpush.bf16.msrb.mxu0 %v4835_v8  ;;  %v4923_v8 = vor.u32 %v7133_v0, %v4922_v63  ;;  %v5232_v0 = vld [vmem:[#allocation5 + $0x374] sm:$0xf0]  ;;  %v5483_v7 = vor.u32 %v7273_v59, %v5482_v58  ;;  %v5372_v45 = vld [vmem:[#allocation5 + $0x48c] sm:$0xf0]  ;;  %v7291_v58 = vld [vmem:[#allocation5 + $0x5fc] sm:$0xf] }
  0x98   :  { %1753 = vmatpush.bf16.msrb.mxu1 %v5059_v12  ;;  %v4894_v12 = vld [vmem:[#allocation5 + $0xb8] sm:$0xf]  ;;  %v5596_v47 = vld [vmem:[#allocation5 + $0x64c] sm:$0xf0] }
  0x99   :  { %1767 = vmatpush.bf16.msrb.mxu2 %v5283_v13  ;;  %v7126_v13 = vld [vmem:[#allocation5 + $0xd0] sm:$0xf0]  ;;  %v5344_v57 = vld [vmem:[#allocation5 + $0x454] sm:$0xf0] }
  0x9a   :  { %1781 = vmatpush.bf16.msrb.mxu3 %v5507_v18  ;;  %v5342_v18 = vld [vmem:[#allocation5 + $0x438] sm:$0xf]  ;;  %v4895_v23 = vor.u32 %v7126_v13, %v4894_v12  ;;  %v7144_v12 = vld [vmem:[#allocation5 + $0x164] sm:$0xf]  ;;  %v4980_v13 = vld [vmem:[#allocation5 + $0x17c] sm:$0xf0] }
  0x9b   :  { %1740 = vmatpush.bf16.msrb.mxu0 %v4807_v26  ;;  %v5343_v25 = vor.u32 %v7238_v19, %v5342_v18  ;;  %v4866_v26 = vld [vmem:[#allocation5 + $0x80] sm:$0xf]  ;;  %v7256_v18 = vld [vmem:[#allocation5 + $0x4e4] sm:$0xf]  ;;  %v5568_v59 = vld [vmem:[#allocation5 + $0x614] sm:$0xf0] }
  0x9c   :  { %1754 = vmatpush.bf16.msrb.mxu1 %v5031_v30  ;;  %v7175_v30 = vld [vmem:[#allocation5 + $0x258] sm:$0xf0]  ;;  %v5428_v19 = vld [vmem:[#allocation5 + $0x4fc] sm:$0xf0] }
  0x9d   :  { %1768 = vmatpush.bf16.msrb.mxu2 %v5255_v31  ;;  %v5314_v31 = vld [vmem:[#allocation5 + $0x400] sm:$0xf] }
  0x9e   :  { %1782 = vmatpush.bf16.msrb.mxu3 %v5479_v35  ;;  %1741 = vmatmul.bf16.vlgmr.msrb.gmra.mxu0 %v7941_v16  ;;  %v7287_v35 = vld [vmem:[#allocation5 + $0x5d8] sm:$0xf0] }
  0x9f   :  { %1789 = vmatpush.bf16.msra.mxu0 %v5007_v36  ;;  %1755 = vmatmul.bf16.vlgmr.msrb.gmra.mxu1 %v7947_v33  ;;  %v4867_v36 = vor.u32 %v7119_v27, %v4866_v26  ;;  %v7137_v26 = vld [vmem:[#allocation5 + $0x12c] sm:$0xf]  ;;  %v4952_v27 = vld [vmem:[#allocation5 + $0x144] sm:$0xf0] }
  0xa0   :  { %1803 = vmatpush.bf16.msra.mxu1 %v5231_v37  ;;  %1769 = vmatmul.bf16.vlgmr.msrb.gmra.mxu2 %v7939_v9  ;;  %v5091_v37 = vor.u32 %v7175_v30, %v5090_v28  ;;  %v7193_v28 = vld [vmem:[#allocation5 + $0x2ec] sm:$0xf]  ;;  %v5176_v30 = vld [vmem:[#allocation5 + $0x304] sm:$0xf0] }
  0xa1   :  { %1817 = vmatpush.bf16.msra.mxu2 %v5455_v38  ;;  %1783 = vmatmul.bf16.vlgmr.msrb.gmra.mxu3 %v7944_v20  ;;  %v5315_v38 = vor.u32 %v7231_v32, %v5314_v31  ;;  %v7249_v31 = vld [vmem:[#allocation5 + $0x4ac] sm:$0xf]  ;;  %v5400_v32 = vld [vmem:[#allocation5 + $0x4c4] sm:$0xf0] }
  0xa2   :  { %1831 = vmatpush.bf16.msra.mxu3 %v5679_v42  ;;  %v5539_v42 = vor.u32 %v7287_v35, %v5538_v34  ;;  %v7305_v34 = vld [vmem:[#allocation5 + $0x66c] sm:$0xf]  ;;  %v5624_v35 = vld [vmem:[#allocation5 + $0x684] sm:$0xf0] }
  0xa3   :  { %1790 = vmatpush.bf16.msra.mxu0 %v4979_v48  ;;  %v4839_v48 = vor.u32 %v7112_v40, %v4838_v39  ;;  %v7130_v39 = vld [vmem:[#allocation5 + $0xf4] sm:$0xf]  ;;  %v4924_v40 = vld [vmem:[#allocation5 + $0x10c] sm:$0xf0] }
  0xa4   :  { %1804 = vmatpush.bf16.msra.mxu1 %v5203_v49  ;;  %v4810_v49 = vld [vmem:[#allocation5 + $0x10] sm:$0xf] }
  0xa5   :  { %1818 = vmatpush.bf16.msra.mxu2 %v5427_v50  ;;  %v7105_v50 = vld [vmem:[#allocation5 + $0x28] sm:$0xf0] }
  0xa6   :  { %1832 = vmatpush.bf16.msra.mxu3 %v5651_v54  ;;  %v7161_v54 = vld [vmem:[#allocation5 + $0x1e8] sm:$0xf0]  ;;  %v4811_v63 = vor.u32 %v7105_v50, %v4810_v49  ;;  %v5151_v49 = vor.u32 %v7186_v41, %v5148_v43  ;;  %v5375_v50 = vor.u32 %v7242_v44, %v5372_v45  ;;  %v5462_v41 = vld [vmem:[#allocation5 + $0x520] sm:$0xf] }
  0xa7   :  { %1791 = vmatpush.bf16.msra.mxu0 %v4951_v60  ;;  %v7151_v60 = vld [vmem:[#allocation5 + $0x19c] sm:$0xf]  ;;  %v5035_v3 = vor.u32 %v7161_v54, %v5034_v53  ;;  %v5599_v54 = vor.u32 %v7298_v46, %v5596_v47  ;;  %v5686_v45 = vld [vmem:[#allocation5 + $0x6e0] sm:$0xf] }
  0xa8   :  { %1805 = vmatpush.bf16.msra.mxu1 %v5175_v61  ;;  %v5008_v61 = vld [vmem:[#allocation5 + $0x1b4] sm:$0xf0]  ;;  %v7179_v53 = vld [vmem:[#allocation5 + $0x27c] sm:$0xf] }
  0xa9   :  { %1819 = vmatpush.bf16.msra.mxu2 %v5399_v62  ;;  %v7207_v62 = vld [vmem:[#allocation5 + $0x35c] sm:$0xf] }
  0xaa   :  { %1833 = vmatpush.bf16.msra.mxu3 %v5623_v2  ;;  %v5456_v2 = vld [vmem:[#allocation5 + $0x534] sm:$0xf0]  ;;  %v7323_v46 = vld [vmem:[#allocation5 + $0x6f8] sm:$0xf0] }
  0xab   :  { %1792 = vmatpush.bf16.msra.mxu0 %v4923_v8  ;;  %v5011_v8 = vor.u32 %v7151_v60, %v5008_v61  ;;  %v5123_v61 = vor.u32 %v7179_v53, %v5120_v55  ;;  %v5210_v53 = vld [vmem:[#allocation5 + $0x328] sm:$0xf]  ;;  %v7204_v55 = vld [vmem:[#allocation5 + $0x340] sm:$0xf0] }
  0xac   :  { %1806 = vmatpush.bf16.msra.mxu1 %v5147_v10  ;;  %v5235_v10 = vor.u32 %v7207_v62, %v5232_v0  ;;  %v4868_v0 = vld [vmem:[#allocation5 + $0x9c] sm:$0xf0] }
  0xad   :  { %1820 = vmatpush.bf16.msra.mxu2 %v5371_v11  ;;  %v5459_v11 = vor.u32 %v7263_v1, %v5456_v2  ;;  %v7172_v1 = vld [vmem:[#allocation5 + $0x244] sm:$0xf]  ;;  %v5571_v2 = vor.u32 %v7291_v58, %v5568_v59  ;;  %v5658_v58 = vld [vmem:[#allocation5 + $0x6a8] sm:$0xf] }
  0xae   :  { %1834 = vmatpush.bf16.msra.mxu3 %v5595_v15  ;;  %v5683_v15 = vor.u32 %v7319_v5, %v5680_v6  ;;  %v5316_v5 = vld [vmem:[#allocation5 + $0x41c] sm:$0xf0]  ;;  %v7284_v6 = vld [vmem:[#allocation5 + $0x5c4] sm:$0xf] }
  0xaf   :  { %1793 = vmatpush.bf16.msra.mxu0 %v4895_v23  ;;  %v4983_v23 = vor.u32 %v7144_v12, %v4980_v13  ;;  %v7109_v12 = vld [vmem:[#allocation5 + $0x4c] sm:$0xf]  ;;  %v4840_v13 = vld [vmem:[#allocation5 + $0x64] sm:$0xf0]  ;;  %v7316_v59 = vld [vmem:[#allocation5 + $0x6c0] sm:$0xf0] }
  0xb0   :  { %1807 = vmatpush.bf16.msra.mxu1 %v5119_v24  ;;  %v5207_v24 = vor.u32 %v7200_v14, %v5204_v17  ;;  %v7165_v14 = vld [vmem:[#allocation5 + $0x20c] sm:$0xf]  ;;  %v5064_v17 = vld [vmem:[#allocation5 + $0x224] sm:$0xf0] }
  0xb1   :  { %1821 = vmatpush.bf16.msra.mxu2 %v5343_v25  ;;  %v5431_v25 = vor.u32 %v7256_v18, %v5428_v19  ;;  %v7221_v18 = vld [vmem:[#allocation5 + $0x3cc] sm:$0xf]  ;;  %v5288_v19 = vld [vmem:[#allocation5 + $0x3e4] sm:$0xf0] }
  0xb2   :  { %1835 = vmatpush.bf16.msra.mxu3 %v5567_v29  ;;  %v5655_v29 = vor.u32 %v7312_v21, %v5652_v22  ;;  %v7277_v21 = vld [vmem:[#allocation5 + $0x58c] sm:$0xf]  ;;  %v5512_v22 = vld [vmem:[#allocation5 + $0x5a4] sm:$0xf0] }
  0xb3   :  { %1794 = vmatpush.bf16.msra.mxu0 %v4867_v36  ;;  %v4955_v36 = vor.u32 %v7137_v26, %v4952_v27  ;;  %v5067_v26 = vor.u32 %v7165_v14, %v5064_v17  ;;  %v5291_v27 = vor.u32 %v7221_v18, %v5288_v19  ;;  %v7134_v17 = vld [vmem:[#allocation5 + $0x110] sm:$0xf0]  ;;  %v5154_v18 = vld [vmem:[#allocation5 + $0x2b8] sm:$0xf] }
  0xb4   :  { %1808 = vmatpush.bf16.msra.mxu1 %v5091_v37  ;;  %v5179_v37 = vor.u32 %v7193_v28, %v5176_v30  ;;  %v7158_v28 = vld [vmem:[#allocation5 + $0x1d4] sm:$0xf] }
  0xb5   :  { %1822 = vmatpush.bf16.msra.mxu2 %v5315_v38  ;;  %v5403_v38 = vor.u32 %v7249_v31, %v5400_v32  ;;  %v7214_v30 = vld [vmem:[#allocation5 + $0x394] sm:$0xf]  ;;  %v5515_v31 = vor.u32 %v7277_v21, %v5512_v22  ;;  %v5260_v32 = vld [vmem:[#allocation5 + $0x3ac] sm:$0xf0] }
  0xb6   :  { %1836 = vmatpush.bf16.msra.mxu3 %v5539_v42  ;;  %v5627_v42 = vor.u32 %v7305_v34, %v5624_v35  ;;  %v7270_v34 = vld [vmem:[#allocation5 + $0x554] sm:$0xf]  ;;  %v5484_v35 = vld [vmem:[#allocation5 + $0x56c] sm:$0xf0]  ;;  %v5263_v44 = vor.u32 %v7214_v30, %v5260_v32  ;;  %v4902_v30 = vld [vmem:[#allocation5 + $0xc0] sm:$0xf] }
  0xb7   :  { %1795 = vmatpush.bf16.msra.mxu0 %v4839_v48  ;;  %v4927_v48 = vor.u32 %v7130_v39, %v4924_v40  ;;  %v7211_v40 = vld [vmem:[#allocation5 + $0x378] sm:$0xf0]  ;;  %v5487_v47 = vor.u32 %v7270_v34, %v5484_v35  ;;  %v7190_v22 = vld [vmem:[#allocation5 + $0x2d0] sm:$0xf0]  ;;  %v5126_v32 = vld [vmem:[#allocation5 + $0x280] sm:$0xf] }
  0xb8   :  { %1809 = vmatpush.bf16.msra.mxu1 %v5063_v51  ;;  %v7123_v51 = vld [vmem:[#allocation5 + $0xbc] sm:$0xf] }
  0xb9   :  { %1823 = vmatpush.bf16.msra.mxu2 %v5287_v52  ;;  %v4896_v52 = vld [vmem:[#allocation5 + $0xd4] sm:$0xf0] }
  0xba   :  { %1837 = vmatpush.bf16.msra.mxu3 %v5511_v56  ;;  %v7235_v56 = vld [vmem:[#allocation5 + $0x43c] sm:$0xf]  ;;  %v4899_v60 = vor.u32 %v7123_v51, %v4896_v52  ;;  %v4986_v51 = vld [vmem:[#allocation5 + $0x168] sm:$0xf]  ;;  %v7148_v52 = vld [vmem:[#allocation5 + $0x180] sm:$0xf0] }
  0xbb   :  { %1796 = vmatpush.bf16.msra.mxu0 %v4811_v63  ;;  %v5347_v62 = vor.u32 %v7235_v56, %v5344_v57  ;;  %v7116_v63 = vld [vmem:[#allocation5 + $0x84] sm:$0xf]  ;;  %v5434_v56 = vld [vmem:[#allocation5 + $0x4e8] sm:$0xf] }
  0xbc   :  { %1810 = vmatpush.bf16.msra.mxu1 %v5035_v3  ;;  %v5092_v3 = vld [vmem:[#allocation5 + $0x25c] sm:$0xf0]  ;;  %v7260_v57 = vld [vmem:[#allocation5 + $0x500] sm:$0xf0] }
  0xbd   :  { %1824 = vmatpush.bf16.msra.mxu2 %v5259_v4  ;;  %v7228_v4 = vld [vmem:[#allocation5 + $0x404] sm:$0xf] }
  0xbe   :  { %1838 = vmatpush.bf16.msra.mxu3 %v5483_v7  ;;  %1797 = vmatmul.bf16.vlgmr.msra.gmra.mxu0 %v7941_v16  ;;  %v5540_v7 = vld [vmem:[#allocation5 + $0x5dc] sm:$0xf0] }
  0xbf   :  { %1845 = vmatpush.bf16.msrb.mxu0 %v5011_v8  ;;  %1811 = vmatmul.bf16.vlgmr.msra.gmra.mxu1 %v7947_v33  ;;  %v4871_v8 = vor.u32 %v7116_v63, %v4868_v0  ;;  %v5435_v63 = vor.u32 %v7260_v57, %v5434_v56  ;;  %v7969_v0 = vpop.f32.mrf.mxu1 }
  0xc0   :  { %1859 = vmatpush.bf16.msrb.mxu1 %v5235_v10  ;;  %1825 = vmatmul.bf16.vlgmr.msra.gmra.mxu2 %v7939_v9  ;;  %v5095_v10 = vor.u32 %v7172_v1, %v5092_v3  ;;  %v4958_v1 = vld [vmem:[#allocation5 + $0x130] sm:$0xf] }
  0xc1   :  { %1873 = vmatpush.bf16.msrb.mxu2 %v5459_v11  ;;  %1839 = vmatmul.bf16.vlgmr.msra.gmra.mxu3 %v7944_v20  ;;  %v5319_v11 = vor.u32 %v7228_v4, %v5316_v5  ;;  %v5182_v3 = vld [vmem:[#allocation5 + $0x2f0] sm:$0xf]  ;;  %v5659_v4 = vor.u32 %v7316_v59, %v5658_v58  ;;  %v7197_v5 = vld [vmem:[#allocation5 + $0x308] sm:$0xf0] }
  0xc2   :  { %1887 = vmatpush.bf16.msrb.mxu3 %v5683_v15  ;;  %v5543_v15 = vor.u32 %v7284_v6, %v5540_v7  ;;  %v5406_v6 = vld [vmem:[#allocation5 + $0x4b0] sm:$0xf]  ;;  %v7253_v7 = vld [vmem:[#allocation5 + $0x4c8] sm:$0xf0] }
  0xc3   :  { %1846 = vmatpush.bf16.msrb.mxu0 %v4983_v23  ;;  %v4843_v23 = vor.u32 %v7109_v12, %v4840_v13  ;;  %v7975_v12 = vpop.f32.mrf.mxu2  ;;  %v5183_v13 = vor.u32 %v7197_v5, %v5182_v3  ;;  %v5407_v14 = vor.u32 %v7253_v7, %v5406_v6  ;;  %v4846_v59 = vld [vmem:[#allocation5 + $0x50] sm:$0xf]  ;;  %v7225_v3 = vld [vmem:[#allocation5 + $0x3e8] sm:$0xf0] }
  0xc4   :  { %1860 = vmatpush.bf16.msrb.mxu1 %v5207_v24  ;;  %v7102_v24 = vld [vmem:[#allocation5 + $0x14] sm:$0xf]  ;;  %v5518_v5 = vld [vmem:[#allocation5 + $0x590] sm:$0xf]  ;;  %v7281_v6 = vld [vmem:[#allocation5 + $0x5a8] sm:$0xf0] }
  0xc5   :  { %1874 = vmatpush.bf16.msrb.mxu2 %v5431_v25  ;;  %v4812_v25 = vld [vmem:[#allocation5 + $0x2c] sm:$0xf0] }
  0xc6   :  { %1888 = vmatpush.bf16.msrb.mxu3 %v5655_v29  ;;  %v5036_v29 = vld [vmem:[#allocation5 + $0x1ec] sm:$0xf0]  ;;  %v4815_v39 = vor.u32 %v7102_v24, %v4812_v25  ;;  %v7977_v21 = vpop.f32.mrf.mxu3  ;;  %v7246_v24 = vld [vmem:[#allocation5 + $0x490] sm:$0xf0]  ;;  %v5602_v25 = vld [vmem:[#allocation5 + $0x638] sm:$0xf] }
  0xc7   :  { %1847 = vmatpush.bf16.msrb.mxu0 %v4955_v36  ;;  %v5014_v36 = vld [vmem:[#allocation5 + $0x1a0] sm:$0xf]  ;;  %v5039_v43 = vor.u32 %v7158_v28, %v5036_v29  ;;  %v5155_v28 = vor.u32 %v7190_v22, %v5154_v18  ;;  %v5519_v18 = vor.u32 %v7281_v6, %v5518_v5  ;;  %v7218_v22 = vld [vmem:[#allocation5 + $0x3b0] sm:$0xf0]  ;;  %v7378_v5 = vld [vmem:[#allocation8 + $0x1ac] sm:$0xf0] }
  0xc8   :  { %1861 = vmatpush.bf16.msrb.mxu1 %v5179_v37  ;;  %v7155_v37 = vld [vmem:[#allocation5 + $0x1b8] sm:$0xf0] }
  0xc9   :  { %1875 = vmatpush.bf16.msrb.mxu2 %v5403_v38  ;;  %v5238_v38 = vld [vmem:[#allocation5 + $0x360] sm:$0xf] }
  0xca   :  { %1889 = vmatpush.bf16.msrb.mxu3 %v5627_v42  ;;  %v7267_v42 = vld [vmem:[#allocation5 + $0x538] sm:$0xf0] }
  0xcb   :  { %1848 = vmatpush.bf16.msrb.mxu0 %v4927_v48  ;;  %v5015_v48 = vor.u32 %v7155_v37, %v5014_v36  ;;  %v7183_v36 = vld [vmem:[#allocation5 + $0x298] sm:$0xf0]  ;;  %v5350_v37 = vld [vmem:[#allocation5 + $0x440] sm:$0xf] }
  0xcc   :  { %1862 = vmatpush.bf16.msrb.mxu1 %v5151_v49  ;;  %v5239_v49 = vor.u32 %v7211_v40, %v5238_v38  ;;  %v7239_v38 = vld [vmem:[#allocation5 + $0x458] sm:$0xf0]  ;;  %v5574_v40 = vld [vmem:[#allocation5 + $0x600] sm:$0xf] }
  0xcd   :  { %1876 = vmatpush.bf16.msrb.mxu2 %v5375_v50  ;;  %v5463_v50 = vor.u32 %v7267_v42, %v5462_v41  ;;  %v7295_v41 = vld [vmem:[#allocation5 + $0x618] sm:$0xf0] }
  0xce   :  { %1890 = vmatpush.bf16.msrb.mxu3 %v5599_v54  ;;  %v5687_v54 = vor.u32 %v7323_v46, %v5686_v45  ;;  %v4874_v45 = vld [vmem:[#allocation5 + $0x88] sm:$0xf]  ;;  %v7120_v46 = vld [vmem:[#allocation5 + $0xa0] sm:$0xf0] }
  0xcf   :  { %1849 = vmatpush.bf16.msrb.mxu0 %v4899_v60  ;;  %v7967_v60 = vpop.f32.mrf.mxu0  ;;  %v4875_v56 = vor.u32 %v7120_v46, %v4874_v45  ;;  %v6186_v45 = vld [vmem:[#allocation8 + $0x3e0] sm:$0xf]  ;;  %v7450_v46 = vld [vmem:[#allocation8 + $0x3ec] sm:$0xf0] }
  0xd0   :  { %1863 = vmatpush.bf16.msrb.mxu1 %v5123_v61  ;;  %v4987_v61 = vor.u32 %v7148_v52, %v4986_v51  ;;  %v7232_v51 = vld [vmem:[#allocation5 + $0x420] sm:$0xf0]  ;;  %v7983_v52 = vpop.f32.mrf.mxu2 }
  0xd1   :  { %1877 = vmatpush.bf16.msrb.mxu2 %v5347_v62  ;;  %v5211_v62 = vor.u32 %v7204_v55, %v5210_v53  ;;  %v5546_v53 = vld [vmem:[#allocation5 + $0x5c8] sm:$0xf]  ;;  %v7985_v55 = vpop.f32.mrf.mxu3 }
  0xd2   :  { %1891 = vmatpush.bf16.msrb.mxu3 %v5571_v2  ;;  %v7141_v2 = vld [vmem:[#allocation5 + $0x148] sm:$0xf0] }
  0xd3   :  { %1850 = vmatpush.bf16.msrb.mxu0 %v4871_v8  ;;  %v5630_v8 = vld [vmem:[#allocation5 + $0x670] sm:$0xf] }
  0xd4   :  { %1864 = vmatpush.bf16.msrb.mxu1 %v5095_v10  ;;  %v7309_v10 = vld [vmem:[#allocation5 + $0x688] sm:$0xf0] }
  0xd5   :  { %1878 = vmatpush.bf16.msrb.mxu2 %v5319_v11  ;;  %v4959_v11 = vor.u32 %v7141_v2, %v4958_v1  ;;  %v5631_v19 = vor.u32 %v7309_v10, %v5630_v8  ;;  %v7169_v1 = vld [vmem:[#allocation5 + $0x228] sm:$0xf0]  ;;  %v5294_v2 = vld [vmem:[#allocation5 + $0x3d0] sm:$0xf]  ;;  %v4818_v10 = vld [vmem:[#allocation5 + $0x18] sm:$0xf] }
  0xd6   :  { %1892 = vmatpush.bf16.msrb.mxu3 %v5543_v15  ;;  %v4930_v15 = vld [vmem:[#allocation5 + $0xf8] sm:$0xf] }
  0xd7   :  { %1851 = vmatpush.bf16.msrb.mxu0 %v4843_v23  ;;  %v5378_v23 = vld [vmem:[#allocation5 + $0x478] sm:$0xf]  ;;  %v7979_v34 = vpop.f32.mrf.mxu0 }
  0xd8   :  { %1865 = vmatpush.bf16.msrb.mxu1 %v5067_v26  ;;  %v7302_v26 = vld [vmem:[#allocation5 + $0x650] sm:$0xf0]  ;;  %v5379_v29 = vor.u32 %v7246_v24, %v5378_v23  ;;  %v5490_v23 = vld [vmem:[#allocation5 + $0x558] sm:$0xf] }
  0xd9   :  { %1879 = vmatpush.bf16.msrb.mxu2 %v5291_v27  ;;  %v4931_v27 = vor.u32 %v7134_v17, %v4930_v15  ;;  %v5603_v35 = vor.u32 %v7302_v26, %v5602_v25  ;;  %v5042_v15 = vld [vmem:[#allocation5 + $0x1d8] sm:$0xf]  ;;  %v7162_v17 = vld [vmem:[#allocation5 + $0x1f0] sm:$0xf0]  ;;  %v5802_v25 = vld [vmem:[#allocation8 + $0xe0] sm:$0xf] }
  0xda   :  { %1893 = vmatpush.bf16.msrb.mxu3 %v5515_v31  ;;  %v7127_v31 = vld [vmem:[#allocation5 + $0xd8] sm:$0xf0]  ;;  %v7274_v24 = vld [vmem:[#allocation5 + $0x570] sm:$0xf0]  ;;  %v7354_v26 = vld [vmem:[#allocation8 + $0xec] sm:$0xf0] }
  0xdb   :  { %1852 = vmatpush.bf16.msrb.mxu0 %v4815_v39  ;;  %v7981_v39 = vpop.f32.mrf.mxu1  ;;  %v4903_v42 = vor.u32 %v7127_v31, %v4902_v30  ;;  %v7386_v30 = vld [vmem:[#allocation8 + $0x1ec] sm:$0xf0] }
  0xdc   :  { %1866 = vmatpush.bf16.msrb.mxu1 %v5039_v43  ;;  %v5127_v43 = vor.u32 %v7183_v36, %v5126_v32  ;;  %v7995_v32 = vld [vmem:[#allocation7] sm:$0xff] }
  0xdd   :  { %1880 = vmatpush.bf16.msrb.mxu2 %v5263_v44  ;;  %v5351_v44 = vor.u32 %v7239_v38, %v5350_v37  ;;  %v5491_v37 = vor.u32 %v7274_v24, %v5490_v23  ;;  %v5803_v38 = vor.u32 %v7354_v26, %v5802_v25  ;;  %v380_v6 = vperm.slane %v7995_v32, 1  ;;  %v7374_v23 = vld [vmem:[#allocation8 + $0x18c] sm:$0xf0] }
  0xde   :  { %1894 = vmatpush.bf16.msrb.mxu3 %v5487_v47  ;;  %1853 = vmatmul.bf16.vlgmr.msrb.gmra.mxu0 %v7941_v16  ;;  %v5098_v47 = vld [vmem:[#allocation5 + $0x248] sm:$0xf]  ;;  %v381_v24 = vperm.slane %v7995_v32, 2 }
  0xdf   :  { %1901 = vmatpush.bf16.msra.mxu0 %v5015_v48  ;;  %1867 = vmatmul.bf16.vlgmr.msrb.gmra.mxu1 %v7947_v33  ;;  %v5575_v48 = vor.u32 %v7295_v41, %v5574_v40  ;;  %v6058_v40 = vld [vmem:[#allocation8 + $0x2e0] sm:$0xf]  ;;  %v7418_v41 = vld [vmem:[#allocation8 + $0x2ec] sm:$0xf0] }
  0xe0   :  { %1915 = vmatpush.bf16.msra.mxu1 %v5239_v49  ;;  %1881 = vmatmul.bf16.vlgmr.msrb.gmra.mxu2 %v7939_v9  ;;  %v7176_v49 = vld [vmem:[#allocation5 + $0x260] sm:$0xf0] }
  0xe1   :  { %1929 = vmatpush.bf16.msra.mxu2 %v5463_v50  ;;  %1895 = vmatmul.bf16.vlgmr.msrb.gmra.mxu3 %v7944_v20  ;;  %v5322_v50 = vld [vmem:[#allocation5 + $0x408] sm:$0xf]  ;;  %v5099_v57 = vor.u32 %v7176_v49, %v5098_v47  ;;  %v379_v47 = vperm.slane %v7995_v32, 0  ;;  %v7382_v49 = vld [vmem:[#allocation8 + $0x1cc] sm:$0xf0] }
  0xe2   :  { %1943 = vmatpush.bf16.msra.mxu3 %v5687_v54  ;;  %v7288_v54 = vld [vmem:[#allocation5 + $0x5e0] sm:$0xf0]  ;;  %v5323_v58 = vor.u32 %v7232_v51, %v5322_v50  ;;  %v6059_v51 = vor.u32 %v7418_v41, %v6058_v40  ;;  %v7338_v40 = vld [vmem:[#allocation8 + $0x6c] sm:$0xf0]  ;;  %v6138_v41 = vld [vmem:[#allocation8 + $0x380] sm:$0xf] }
  0xe3   :  { %1902 = vmatpush.bf16.msra.mxu0 %v4987_v61  ;;  %v7113_v61 = vld [vmem:[#allocation5 + $0x68] sm:$0xf0]  ;;  %v7989_v7 = vpop.f32.mrf.mxu1 }
  0xe4   :  { %1916 = vmatpush.bf16.msra.mxu1 %v5211_v62  ;;  %v5070_v62 = vld [vmem:[#allocation5 + $0x210] sm:$0xf]  ;;  %v4847_v8 = vor.u32 %v7113_v61, %v4846_v59  ;;  %v7993_v31 = vpop.f32.mrf.mxu3  ;;  %v5770_v59 = vld [vmem:[#allocation8 + $0xa0] sm:$0xf] }
  0xe5   :  { %1930 = vmatpush.bf16.msra.mxu2 %v5435_v63  ;;  %v5547_v63 = vor.u32 %v7288_v54, %v5546_v53 }
  0xe6   :  { %1944 = vmatpush.bf16.msra.mxu3 %v5659_v4  ;;  %v7987_v4 = vpop.f32.mrf.mxu0 }
  0xe7   :  { %1903 = vmatpush.bf16.msra.mxu0 %v4959_v11  ;;  %v5071_v11 = vor.u32 %v7169_v1, %v5070_v62  ;;  %v7346_v62 = vld [vmem:[#allocation8 + $0xac] sm:$0xf0]  ;;  %v1631_v25 = vadd.f32 %v7987_v4, %v380_v6 }
  0xe8   :  { %1917 = vmatpush.bf16.msra.mxu1 %v5183_v13  ;;  %v5295_v13 = vor.u32 %v7225_v3, %v5294_v2  ;;  %v7446_v1 = vld [vmem:[#allocation8 + $0x3cc] sm:$0xf0]  ;;  %v1575_v2 = vadd.f32 %v7967_v60, %v379_v47  ;;  %v5898_v3 = vld [vmem:[#allocation8 + $0x1a0] sm:$0xf] }
  0xe9   :  { %1931 = vmatpush.bf16.msra.mxu2 %v5407_v14  ;;  %v7106_v14 = vld [vmem:[#allocation5 + $0x30] sm:$0xf0]  ;;  %v6026_v60 = vld [vmem:[#allocation8 + $0x2a0] sm:$0xf] }
  0xea   :  { %1945 = vmatpush.bf16.msra.mxu3 %v5631_v19  ;;  %v5266_v19 = vld [vmem:[#allocation5 + $0x398] sm:$0xf] }
  0xeb   :  { %1904 = vmatpush.bf16.msra.mxu0 %v4931_v27  ;;  %v7991_v27 = vpop.f32.mrf.mxu2  ;;  %v5267_v36 = vor.u32 %v7218_v22, %v5266_v19  ;;  %v7998_v53 = vpop.f32.mrf.mxu1  ;;  %v1577_v19 = vadd.f32 %v7979_v34, %v379_v47  ;;  %v5882_v22 = vld [vmem:[#allocation8 + $0x180] sm:$0xf]  ;;  %v1645_v47 = vadd.f32 %v7989_v7, %v1631_v25 }
  0xec   :  { %1918 = vmatpush.bf16.msra.mxu1 %v5155_v28  ;;  %v4819_v28 = vor.u32 %v7106_v14, %v4818_v10  ;;  %v5754_v14 = vld [vmem:[#allocation8 + $0x80] sm:$0xf] }
  0xed   :  { %1932 = vmatpush.bf16.msra.mxu2 %v5379_v29  ;;  %v5930_v29 = vld [vmem:[#allocation8 + $0x1e0] sm:$0xf]  ;;  %v1591_v4 = vadd.f32 %v7981_v39, %v1577_v19  ;;  %v7334_v39 = vld [vmem:[#allocation8 + $0x4c] sm:$0xf0] }
  0xee   :  { %1946 = vmatpush.bf16.msra.mxu3 %v5603_v35  ;;  %v5043_v35 = vor.u32 %v7162_v17, %v5042_v15  ;;  %v1632_v50 = vpop.f32.mrf.mxu0  ;;  %v7342_v15 = vld [vmem:[#allocation8 + $0x8c] sm:$0xf0]  ;;  %v6154_v17 = vld [vmem:[#allocation8 + $0x3a0] sm:$0xf] }
  0xef   :  { %1905 = vmatpush.bf16.msra.mxu0 %v4903_v42  ;;  %v5786_v42 = vld [vmem:[#allocation8 + $0xc0] sm:$0xf]  ;;  %v1633_v26 = vadd.f32 %v1632_v50, %v380_v6  ;;  %v1605_v7 = vadd.f32 %v7983_v52, %v1591_v4  ;;  %v7482_v4 = vld [vmem:[#allocation8 + $0x4ec] sm:$0xf0] }
  0xf0   :  { %1919 = vmatpush.bf16.msra.mxu1 %v5127_v43  ;;  %v5931_v43 = vor.u32 %v7386_v30, %v5930_v29  ;;  %v5755_v29 = vor.u32 %v7342_v15, %v5754_v14  ;;  %v7330_v15 = vld [vmem:[#allocation8 + $0x2c] sm:$0xf0]  ;;  %v5834_v19 = vld [vmem:[#allocation8 + $0x120] sm:$0xf] }
  0xf1   :  { %1933 = vmatpush.bf16.msra.mxu2 %v5351_v44  ;;  %v7350_v44 = vld [vmem:[#allocation8 + $0xcc] sm:$0xf0] }
  0xf2   :  { %1947 = vmatpush.bf16.msra.mxu3 %v5575_v48  ;;  %v5914_v48 = vld [vmem:[#allocation8 + $0x1c0] sm:$0xf]  ;;  %v5787_v54 = vor.u32 %v7350_v44, %v5786_v42  ;;  %v7438_v42 = vld [vmem:[#allocation8 + $0x38c] sm:$0xf0] }
  0xf3   :  { %1906 = vmatpush.bf16.msra.mxu0 %v4875_v56  ;;  %v6187_v56 = vor.u32 %v7450_v46, %v6186_v45  ;;  %v5915_v61 = vor.u32 %v7382_v49, %v5914_v48  ;;  %v8006_v10 = vpop.f32.mrf.mxu2  ;;  %v5866_v45 = vld [vmem:[#allocation8 + $0x160] sm:$0xf]  ;;  %v7370_v46 = vld [vmem:[#allocation8 + $0x16c] sm:$0xf0]  ;;  %v1647_v48 = vadd.f32 %v7998_v53, %v1633_v26 }
  0xf4   :  { %1920 = vmatpush.bf16.msra.mxu1 %v5099_v57  ;;  %v6042_v57 = vld [vmem:[#allocation8 + $0x2c0] sm:$0xf] }
  0xf5   :  { %1934 = vmatpush.bf16.msra.mxu2 %v5323_v58  ;;  %v7414_v58 = vld [vmem:[#allocation8 + $0x2cc] sm:$0xf0] }
  0xf6   :  { %1948 = vmatpush.bf16.msra.mxu3 %v5547_v63  ;;  %v6170_v63 = vld [vmem:[#allocation8 + $0x3c0] sm:$0xf] }
  0xf7   :  { %1907 = vmatpush.bf16.msra.mxu0 %v4847_v8  ;;  %v6043_v8 = vor.u32 %v7414_v58, %v6042_v57  ;;  %v5722_v57 = vld [vmem:[#allocation8 + $0x40] sm:$0xf] }
  0xf8   :  { %1921 = vmatpush.bf16.msra.mxu1 %v5071_v11  ;;  %v6171_v11 = vor.u32 %v7446_v1, %v6170_v63  ;;  %v5850_v1 = vld [vmem:[#allocation8 + $0x140] sm:$0xf] }
  0xf9   :  { %1935 = vmatpush.bf16.msra.mxu2 %v5295_v13  ;;  %v8008_v13 = vpop.f32.mrf.mxu3 }
  0xfa   :  { %1949 = vmatpush.bf16.msra.mxu3 %v5519_v18  ;;  %v7442_v18 = vld [vmem:[#allocation8 + $0x3ac] sm:$0xf0] }
  0xfb   :  { %1908 = vmatpush.bf16.msra.mxu0 %v4819_v28  ;;  %v1686_v30 = vpop.f32.mrf.mxu0 }
  0xfc   :  { %1922 = vmatpush.bf16.msra.mxu1 %v5043_v35  ;;  %v6155_v35 = vor.u32 %v7442_v18, %v6154_v17  ;;  %v1700_v34 = vpop.f32.mrf.mxu1  ;;  %v1687_v44 = vadd.f32 %v1686_v30, %v381_v24  ;;  %v6106_v17 = vld [vmem:[#allocation8 + $0x340] sm:$0xf]  ;;  %v7430_v18 = vld [vmem:[#allocation8 + $0x34c] sm:$0xf0] }
  0xfd   :  { %1936 = vmatpush.bf16.msra.mxu2 %v5267_v36  ;;  %v6010_v36 = vld [vmem:[#allocation8 + $0x280] sm:$0xf]  ;;  %v6107_v30 = vor.u32 %v7430_v18, %v6106_v17 }
  0xfe   :  { %1950 = vmatpush.bf16.msra.mxu3 %v5491_v37  ;;  %1909 = vmatmul.bf16.vlgmr.msra.gmra.mxu0 %v7941_v16  ;;  %v5771_v16 = vor.u32 %v7346_v62, %v5770_v59  ;;  %v7406_v37 = vld [vmem:[#allocation8 + $0x28c] sm:$0xf0]  ;;  %v6122_v59 = vld [vmem:[#allocation8 + $0x360] sm:$0xf]  ;;  %v1701_v53 = vadd.f32 %v1700_v34, %v1687_v44 }
  0xff   :  { %3332 = vmatpush.bf16.msrb.mxu0 %v5803_v38  ;;  %1923 = vmatmul.bf16.vlgmr.msra.gmra.mxu1 %v7947_v33  ;;  %v7410_v33 = vld [vmem:[#allocation8 + $0x2ac] sm:$0xf0]  ;;  %v5738_v38 = vld [vmem:[#allocation8 + $0x60] sm:$0xf]  ;;  %v6011_v49 = vor.u32 %v7406_v37, %v6010_v36 }
 0x100   :  { %3346 = vmatpush.bf16.msrb.mxu1 %v5931_v43  ;;  %1937 = vmatmul.bf16.vlgmr.msra.gmra.mxu2 %v7939_v9  ;;  %v5899_v9 = vor.u32 %v7378_v5, %v5898_v3  ;;  %v6027_v28 = vor.u32 %v7410_v33, %v6026_v60  ;;  %v5739_v50 = vor.u32 %v7338_v40, %v5738_v38  ;;  %v5978_v60 = vld [vmem:[#allocation8 + $0x240] sm:$0xf]  ;;  %v7326_v37 = vld [vmem:[#allocation8 + $0xc] sm:$0xf0] }
 0x101   :  { %1951 = vmatmul.bf16.vlgmr.msra.gmra.mxu3 %v7944_v20  ;;  %3360 = vmatpush.bf16.msrb.mxu2 %v6059_v51  ;;  %v1589_v20 = vadd.f32 %v7969_v0, %v1575_v2  ;;  %v5883_v0 = vor.u32 %v7374_v23, %v5882_v22  ;;  %v6139_v51 = vor.u32 %v7438_v42, %v6138_v41  ;;  %v7366_v2 = vld [vmem:[#allocation8 + $0x14c] sm:$0xf0]  ;;  %v5706_v33 = vld [vmem:[#allocation8 + $0x20] sm:$0xf] }
 0x102   :  { %3374 = vmatpush.bf16.msrb.mxu3 %v6187_v56  ;;  %v7402_v56 = vld [vmem:[#allocation8 + $0x26c] sm:$0xf0]  ;;  %v1659_v3 = vadd.f32 %v7991_v27, %v1645_v47  ;;  %v1661_v5 = vadd.f32 %v8006_v10, %v1647_v48  ;;  %v5851_v52 = vor.u32 %v7366_v2, %v5850_v1  ;;  %v1619_v10 = vadd.f32 %v7985_v55, %v1605_v7  ;;  %v5690_v36 = vld [vmem:[#allocation8] sm:$0xf] }
 0x103   :  { %3333 = vmatpush.bf16.msrb.mxu0 %v5787_v54  ;;  %v1603_v43 = vadd.f32 %v7975_v12, %v1589_v20  ;;  %v5994_v54 = vld [vmem:[#allocation8 + $0x260] sm:$0xf]  ;;  %v5867_v12 = vor.u32 %v7370_v46, %v5866_v45  ;;  %v1714_v58 = vpop.f32.mrf.mxu2  ;;  %v7362_v22 = vld [vmem:[#allocation8 + $0x12c] sm:$0xf0] }
 0x104   :  { %3347 = vmatpush.bf16.msrb.mxu1 %v5915_v61  ;;  %v7434_v61 = vld [vmem:[#allocation8 + $0x36c] sm:$0xf0]  ;;  %v1728_v63 = vpop.f32.mrf.mxu3  ;;  %v5995_v6 = vor.u32 %v7402_v56, %v5994_v54  ;;  %v1715_v20 = vadd.f32 %v1714_v58, %v1701_v53  ;;  %v1673_v23 = vadd.f32 %v7993_v31, %v1659_v3  ;;  %v1675_v25 = vadd.f32 %v8008_v13, %v1661_v5  ;;  %v6090_v34 = vld [vmem:[#allocation8 + $0x320] sm:$0xf] }
 0x105   :  { %3361 = vmatpush.bf16.msrb.mxu2 %v6043_v8  ;;  %v8019_v62 = vadd.f32 %v7977_v21, %v1603_v43  ;;  %v5723_v8 = vor.u32 %v7334_v39, %v5722_v57  ;;  %v7398_v21 = vld [vmem:[#allocation8 + $0x24c] sm:$0xf0]  ;;  %v5835_v55 = vor.u32 %v7362_v22, %v5834_v19  ;;  %v6314_v43 = vld [vmem:[#allocation8 + $0x4e0] sm:$0xf]  ;;  %v1964_v44 = vmax.f32 %v1619_v10, 0.0 }
 0x106   :  { %3375 = vmatpush.bf16.msrb.mxu3 %v6171_v11  ;;  %v6123_v11 = vor.u32 %v7434_v61, %v6122_v59  ;;  %v7426_v40 = vld [vmem:[#allocation8 + $0x32c] sm:$0xf0]  ;;  %v1729_v31 = vadd.f32 %v1728_v63, %v1715_v20  ;;  %v1958_v45 = vmax.f32 %v1673_v23, 0.0  ;;  %v1965_v46 = vmax.f32 %v1675_v25, 0.0  ;;  %v6074_v56 = vld [vmem:[#allocation8 + $0x300] sm:$0xf] }
 0x107   :  { %3334 = vmatpush.bf16.msrb.mxu0 %v5771_v16  ;;  %v1688_v16 = vpop.f32.mrf.mxu0  ;;  %v1957_v27 = vmax.f32 %v8019_v62, 0.0  ;;  %v7358_v42 = vld [vmem:[#allocation8 + $0x10c] sm:$0xf0]  ;;  %v6315_v58 = vor.u32 %v7482_v4, %v6314_v43  ;;  %v7352_v39 = vld [vmem:[#allocation8 + $0xe4] sm:$0xf]  ;;  %v382_v23 = vperm.slane %v7995_v32, 3 }
 0x108   :  { %3348 = vmatpush.bf16.msrb.mxu1 %v5899_v9  ;;  %v1689_v14 = vadd.f32 %v1688_v16, %v381_v24  ;;  %v1702_v9 = vpop.f32.mrf.mxu1  ;;  %v5707_v24 = vor.u32 %v7330_v15, %v5706_v33  ;;  %v7390_v54 = vld [vmem:[#allocation8 + $0x20c] sm:$0xf0]  ;;  %v5804_v59 = vld [vmem:[#allocation8 + $0xf0] sm:$0xf0]  ;;  %v1959_v61 = vmax.f32 %v1729_v31, 0.0 }
 0x109   :  { %3362 = vmatpush.bf16.msrb.mxu2 %v6027_v28  ;;  %v5979_v28 = vor.u32 %v7398_v21, %v5978_v60  ;;  %v6298_v7 = vld [vmem:[#allocation8 + $0x4c0] sm:$0xf]  ;;  %v7478_v53 = vld [vmem:[#allocation8 + $0x4cc] sm:$0xf0]  ;;  %v8028_v2 = vpack.c.bf16 %v1964_v44, %v1957_v27  ;;  %v5807_v3 = vor.u32 %v7352_v39, %v5804_v59  ;;  %v5788_v21 = vld [vmem:[#allocation8 + $0xd0] sm:$0xf0] }
 0x10a   :  { %3376 = vmatpush.bf16.msrb.mxu3 %v6155_v35  ;;  %v1703_v26 = vadd.f32 %v1702_v9, %v1689_v14  ;;  %v7394_v35 = vld [vmem:[#allocation8 + $0x22c] sm:$0xf0]  ;;  %v6299_v5 = vor.u32 %v7478_v53, %v6298_v7  ;;  %v6282_v33 = vld [vmem:[#allocation8 + $0x4a0] sm:$0xf]  ;;  %v7344_v27 = vld [vmem:[#allocation8 + $0xa4] sm:$0xf] }
 0x10b   :  { %3335 = vmatpush.bf16.msrb.mxu0 %v5755_v29  ;;  %v5962_v29 = vld [vmem:[#allocation8 + $0x220] sm:$0xf]  ;;  %v1716_v38 = vpop.f32.mrf.mxu2  ;;  %v7514_v16 = vld [vmem:[#allocation8 + $0x5ec] sm:$0xf0]  ;;  %v5772_v10 = vld [vmem:[#allocation8 + $0xb0] sm:$0xf0] }
 0x10c   :  { %3349 = vmatpush.bf16.msrb.mxu1 %v5883_v0  ;;  %v5818_v0 = vld [vmem:[#allocation8 + $0x100] sm:$0xf]  ;;  %v1717_v41 = vadd.f32 %v1716_v38, %v1703_v26  ;;  %v1730_v13 = vpop.f32.mrf.mxu3  ;;  %v5963_v47 = vor.u32 %v7394_v35, %v5962_v29  ;;  %v7510_v15 = vld [vmem:[#allocation8 + $0x5cc] sm:$0xf0]  ;;  %v5775_v25 = vor.u32 %v7344_v27, %v5772_v10  ;;  %v5756_v35 = vld [vmem:[#allocation8 + $0x90] sm:$0xf0] }
 0x10d   :  { %3363 = vmatpush.bf16.msrb.mxu2 %v6011_v49  ;;  %v5691_v49 = vor.u32 %v7326_v37, %v5690_v36  ;;  %v5819_v57 = vor.u32 %v7358_v42, %v5818_v0  ;;  %v6426_v9 = vld [vmem:[#allocation8 + $0x5c0] sm:$0xf]  ;;  %v7470_v19 = vld [vmem:[#allocation8 + $0x48c] sm:$0xf0]  ;;  %v7336_v31 = vld [vmem:[#allocation8 + $0x64] sm:$0xf] }
 0x10e   :  { %3377 = vmatpush.bf16.msrb.mxu3 %v6139_v51  ;;  %v1731_v48 = vadd.f32 %v1730_v13, %v1717_v41  ;;  %v5946_v51 = vld [vmem:[#allocation8 + $0x200] sm:$0xf]  ;;  %v6427_v22 = vor.u32 %v7510_v15, %v6426_v9  ;;  %v7466_v37 = vld [vmem:[#allocation8 + $0x46c] sm:$0xf0]  ;;  %v5740_v43 = vld [vmem:[#allocation8 + $0x70] sm:$0xf0] }
 0x10f   :  { %3336 = vmatpush.bf16.msrb.mxu0 %v5739_v50  ;;  %v6091_v50 = vor.u32 %v7426_v40, %v6090_v34  ;;  %v5947_v63 = vor.u32 %v7390_v54, %v5946_v51  ;;  %v6266_v20 = vld [vmem:[#allocation8 + $0x480] sm:$0xf]  ;;  %v7502_v13 = vld [vmem:[#allocation8 + $0x58c] sm:$0xf0]  ;;  %v5932_v9 = vld [vmem:[#allocation8 + $0x1f0] sm:$0xf0] }
 0x110   :  { %3350 = vmatpush.bf16.msrb.mxu1 %v5867_v12  ;;  %v7422_v12 = vld [vmem:[#allocation8 + $0x30c] sm:$0xf0]  ;;  %v1966_v62 = vmax.f32 %v1731_v48, 0.0  ;;  %v6267_v26 = vor.u32 %v7470_v19, %v6266_v20  ;;  %v6410_v29 = vld [vmem:[#allocation8 + $0x5a0] sm:$0xf]  ;;  %v5743_v48 = vor.u32 %v7336_v31, %v5740_v43 }
 0x111   :  { %3364 = vmatpush.bf16.msrb.mxu2 %v5995_v6  ;;  %v6075_v1 = vor.u32 %v7422_v12, %v6074_v56  ;;  %v7348_v6 = vld [vmem:[#allocation8 + $0xc4] sm:$0xf]  ;;  %v6250_v36 = vld [vmem:[#allocation8 + $0x460] sm:$0xf]  ;;  %v7462_v44 = vld [vmem:[#allocation8 + $0x44c] sm:$0xf0] }
 0x112   :  { %3378 = vmatpush.bf16.msrb.mxu3 %v6123_v11  ;;  %v8030_v11 = vpack.c.bf16 %v1965_v46, %v1958_v45  ;;  %v8032_v60 = vpack.c.bf16 %v1966_v62, %v1959_v61  ;;  %v5791_v17 = vor.u32 %v7348_v6, %v5788_v21  ;;  %v6251_v40 = vor.u32 %v7466_v37, %v6250_v36  ;;  %v6394_v41 = vld [vmem:[#allocation8 + $0x580] sm:$0xf]  ;;  %v7498_v54 = vld [vmem:[#allocation8 + $0x56c] sm:$0xf0]  ;;  %v5724_v12 = vld [vmem:[#allocation8 + $0x50] sm:$0xf0] }
 0x113   :  { %3337 = vmatpush.bf16.msrb.mxu0 %v5723_v8  ;;  %v6442_v8 = vld [vmem:[#allocation8 + $0x5e0] sm:$0xf]  ;;  %v6395_v45 = vor.u32 %v7502_v13, %v6394_v41  ;;  %v7458_v39 = vld [vmem:[#allocation8 + $0x42c] sm:$0xf0]  ;;  %v7324_v10 = vld [vmem:[#allocation8 + $0x4] sm:$0xf] }
 0x114   :  { %3351 = vmatpush.bf16.msrb.mxu1 %v5851_v52  ;;  %v7474_v52 = vld [vmem:[#allocation8 + $0x4ac] sm:$0xf0]  ;;  %v6443_v14 = vor.u32 %v7514_v16, %v6442_v8  ;;  %v6234_v4 = vld [vmem:[#allocation8 + $0x440] sm:$0xf]  ;;  %v5708_v8 = vld [vmem:[#allocation8 + $0x30] sm:$0xf0] }
 0x115   :  { %3365 = vmatpush.bf16.msrb.mxu2 %v5979_v28  ;;  %v6283_v18 = vor.u32 %v7474_v52, %v6282_v33  ;;  %v7340_v28 = vld [vmem:[#allocation8 + $0x84] sm:$0xf]  ;;  %v6378_v51 = vld [vmem:[#allocation8 + $0x560] sm:$0xf]  ;;  %v7454_v21 = vld [vmem:[#allocation8 + $0x40c] sm:$0xf0] }
 0x116   :  { %3379 = vmatpush.bf16.msrb.mxu3 %v6107_v30  ;;  %v5759_v34 = vor.u32 %v7340_v28, %v5756_v35  ;;  %v6379_v59 = vor.u32 %v7498_v54, %v6378_v51  ;;  %v6202_v16 = vld [vmem:[#allocation8 + $0x400] sm:$0xf]  ;;  %v7490_v19 = vld [vmem:[#allocation8 + $0x52c] sm:$0xf0]  ;;  %v7480_v28 = vld [vmem:[#allocation8 + $0x4e4] sm:$0xf] }
 0x117   :  { %3338 = vmatpush.bf16.msrb.mxu0 %v5707_v24  ;;  %v7506_v24 = vld [vmem:[#allocation8 + $0x5ac] sm:$0xf0]  ;;  %v6203_v27 = vor.u32 %v7454_v21, %v6202_v16  ;;  %v6346_v20 = vld [vmem:[#allocation8 + $0x520] sm:$0xf]  ;;  %v5916_v35 = vld [vmem:[#allocation8 + $0x1d0] sm:$0xf0] }
 0x118   :  { %3352 = vmatpush.bf16.msrb.mxu1 %v5835_v55  ;;  %v6411_v55 = vor.u32 %v7506_v24, %v6410_v29  ;;  %v6347_v29 = vor.u32 %v7490_v19, %v6346_v20  ;;  %v6316_v24 = vld [vmem:[#allocation8 + $0x4f0] sm:$0xf0]  ;;  %v6330_v37 = vld [vmem:[#allocation8 + $0x500] sm:$0xf]  ;;  %v7376_v13 = vld [vmem:[#allocation8 + $0x1a4] sm:$0xf] }
 0x119   :  { %3366 = vmatpush.bf16.msrb.mxu2 %v5963_v47  ;;  %v6319_v31 = vor.u32 %v7480_v28, %v6316_v24  ;;  %v7546_v43 = vld [vmem:[#allocation8 + $0x6ec] sm:$0xf0]  ;;  %v7412_v51 = vld [vmem:[#allocation8 + $0x2c4] sm:$0xf]  ;;  %v5868_v21 = vld [vmem:[#allocation8 + $0x170] sm:$0xf0] }
 0x11a   :  { %3380 = vmatpush.bf16.msrb.mxu3 %v6091_v50  ;;  %v7332_v50 = vld [vmem:[#allocation8 + $0x44] sm:$0xf]  ;;  %v6522_v19 = vld [vmem:[#allocation8 + $0x680] sm:$0xf] }
 0x11b   :  { %3339 = vmatpush.bf16.msrb.mxu0 %v5691_v49  ;;  %v1742_v30 = vpop.f32.mrf.mxu0  ;;  %v6235_v49 = vor.u32 %v7462_v44, %v6234_v4  ;;  %v5727_v53 = vor.u32 %v7332_v50, %v5724_v12  ;;  %v5900_v4 = vld [vmem:[#allocation8 + $0x1b0] sm:$0xf0]  ;;  %v7542_v50 = vld [vmem:[#allocation8 + $0x6cc] sm:$0xf0]  ;;  %v7368_v16 = vld [vmem:[#allocation8 + $0x164] sm:$0xf] }
 0x11c   :  { %3353 = vmatpush.bf16.msrb.mxu1 %v5819_v57  ;;  %v1743_v38 = vadd.f32 %v1742_v30, %v382_v23  ;;  %v1756_v0 = vpop.f32.mrf.mxu1  ;;  %v7380_v30 = vld [vmem:[#allocation8 + $0x1c4] sm:$0xf]  ;;  %v5871_v20 = vor.u32 %v7368_v16, %v5868_v21  ;;  %v6474_v21 = vld [vmem:[#allocation8 + $0x620] sm:$0xf] }
 0x11d   :  { %3367 = vmatpush.bf16.msrb.mxu2 %v5947_v63  ;;  %v5919_v41 = vor.u32 %v7380_v30, %v5916_v35 }
 0x11e   :  { %3340 = vmatmul.bf16.vlgmr.msrb.gmra.mxu0 %v8028_v2  ;;  %3381 = vmatpush.bf16.msrb.mxu3 %v6075_v1  ;;  %v1757_v42 = vadd.f32 %v1756_v0, %v1743_v38  ;;  %v7328_v1 = vld [vmem:[#allocation8 + $0x24] sm:$0xf] }
 0x11f   :  { %3388 = vmatpush.bf16.msra.mxu0 %v6315_v58  ;;  %3354 = vmatmul.bf16.vlgmr.msrb.gmra.mxu1 %v8030_v11  ;;  %v6218_v58 = vld [vmem:[#allocation8 + $0x420] sm:$0xf]  ;;  %v7476_v0 = vld [vmem:[#allocation8 + $0x4c4] sm:$0xf] }
 0x120   :  { %3368 = vmatmul.bf16.vlgmr.msrb.gmra.mxu2 %v8032_v60  ;;  %3402 = vmatpush.bf16.msra.mxu1 %v6443_v14  ;;  %v6219_v63 = vor.u32 %v7458_v39, %v6218_v58  ;;  %v7384_v14 = vld [vmem:[#allocation8 + $0x1e4] sm:$0xf]  ;;  %v6044_v58 = vld [vmem:[#allocation8 + $0x2d0] sm:$0xf0] }
 0x121   :  { %v6284_v39 = vld [vmem:[#allocation8 + $0x4b0] sm:$0xf0] }
 0x122   :  { %3430 = vmatpush.bf16.msra.mxu3 %v5807_v3  ;;  %v6362_v3 = vld [vmem:[#allocation8 + $0x540] sm:$0xf] }
 0x123   :  { %3389 = vmatpush.bf16.msra.mxu0 %v6299_v5  ;;  %v1770_v46 = vpop.f32.mrf.mxu2  ;;  %v1744_v57 = vpop.f32.mrf.mxu0  ;;  %v7494_v5 = vld [vmem:[#allocation8 + $0x54c] sm:$0xf0] }
 0x124   :  { %3403 = vmatpush.bf16.msra.mxu1 %v6427_v22  ;;  %v1784_v47 = vpop.f32.mrf.mxu3  ;;  %v1771_v56 = vadd.f32 %v1770_v46, %v1757_v42  ;;  %v1745_v61 = vadd.f32 %v1744_v57, %v382_v23  ;;  %v1758_v62 = vpop.f32.mrf.mxu1  ;;  %v6363_v33 = vor.u32 %v7494_v5, %v6362_v3  ;;  %v6570_v42 = vld [vmem:[#allocation8 + $0x6e0] sm:$0xf]  ;;  %v7416_v46 = vld [vmem:[#allocation8 + $0x2e4] sm:$0xf] }
 0x125   :  { %v7472_v57 = vld [vmem:[#allocation8 + $0x4a4] sm:$0xf]  ;;  %v6538_v5 = vld [vmem:[#allocation8 + $0x6a0] sm:$0xf] }
 0x126   :  { %3431 = vmatpush.bf16.msra.mxu3 %v5791_v17  ;;  %v1759_v7 = vadd.f32 %v1758_v62, %v1745_v61  ;;  %v1785_v6 = vadd.f32 %v1784_v47, %v1771_v56  ;;  %v6060_v47 = vld [vmem:[#allocation8 + $0x2f0] sm:$0xf0]  ;;  %v5903_v56 = vor.u32 %v7376_v13, %v5900_v4  ;;  %v6047_v62 = vor.u32 %v7412_v51, %v6044_v58  ;;  %v7360_v13 = vld [vmem:[#allocation8 + $0x124] sm:$0xf] }
 0x127   :  { %3390 = vmatpush.bf16.msra.mxu0 %v6283_v18  ;;  %v5711_v18 = vor.u32 %v7328_v1, %v5708_v8  ;;  %v5884_v61 = vld [vmem:[#allocation8 + $0x190] sm:$0xf0]  ;;  %v6287_v1 = vor.u32 %v7472_v57, %v6284_v39  ;;  %v7408_v8 = vld [vmem:[#allocation8 + $0x2a4] sm:$0xf]  ;;  %v6490_v57 = vld [vmem:[#allocation8 + $0x640] sm:$0xf] }
 0x128   :  { %3404 = vmatpush.bf16.msra.mxu1 %v6411_v55  ;;  %v1960_v22 = vmax.f32 %v1785_v6, 0.0  ;;  %v7486_v55 = vld [vmem:[#allocation8 + $0x50c] sm:$0xf0]  ;;  %v5996_v4 = vld [vmem:[#allocation8 + $0x270] sm:$0xf0] }
 0x129   :  { %v6331_v44 = vor.u32 %v7486_v55, %v6330_v37  ;;  %v7538_v6 = vld [vmem:[#allocation8 + $0x6ac] sm:$0xf0]  ;;  %v6236_v37 = vld [vmem:[#allocation8 + $0x450] sm:$0xf0] }
 0x12a   :  { %3432 = vmatpush.bf16.msra.mxu3 %v5775_v25  ;;  %v5692_v25 = vld [vmem:[#allocation8 + $0x10] sm:$0xf0] }
 0x12b   :  { %3391 = vmatpush.bf16.msra.mxu0 %v6267_v26  ;;  %v1772_v52 = vpop.f32.mrf.mxu2  ;;  %v5935_v26 = vor.u32 %v7384_v14, %v5932_v9  ;;  %v5695_v38 = vor.u32 %v7324_v10, %v5692_v25  ;;  %v7364_v25 = vld [vmem:[#allocation8 + $0x144] sm:$0xf]  ;;  %v5820_v39 = vld [vmem:[#allocation8 + $0x110] sm:$0xf0] }
 0x12c   :  { %3405 = vmatpush.bf16.msra.mxu1 %v6395_v45  ;;  %v1773_v15 = vadd.f32 %v1772_v52, %v1759_v7  ;;  %v1786_v17 = vpop.f32.mrf.mxu3  ;;  %v6571_v45 = vor.u32 %v7546_v43, %v6570_v42  ;;  %v383_v7 = vperm.slane %v7995_v32, 4  ;;  %v6028_v52 = vld [vmem:[#allocation8 + $0x2b0] sm:$0xf0] }
 0x12d   :  { %v6031_v9 = vor.u32 %v7408_v8, %v6028_v52  ;;  %v5836_v42 = vld [vmem:[#allocation8 + $0x130] sm:$0xf0]  ;;  %v7392_v52 = vld [vmem:[#allocation8 + $0x224] sm:$0xf] }
 0x12e   :  { %3433 = vmatpush.bf16.msra.mxu3 %v5759_v34  ;;  %v1787_v23 = vadd.f32 %v1786_v17, %v1773_v15  ;;  %v6300_v34 = vld [vmem:[#allocation8 + $0x4d0] sm:$0xf0]  ;;  %3416 = vmatpush.bf16.msra.mxu2 %v6571_v45 }
 0x12f   :  { %3392 = vmatpush.bf16.msra.mxu0 %v6251_v40  ;;  %v6303_v54 = vor.u32 %v7476_v0, %v6300_v34  ;;  %v6506_v34 = vld [vmem:[#allocation8 + $0x660] sm:$0xf] }
 0x130   :  { %3406 = vmatpush.bf16.msra.mxu1 %v6379_v59  ;;  %v1967_v36 = vmax.f32 %v1787_v23, 0.0  ;;  %v7372_v59 = vld [vmem:[#allocation8 + $0x184] sm:$0xf] }
 0x131   :  { %v5887_v3 = vor.u32 %v7372_v59, %v5884_v61  ;;  %v7404_v23 = vld [vmem:[#allocation8 + $0x284] sm:$0xf] }
 0x132   :  { %3434 = vmatpush.bf16.msra.mxu3 %v5743_v48  ;;  %v8038_v40 = vpack.c.bf16 %v1967_v36, %v1960_v22  ;;  %v6063_v48 = vor.u32 %v7416_v46, %v6060_v47  ;;  %v7534_v22 = vld [vmem:[#allocation8 + $0x68c] sm:$0xf0]  ;;  %v7460_v36 = vld [vmem:[#allocation8 + $0x444] sm:$0xf] }
 0x133   :  { %3393 = vmatpush.bf16.msra.mxu0 %v6235_v49  ;;  %v6554_v49 = vld [vmem:[#allocation8 + $0x6c0] sm:$0xf]  ;;  %v6523_v28 = vor.u32 %v7534_v22, %v6522_v19  ;;  %v6239_v51 = vor.u32 %v7460_v36, %v6236_v37  ;;  %v7396_v61 = vld [vmem:[#allocation8 + $0x244] sm:$0xf]  ;;  %v5948_v36 = vld [vmem:[#allocation8 + $0x210] sm:$0xf0] }
 0x134   :  { %3407 = vmatpush.bf16.msra.mxu1 %v6363_v33  ;;  %3382 = vmatmul.bf16.vlgmr.msrb.gmra.mxu3 %v8038_v40  ;;  %v6555_v12 = vor.u32 %v7542_v50, %v6554_v49  ;;  %v6539_v33 = vor.u32 %v7538_v6, %v6538_v5  ;;  %v7456_v49 = vld [vmem:[#allocation8 + $0x424] sm:$0xf]  ;;  %v6220_v50 = vld [vmem:[#allocation8 + $0x430] sm:$0xf0] }
 0x135   :  { %v6223_v8 = vor.u32 %v7456_v49, %v6220_v50  ;;  %v384_v50 = vperm.slane %v7995_v32, 5  ;;  %v7496_v32 = vld [vmem:[#allocation8 + $0x564] sm:$0xf] }
 0x136   :  { %3435 = vmatpush.bf16.msra.mxu3 %v5727_v53  ;;  %v7468_v53 = vld [vmem:[#allocation8 + $0x484] sm:$0xf]  ;;  %3417 = vmatpush.bf16.msra.mxu2 %v6555_v12  ;;  %v7526_v12 = vld [vmem:[#allocation8 + $0x64c] sm:$0xf0] }
 0x137   :  { %3394 = vmatpush.bf16.msra.mxu0 %v6219_v63  ;;  %v6268_v63 = vld [vmem:[#allocation8 + $0x490] sm:$0xf0]  ;;  %v6491_v59 = vor.u32 %v7526_v12, %v6490_v57  ;;  %v7440_v57 = vld [vmem:[#allocation8 + $0x3a4] sm:$0xf] }
 0x138   :  { %3408 = vmatpush.bf16.msra.mxu1 %v6347_v29  ;;  %v6271_v10 = vor.u32 %v7468_v53, %v6268_v63  ;;  %v6012_v29 = vld [vmem:[#allocation8 + $0x290] sm:$0xf0] }
 0x139   :  { %v6015_v30 = vor.u32 %v7404_v23, %v6012_v29  ;;  %v6156_v12 = vld [vmem:[#allocation8 + $0x3b0] sm:$0xf0] }
 0x13a   :  { %3436 = vmatpush.bf16.msra.mxu3 %v5711_v18  ;;  %v7464_v18 = vld [vmem:[#allocation8 + $0x464] sm:$0xf]  ;;  %3418 = vmatpush.bf16.msra.mxu2 %v6539_v33  ;;  %v7522_v33 = vld [vmem:[#allocation8 + $0x62c] sm:$0xf0] }
 0x13b   :  { %3395 = vmatpush.bf16.msra.mxu0 %v6203_v27  ;;  %v1798_v14 = vpop.f32.mrf.mxu0  ;;  %v6252_v27 = vld [vmem:[#allocation8 + $0x470] sm:$0xf0] }
 0x13c   :  { %3409 = vmatpush.bf16.msra.mxu1 %v6331_v44  ;;  %v1799_v15 = vadd.f32 %v1798_v14, %v383_v7  ;;  %v1812_v17 = vpop.f32.mrf.mxu1  ;;  %v7512_v14 = vld [vmem:[#allocation8 + $0x5e4] sm:$0xf] }
 0x13e   :  { %3437 = vmatpush.bf16.msra.mxu3 %v5695_v38  ;;  %v1813_v24 = vadd.f32 %v1812_v17, %v1799_v15  ;;  %3419 = vmatpush.bf16.msra.mxu2 %v6523_v28  ;;  %v6255_v38 = vor.u32 %v7464_v18, %v6252_v27  ;;  %v6475_v15 = vor.u32 %v7522_v33, %v6474_v21  ;;  %v5964_v17 = vld [vmem:[#allocation8 + $0x230] sm:$0xf0] }
 0x13f   :  { %3444 = vmatpush.bf16.msrb.mxu0 %v5935_v26  ;;  %v5852_v26 = vld [vmem:[#allocation8 + $0x150] sm:$0xf0]  ;;  %v5967_v19 = vor.u32 %v7392_v52, %v5964_v17  ;;  %v7432_v17 = vld [vmem:[#allocation8 + $0x364] sm:$0xf] }
 0x140   :  { %3458 = vmatpush.bf16.msrb.mxu1 %v6063_v48  ;;  %v5855_v0 = vor.u32 %v7364_v25, %v5852_v26  ;;  %v6458_v25 = vld [vmem:[#allocation8 + $0x600] sm:$0xf]  ;;  %v7518_v26 = vld [vmem:[#allocation8 + $0x60c] sm:$0xf0] }
 0x142   :  { %3486 = vmatpush.bf16.msrb.mxu3 %v6319_v31  ;;  %v7530_v31 = vld [vmem:[#allocation8 + $0x66c] sm:$0xf0] }
 0x143   :  { %3445 = vmatpush.bf16.msrb.mxu0 %v5919_v41  ;;  %v1826_v35 = vpop.f32.mrf.mxu2  ;;  %v7400_v41 = vld [vmem:[#allocation8 + $0x264] sm:$0xf]  ;;  %v6507_v43 = vor.u32 %v7530_v31, %v6506_v34  ;;  %v1800_v45 = vpop.f32.mrf.mxu0 }
 0x144   :  { %3459 = vmatpush.bf16.msrb.mxu1 %v6047_v62  ;;  %v1840_v55 = vpop.f32.mrf.mxu3  ;;  %v1827_v44 = vadd.f32 %v1826_v35, %v1813_v24  ;;  %3438 = vmatmul.bf16.vlgmr.msra.gmra.mxu3 %v8028_v2  ;;  %v5999_v46 = vor.u32 %v7400_v41, %v5996_v4  ;;  %v1801_v47 = vadd.f32 %v1800_v45, %v383_v7  ;;  %v1814_v48 = vpop.f32.mrf.mxu1  ;;  %v5980_v62 = vld [vmem:[#allocation8 + $0x250] sm:$0xf0]  ;;  %v7508_v24 = vld [vmem:[#allocation8 + $0x5c4] sm:$0xf] }
 0x145   :  { %3420 = vmatpush.bf16.msra.mxu2 %v6507_v43  ;;  %v5983_v63 = vor.u32 %v7396_v61, %v5980_v62  ;;  %v7388_v35 = vld [vmem:[#allocation8 + $0x204] sm:$0xf]  ;;  %v6188_v41 = vld [vmem:[#allocation8 + $0x3f0] sm:$0xf0]  ;;  %v6159_v61 = vor.u32 %v7440_v57, %v6156_v12  ;;  %v6066_v57 = vld [vmem:[#allocation8 + $0x2e8] sm:$0xf] }
 0x146   :  { %3487 = vmatpush.bf16.msrb.mxu3 %v6303_v54  ;;  %v5839_v54 = vor.u32 %v7360_v13, %v5836_v42  ;;  %v1815_v58 = vadd.f32 %v1814_v48, %v1801_v47  ;;  %v1841_v53 = vadd.f32 %v1840_v55, %v1827_v44  ;;  %v6428_v55 = vld [vmem:[#allocation8 + $0x5d0] sm:$0xf0]  ;;  %v5951_v34 = vor.u32 %v7388_v35, %v5948_v36  ;;  %v7448_v31 = vld [vmem:[#allocation8 + $0x3e4] sm:$0xf]  ;;  %v7379_v47 = vld [vmem:[#allocation8 + $0x1b4] sm:$0xf0] }
 0x147   :  { %3446 = vmatpush.bf16.msrb.mxu0 %v5903_v56  ;;  %v7356_v56 = vld [vmem:[#allocation8 + $0x104] sm:$0xf]  ;;  %v6191_v13 = vor.u32 %v7448_v31, %v6188_v41  ;;  %v6431_v42 = vor.u32 %v7508_v24, %v6428_v55  ;;  %v6412_v44 = vld [vmem:[#allocation8 + $0x5b0] sm:$0xf0]  ;;  %v7419_v12 = vld [vmem:[#allocation8 + $0x2f4] sm:$0xf0] }
 0x148   :  { %3460 = vmatpush.bf16.msrb.mxu1 %v6031_v9  ;;  %v5823_v16 = vor.u32 %v7356_v56, %v5820_v39  ;;  %v6444_v9 = vld [vmem:[#allocation8 + $0x5f0] sm:$0xf0]  ;;  %v1961_v18 = vmax.f32 %v1841_v53, 0.0  ;;  %v7504_v4 = vld [vmem:[#allocation8 + $0x5a4] sm:$0xf] }
 0x149   :  { %3421 = vmatpush.bf16.msra.mxu2 %v6491_v59  ;;  %v6447_v28 = vor.u32 %v7512_v14, %v6444_v9  ;;  %v7444_v45 = vld [vmem:[#allocation8 + $0x3c4] sm:$0xf]  ;;  %v6172_v48 = vld [vmem:[#allocation8 + $0x3d0] sm:$0xf0]  ;;  %v5890_v39 = vld [vmem:[#allocation8 + $0x188] sm:$0xf] }
 0x14a   :  { %3488 = vmatpush.bf16.msrb.mxu3 %v6287_v1  ;;  %v7452_v1 = vld [vmem:[#allocation8 + $0x404] sm:$0xf]  ;;  %v6175_v49 = vor.u32 %v7444_v45, %v6172_v48  ;;  %v7375_v59 = vld [vmem:[#allocation8 + $0x194] sm:$0xf0]  ;;  %v6108_v36 = vld [vmem:[#allocation8 + $0x350] sm:$0xf0] }
 0x14b   :  { %3447 = vmatpush.bf16.msrb.mxu0 %v5887_v3  ;;  %v1828_v7 = vpop.f32.mrf.mxu2  ;;  %v6204_v3 = vld [vmem:[#allocation8 + $0x410] sm:$0xf0]  ;;  %v7500_v56 = vld [vmem:[#allocation8 + $0x584] sm:$0xf] }
 0x14c   :  { %3461 = vmatpush.bf16.msrb.mxu1 %v6015_v30  ;;  %v1829_v5 = vadd.f32 %v1828_v7, %v1815_v58  ;;  %v1842_v6 = vpop.f32.mrf.mxu3  ;;  %v6207_v23 = vor.u32 %v7452_v1, %v6204_v3  ;;  %v6459_v30 = vor.u32 %v7518_v26, %v6458_v25  ;;  %v6396_v58 = vld [vmem:[#allocation8 + $0x590] sm:$0xf0]  ;;  %v5891_v1 = vor.u32 %v7375_v59, %v5890_v39  ;;  %v7436_v3 = vld [vmem:[#allocation8 + $0x384] sm:$0xf]  ;;  %v6450_v59 = vld [vmem:[#allocation8 + $0x5e8] sm:$0xf] }
 0x14d   :  { %3422 = vmatpush.bf16.msra.mxu2 %v6475_v15  ;;  %v6399_v7 = vor.u32 %v7500_v56, %v6396_v58  ;;  %v7492_v15 = vld [vmem:[#allocation8 + $0x544] sm:$0xf]  ;;  %v6348_v55 = vld [vmem:[#allocation8 + $0x530] sm:$0xf0] }
 0x14e   :  { %3489 = vmatpush.bf16.msrb.mxu3 %v6271_v10  ;;  %v1843_v27 = vadd.f32 %v1842_v6, %v1829_v5  ;;  %v5938_v10 = vld [vmem:[#allocation8 + $0x1e8] sm:$0xf]  ;;  %v6140_v5 = vld [vmem:[#allocation8 + $0x390] sm:$0xf0]  ;;  %v7428_v35 = vld [vmem:[#allocation8 + $0x344] sm:$0xf] }
 0x14f   :  { %3448 = vmatpush.bf16.msrb.mxu0 %v5871_v20  ;;  %v7387_v20 = vld [vmem:[#allocation8 + $0x1f4] sm:$0xf0]  ;;  %v6380_v6 = vld [vmem:[#allocation8 + $0x570] sm:$0xf0]  ;;  %v6143_v21 = vor.u32 %v7436_v3, %v6140_v5  ;;  %v7424_v45 = vld [vmem:[#allocation8 + $0x324] sm:$0xf] }
 0x150   :  { %3462 = vmatpush.bf16.msrb.mxu1 %v5999_v46  ;;  %v1968_v22 = vmax.f32 %v1843_v27, 0.0  ;;  %v5939_v29 = vor.u32 %v7387_v20, %v5938_v10  ;;  %v5906_v46 = vld [vmem:[#allocation8 + $0x1a8] sm:$0xf]  ;;  %v6383_v14 = vor.u32 %v7496_v32, %v6380_v6  ;;  %v6364_v10 = vld [vmem:[#allocation8 + $0x550] sm:$0xf0] }
 0x151   :  { %3423 = vmatpush.bf16.msra.mxu2 %v6459_v30  ;;  %v5858_v20 = vld [vmem:[#allocation8 + $0x148] sm:$0xf]  ;;  %v7488_v30 = vld [vmem:[#allocation8 + $0x524] sm:$0xf]  ;;  %v6572_v56 = vld [vmem:[#allocation8 + $0x6f0] sm:$0xf0] }
 0x152   :  { %3490 = vmatpush.bf16.msrb.mxu3 %v6255_v38  ;;  %v8043_v37 = vpack.c.bf16 %v1968_v22, %v1961_v18  ;;  %v5922_v38 = vld [vmem:[#allocation8 + $0x1c8] sm:$0xf]  ;;  %v6124_v18 = vld [vmem:[#allocation8 + $0x370] sm:$0xf0]  ;;  %v7540_v6 = vld [vmem:[#allocation8 + $0x6c4] sm:$0xf] }
 0x153   :  { %3449 = vmatpush.bf16.msrb.mxu0 %v5855_v0  ;;  %v7383_v0 = vld [vmem:[#allocation8 + $0x1d4] sm:$0xf0]  ;;  %v6127_v22 = vor.u32 %v7432_v17, %v6124_v18  ;;  %v6076_v32 = vld [vmem:[#allocation8 + $0x310] sm:$0xf0] }
 0x154   :  { %3463 = vmatpush.bf16.msrb.mxu1 %v5983_v63  ;;  %3396 = vmatmul.bf16.vlgmr.msra.gmra.mxu0 %v8043_v37  ;;  %v5923_v43 = vor.u32 %v7383_v0, %v5922_v38  ;;  %v5842_v38 = vld [vmem:[#allocation8 + $0x128] sm:$0xf]  ;;  %v7363_v0 = vld [vmem:[#allocation8 + $0x134] sm:$0xf0] }
 0x155   :  { %3472 = vmatpush.bf16.msrb.mxu2 %v6191_v13  ;;  %v7484_v13 = vld [vmem:[#allocation8 + $0x504] sm:$0xf] }
 0x156   :  { %3491 = vmatpush.bf16.msrb.mxu3 %v6239_v51  ;;  %v6415_v51 = vor.u32 %v7504_v4, %v6412_v44  ;;  %v5843_v4 = vor.u32 %v7363_v0, %v5842_v38  ;;  %v6332_v44 = vld [vmem:[#allocation8 + $0x510] sm:$0xf0]  ;;  %v6402_v0 = vld [vmem:[#allocation8 + $0x588] sm:$0xf] }
 0x157   :  { %3450 = vmatpush.bf16.msrb.mxu0 %v5839_v54  ;;  %v5907_v54 = vor.u32 %v7379_v47, %v5906_v46  ;;  %v6092_v46 = vld [vmem:[#allocation8 + $0x330] sm:$0xf0] }
 0x158   :  { %3464 = vmatpush.bf16.msrb.mxu1 %v5967_v19  ;;  %v7367_v19 = vld [vmem:[#allocation8 + $0x154] sm:$0xf0]  ;;  %v6524_v38 = vld [vmem:[#allocation8 + $0x690] sm:$0xf0] }
 0x159   :  { %3473 = vmatpush.bf16.msrb.mxu2 %v6175_v49  ;;  %v5859_v24 = vor.u32 %v7367_v19, %v5858_v20  ;;  %v5826_v49 = vld [vmem:[#allocation8 + $0x108] sm:$0xf]  ;;  %v7411_v20 = vld [vmem:[#allocation8 + $0x2b4] sm:$0xf0]  ;;  %v6540_v19 = vld [vmem:[#allocation8 + $0x6b0] sm:$0xf0] }
 0x15a   :  { %3492 = vmatpush.bf16.msrb.mxu3 %v6223_v8  ;;  %v5874_v8 = vld [vmem:[#allocation8 + $0x168] sm:$0xf] }
 0x15b   :  { %3451 = vmatpush.bf16.msrb.mxu0 %v5823_v16  ;;  %v1854_v62 = vpop.f32.mrf.mxu0  ;;  %v7371_v16 = vld [vmem:[#allocation8 + $0x174] sm:$0xf0] }
 0x15c   :  { %3465 = vmatpush.bf16.msrb.mxu1 %v5951_v34  ;;  %v1855_v53 = vadd.f32 %v1854_v62, %v384_v50  ;;  %v1868_v63 = vpop.f32.mrf.mxu1  ;;  %v5875_v9 = vor.u32 %v7371_v16, %v5874_v8  ;;  %v6111_v34 = vor.u32 %v7428_v35, %v6108_v36  ;;  %v6335_v62 = vor.u32 %v7484_v13, %v6332_v44  ;;  %v6050_v8 = vld [vmem:[#allocation8 + $0x2c8] sm:$0xf]  ;;  %v7415_v16 = vld [vmem:[#allocation8 + $0x2d4] sm:$0xf0] }
 0x15d   :  { %3474 = vmatpush.bf16.msrb.mxu2 %v6159_v61  ;;  %v7515_v61 = vld [vmem:[#allocation8 + $0x5f4] sm:$0xf0]  ;;  %v6018_v35 = vld [vmem:[#allocation8 + $0x288] sm:$0xf] }
 0x15e   :  { %3493 = vmatpush.bf16.msrb.mxu3 %v6207_v23  ;;  %v1869_v33 = vadd.f32 %v1868_v63, %v1855_v53  ;;  %v6451_v5 = vor.u32 %v7515_v61, %v6450_v59  ;;  %v7407_v36 = vld [vmem:[#allocation8 + $0x294] sm:$0xf0]  ;;  %v6492_v61 = vld [vmem:[#allocation8 + $0x650] sm:$0xf0] }
 0x15f   :  { %3500 = vmatpush.bf16.msra.mxu0 %v6447_v28  ;;  %v7403_v44 = vld [vmem:[#allocation8 + $0x274] sm:$0xf0] }
 0x161   :  { %3494 = vmatmul.bf16.vlgmr.msrb.gmra.mxu3 %v8043_v37  ;;  %3475 = vmatpush.bf16.msrb.mxu2 %v6143_v21 }
 0x162   :  { %3542 = vmatpush.bf16.msra.mxu3 %v5939_v29  ;;  %v6367_v29 = vor.u32 %v7492_v15, %v6364_v10  ;;  %v6051_v15 = vor.u32 %v7415_v16, %v6050_v8  ;;  %v6034_v10 = vld [vmem:[#allocation8 + $0x2a8] sm:$0xf]  ;;  %v6476_v16 = vld [vmem:[#allocation8 + $0x630] sm:$0xf0] }
 0x163   :  { %3501 = vmatpush.bf16.msra.mxu0 %v6431_v42  ;;  %v1882_v52 = vpop.f32.mrf.mxu2  ;;  %v1856_v25 = vpop.f32.mrf.mxu0 }
 0x164   :  { %v1896_v27 = vpop.f32.mrf.mxu3  ;;  %v1883_v23 = vadd.f32 %v1882_v52, %v1869_v33  ;;  %3452 = vmatmul.bf16.vlgmr.msrb.gmra.mxu0 %v8030_v11  ;;  %v1857_v26 = vadd.f32 %v1856_v25, %v384_v50  ;;  %v1870_v28 = vpop.f32.mrf.mxu1  ;;  %v7359_v50 = vld [vmem:[#allocation8 + $0x114] sm:$0xf0]  ;;  %v6556_v33 = vld [vmem:[#allocation8 + $0x6d0] sm:$0xf0]  ;;  %v6434_v52 = vld [vmem:[#allocation8 + $0x5c8] sm:$0xf] }
 0x165   :  { %3476 = vmatpush.bf16.msrb.mxu2 %v6127_v22  ;;  %v5827_v53 = vor.u32 %v7359_v50, %v5826_v49  ;;  %v6559_v17 = vor.u32 %v7540_v6, %v6556_v33  ;;  %v6418_v22 = vld [vmem:[#allocation8 + $0x5a8] sm:$0xf]  ;;  %v7689_v25 = vld [vmem:[#allocation7] sm:$0xff] }
 0x166   :  { %3543 = vmatpush.bf16.msra.mxu3 %v5923_v43  ;;  %v1871_v31 = vadd.f32 %v1870_v28, %v1857_v26  ;;  %v1897_v41 = vadd.f32 %v1896_v27, %v1883_v23  ;;  %v6351_v43 = vor.u32 %v7488_v30, %v6348_v55  ;;  %v7536_v27 = vld [vmem:[#allocation8 + $0x6a4] sm:$0xf]  ;;  %v7507_v23 = vld [vmem:[#allocation8 + $0x5b4] sm:$0xf0]  ;;  %v385_v26 = vperm.slane %v7689_v25, 6 }
 0x167   :  { %3502 = vmatpush.bf16.msra.mxu0 %v6415_v51  ;;  %v7544_v51 = vld [vmem:[#allocation8 + $0x6e4] sm:$0xf]  ;;  %v6035_v28 = vor.u32 %v7411_v20, %v6034_v10  ;;  %v7395_v6 = vld [vmem:[#allocation8 + $0x234] sm:$0xf0]  ;;  %v6354_v33 = vld [vmem:[#allocation8 + $0x528] sm:$0xf] }
 0x168   :  { %v1962_v58 = vmax.f32 %v1897_v41, 0.0  ;;  %v6575_v3 = vor.u32 %v7544_v51, %v6572_v56  ;;  %v7532_v30 = vld [vmem:[#allocation8 + $0x684] sm:$0xf]  ;;  %v5954_v20 = vld [vmem:[#allocation8 + $0x208] sm:$0xf] }
 0x169   :  { %3477 = vmatpush.bf16.msrb.mxu2 %v6111_v34  ;;  %v7503_v34 = vld [vmem:[#allocation8 + $0x594] sm:$0xf0]  ;;  %v6527_v13 = vor.u32 %v7532_v30, %v6524_v38  ;;  %v7524_v56 = vld [vmem:[#allocation8 + $0x644] sm:$0xf]  ;;  %v6460_v25 = vld [vmem:[#allocation8 + $0x610] sm:$0xf0] }
 0x16a   :  { %3544 = vmatpush.bf16.msra.mxu3 %v5907_v54  ;;  %v6095_v54 = vor.u32 %v7424_v45, %v6092_v46  ;;  %v6508_v46 = vld [vmem:[#allocation8 + $0x670] sm:$0xf0]  ;;  %v7516_v10 = vld [vmem:[#allocation8 + $0x604] sm:$0xf]  ;;  %v6194_v30 = vld [vmem:[#allocation8 + $0x3e8] sm:$0xf] }
 0x16b   :  { %3503 = vmatpush.bf16.msra.mxu0 %v6399_v7  ;;  %v1884_v42 = vpop.f32.mrf.mxu2  ;;  %v6067_v7 = vor.u32 %v7419_v12, %v6066_v57  ;;  %v5986_v57 = vld [vmem:[#allocation8 + $0x248] sm:$0xf]  ;;  %v7399_v12 = vld [vmem:[#allocation8 + $0x254] sm:$0xf0] }
 0x16c   :  { %v1885_v47 = vadd.f32 %v1884_v42, %v1871_v31  ;;  %v1898_v48 = vpop.f32.mrf.mxu3  ;;  %v6019_v31 = vor.u32 %v7407_v36, %v6018_v35  ;;  %v6403_v42 = vor.u32 %v7503_v34, %v6402_v0  ;;  %v7451_v35 = vld [vmem:[#allocation8 + $0x3f4] sm:$0xf0]  ;;  %v6578_v0 = vld [vmem:[#allocation8 + $0x6e8] sm:$0xf] }
 0x16d   :  { %3478 = vmatpush.bf16.msrb.mxu2 %v6095_v54  ;;  %v7355_v38 = vld [vmem:[#allocation8 + $0xf4] sm:$0xf0] }
 0x16e   :  { %3545 = vmatpush.bf16.msra.mxu3 %v5891_v1  ;;  %v1899_v39 = vadd.f32 %v1898_v48, %v1885_v47  ;;  %v7420_v1 = vld [vmem:[#allocation8 + $0x304] sm:$0xf]  ;;  %v6386_v47 = vld [vmem:[#allocation8 + $0x568] sm:$0xf]  ;;  %v7499_v48 = vld [vmem:[#allocation8 + $0x574] sm:$0xf0] }
 0x16f   :  { %3504 = vmatpush.bf16.msra.mxu0 %v6383_v14  ;;  %v7511_v14 = vld [vmem:[#allocation8 + $0x5d4] sm:$0xf0]  ;;  %v6387_v54 = vor.u32 %v7499_v48, %v6386_v47  ;;  %v5794_v47 = vld [vmem:[#allocation8 + $0xc8] sm:$0xf] }
 0x170   :  { %v1969_v63 = vmax.f32 %v1899_v39, 0.0  ;;  %v6435_v18 = vor.u32 %v7511_v14, %v6434_v52  ;;  %v7491_v52 = vld [vmem:[#allocation8 + $0x534] sm:$0xf0]  ;;  %v6178_v48 = vld [vmem:[#allocation8 + $0x3c8] sm:$0xf] }
 0x171   :  { %v7547_v34 = vld [vmem:[#allocation8 + $0x6f4] sm:$0xf0] }
 0x172   :  { %3546 = vmatpush.bf16.msra.mxu3 %v5875_v9  ;;  %v8049_v21 = vpack.c.bf16 %v1969_v63, %v1962_v58  ;;  %v6079_v9 = vor.u32 %v7420_v1, %v6076_v32  ;;  %v6495_v1 = vor.u32 %v7524_v56, %v6492_v61  ;;  %v6562_v56 = vld [vmem:[#allocation8 + $0x6c8] sm:$0xf] }
 0x173   :  { %3505 = vmatpush.bf16.msra.mxu0 %v6367_v29  ;;  %v6543_v29 = vor.u32 %v7536_v27, %v6540_v19  ;;  %v6355_v27 = vor.u32 %v7491_v52, %v6354_v33  ;;  %v7391_v19 = vld [vmem:[#allocation8 + $0x214] sm:$0xf0]  ;;  %v5762_v52 = vld [vmem:[#allocation8 + $0x88] sm:$0xf] }
 0x174   :  { %3410 = vmatmul.bf16.vlgmr.msra.gmra.mxu1 %v8049_v21  ;;  %3479 = vmatpush.bf16.msrb.mxu2 %v6079_v9 }
 0x175   :  { %3514 = vmatpush.bf16.msra.mxu1 %v6575_v3  ;;  %v7520_v3 = vld [vmem:[#allocation8 + $0x624] sm:$0xf] }
 0x176   :  { %3547 = vmatpush.bf16.msra.mxu3 %v5859_v24  ;;  %v6419_v24 = vor.u32 %v7507_v23, %v6418_v22 }
 0x177   :  { %3506 = vmatpush.bf16.msra.mxu0 %v6351_v43  ;;  %v7528_v43 = vld [vmem:[#allocation8 + $0x664] sm:$0xf] }
 0x178   :  { %v6511_v51 = vor.u32 %v7528_v43, %v6508_v46  ;;  %v6579_v46 = vor.u32 %v7547_v34, %v6578_v0 }
 0x179   :  { %3515 = vmatpush.bf16.msra.mxu1 %v6559_v17 }
 0x17a   :  { %3548 = vmatpush.bf16.msra.mxu3 %v5843_v4  ;;  %v6002_v4 = vld [vmem:[#allocation8 + $0x268] sm:$0xf] }
 0x17b   :  { %3507 = vmatpush.bf16.msra.mxu0 %v6335_v62  ;;  %v1910_v55 = vpop.f32.mrf.mxu0  ;;  %v6003_v49 = vor.u32 %v7403_v44, %v6002_v4  ;;  %v6370_v62 = vld [vmem:[#allocation8 + $0x548] sm:$0xf]  ;;  %v6195_v44 = vor.u32 %v7451_v35, %v6194_v30  ;;  %v7531_v35 = vld [vmem:[#allocation8 + $0x674] sm:$0xf0] }
 0x17c   :  { %v1924_v41 = vpop.f32.mrf.mxu1  ;;  %v1911_v45 = vadd.f32 %v1910_v55, %v385_v26  ;;  %v5955_v55 = vor.u32 %v7391_v19, %v5954_v20  ;;  %v6020_v20 = vld [vmem:[#allocation8 + $0x298] sm:$0xf0]  ;;  %v6514_v30 = vld [vmem:[#allocation8 + $0x668] sm:$0xf] }
 0x17d   :  { %3516 = vmatpush.bf16.msra.mxu1 %v6543_v29  ;;  %v6515_v34 = vor.u32 %v7531_v35, %v6514_v30  ;;  %v7349_v35 = vld [vmem:[#allocation8 + $0xcc] sm:$0xf] }
 0x17e   :  { %3549 = vmatpush.bf16.msra.mxu3 %v5827_v53  ;;  %3508 = vmatmul.bf16.vlgmr.msra.gmra.mxu0 %v8049_v21  ;;  %v1925_v58 = vadd.f32 %v1924_v41, %v1911_v45  ;;  %v7495_v53 = vld [vmem:[#allocation8 + $0x554] sm:$0xf0] }
 0x17f   :  { %3556 = vmatpush.bf16.msrb.mxu0 %v6067_v7  ;;  %v5987_v7 = vor.u32 %v7399_v12, %v5986_v57  ;;  %v6371_v32 = vor.u32 %v7495_v53, %v6370_v62  ;;  %v7543_v57 = vld [vmem:[#allocation8 + $0x6d4] sm:$0xf0]  ;;  %v7413_v12 = vld [vmem:[#allocation8 + $0x2cc] sm:$0xf]  ;;  %v5778_v62 = vld [vmem:[#allocation8 + $0xa8] sm:$0xf] }
 0x180   :  { %v6563_v61 = vor.u32 %v7543_v57, %v6562_v56  ;;  %v6162_v53 = vld [vmem:[#allocation8 + $0x3a8] sm:$0xf]  ;;  %v7427_v56 = vld [vmem:[#allocation8 + $0x334] sm:$0xf0] }
 0x181   :  { %3550 = vmatmul.bf16.vlgmr.msra.gmra.mxu3 %v8030_v11  ;;  %3517 = vmatpush.bf16.msra.mxu1 %v6527_v13  ;;  %v7417_v13 = vld [vmem:[#allocation8 + $0x2ec] sm:$0xf] }
 0x182   :  { %3598 = vmatpush.bf16.msrb.mxu3 %v6451_v5  ;;  %v5970_v5 = vld [vmem:[#allocation8 + $0x228] sm:$0xf] }
 0x183   :  { %3557 = vmatpush.bf16.msrb.mxu0 %v6051_v15  ;;  %v1938_v50 = vpop.f32.mrf.mxu2  ;;  %v1912_v59 = vpop.f32.mrf.mxu0  ;;  %v5971_v15 = vor.u32 %v7395_v6, %v5970_v5  ;;  %v7409_v5 = vld [vmem:[#allocation8 + $0x2ac] sm:$0xf]  ;;  %v6036_v6 = vld [vmem:[#allocation8 + $0x2b8] sm:$0xf0] }
 0x184   :  { %v1952_v39 = vpop.f32.mrf.mxu3  ;;  %v1913_v63 = vadd.f32 %v1912_v59, %v385_v26  ;;  %3466 = vmatmul.bf16.vlgmr.msrb.gmra.mxu1 %v8032_v60  ;;  %v1939_v8 = vadd.f32 %v1938_v50, %v1925_v58  ;;  %v1926_v14 = vpop.f32.mrf.mxu1  ;;  %v6338_v26 = vld [vmem:[#allocation8 + $0x508] sm:$0xf]  ;;  %v6052_v58 = vld [vmem:[#allocation8 + $0x2d8] sm:$0xf0] }
 0x185   :  { %3518 = vmatpush.bf16.msra.mxu1 %v6511_v51 }
 0x186   :  { %3599 = vmatpush.bf16.msrb.mxu3 %v6435_v18  ;;  %v1927_v9 = vadd.f32 %v1926_v14, %v1913_v63  ;;  %v6479_v18 = vor.u32 %v7520_v3, %v6476_v16  ;;  %v1953_v22 = vadd.f32 %v1952_v39, %v1939_v8  ;;  %v7443_v63 = vld [vmem:[#allocation8 + $0x3b4] sm:$0xf0]  ;;  %v6146_v14 = vld [vmem:[#allocation8 + $0x388] sm:$0xf] }
 0x187   :  { %3558 = vmatpush.bf16.msrb.mxu0 %v6035_v28  ;;  %v7487_v28 = vld [vmem:[#allocation8 + $0x514] sm:$0xf0]  ;;  %v6163_v8 = vor.u32 %v7443_v63, %v6162_v53  ;;  %v5698_v53 = vld [vmem:[#allocation8 + $0x8] sm:$0xf] }
 0x188   :  { %v6339_v41 = vor.u32 %v7487_v28, %v6338_v26  ;;  %v1963_v43 = vmax.f32 %v1953_v22, 0.0  ;;  %v7539_v3 = vld [vmem:[#allocation8 + $0x6b4] sm:$0xf0]  ;;  %v6130_v26 = vld [vmem:[#allocation8 + $0x368] sm:$0xf] }
 0x189   :  { %3519 = vmatpush.bf16.msra.mxu1 %v6495_v1  ;;  %v7347_v1 = vld [vmem:[#allocation8 + $0xb4] sm:$0xf0] }
 0x18a   :  { %3600 = vmatpush.bf16.msrb.mxu3 %v6419_v24  ;;  %v5810_v24 = vld [vmem:[#allocation8 + $0xe8] sm:$0xf]  ;;  %v5779_v16 = vor.u32 %v7347_v1, %v5778_v62  ;;  %v7435_v28 = vld [vmem:[#allocation8 + $0x374] sm:$0xf0] }
 0x18b   :  { %3559 = vmatpush.bf16.msrb.mxu0 %v6019_v31  ;;  %v1940_v17 = vpop.f32.mrf.mxu2  ;;  %v6463_v31 = vor.u32 %v7516_v10, %v6460_v25  ;;  %v5811_v45 = vor.u32 %v7355_v38, %v5810_v24  ;;  %v7405_v10 = vld [vmem:[#allocation8 + $0x28c] sm:$0xf]  ;;  %v5746_v25 = vld [vmem:[#allocation8 + $0x68] sm:$0xf]  ;;  %v7339_v24 = vld [vmem:[#allocation8 + $0x74] sm:$0xf0]  ;;  %v6131_v38 = vor.u32 %v7435_v28, %v6130_v26 }
 0x18c   :  { %v1941_v23 = vadd.f32 %v1940_v17, %v1927_v9  ;;  %v1954_v29 = vpop.f32.mrf.mxu3  ;;  %v7439_v9 = vld [vmem:[#allocation8 + $0x394] sm:$0xf0]  ;;  %v5747_v0 = vor.u32 %v7339_v24, %v5746_v25 }
 0x18d   :  { %3520 = vmatpush.bf16.msra.mxu1 %v6479_v18  ;;  %v7343_v17 = vld [vmem:[#allocation8 + $0x94] sm:$0xf0]  ;;  %v6530_v18 = vld [vmem:[#allocation8 + $0x688] sm:$0xf]  ;;  %v6147_v19 = vor.u32 %v7439_v9, %v6146_v14  ;;  %v7353_v9 = vld [vmem:[#allocation8 + $0xec] sm:$0xf] }
 0x18e   :  { %3601 = vmatpush.bf16.msrb.mxu3 %v6403_v42  ;;  %v1955_v36 = vadd.f32 %v1954_v29, %v1941_v23  ;;  %v6068_v42 = vld [vmem:[#allocation8 + $0x2f8] sm:$0xf0]  ;;  %v5763_v22 = vor.u32 %v7343_v17, %v5762_v52  ;;  %v6023_v29 = vor.u32 %v7405_v10, %v6020_v20  ;;  %v7327_v63 = vld [vmem:[#allocation8 + $0x14] sm:$0xf0]  ;;  %v6322_v52 = vld [vmem:[#allocation8 + $0x4e8] sm:$0xf] }
 0x18f   :  { %3560 = vmatpush.bf16.msrb.mxu0 %v6003_v49  ;;  %v7447_v49 = vld [vmem:[#allocation8 + $0x3d4] sm:$0xf0]  ;;  %v6071_v51 = vor.u32 %v7417_v13, %v6068_v42  ;;  %v5812_v17 = vld [vmem:[#allocation8 + $0xf8] sm:$0xf0]  ;;  %v5699_v10 = vor.u32 %v7327_v63, %v5698_v53 }
 0x190   :  { %v1970_v4 = vmax.f32 %v1955_v36, 0.0  ;;  %v6179_v39 = vor.u32 %v7447_v49, %v6178_v48  ;;  %v7401_v36 = vld [vmem:[#allocation8 + $0x26c] sm:$0xf]  ;;  %v7431_v13 = vld [vmem:[#allocation8 + $0x354] sm:$0xf0]  ;;  %v5815_v26 = vor.u32 %v7353_v9, %v5812_v17 }
 0x191   :  { %3521 = vmatpush.bf16.msra.mxu1 %v6463_v31  ;;  %v5730_v31 = vld [vmem:[#allocation8 + $0x48] sm:$0xf]  ;;  %v7483_v14 = vld [vmem:[#allocation8 + $0x4f4] sm:$0xf0]  ;;  %v6532_v53 = vld [vmem:[#allocation8 + $0x698] sm:$0xf0] }
 0x192   :  { %3602 = vmatpush.bf16.msrb.mxu3 %v6387_v54  ;;  %v8055_v50 = vpack.c.bf16 %v1970_v4, %v1963_v43  ;;  %v7351_v54 = vld [vmem:[#allocation8 + $0xd4] sm:$0xf0]  ;;  %v6498_v4 = vld [vmem:[#allocation8 + $0x648] sm:$0xf]  ;;  %v6323_v25 = vor.u32 %v7483_v14, %v6322_v52  ;;  %v7529_v52 = vld [vmem:[#allocation8 + $0x66c] sm:$0xf] }
 0x193   :  { %3561 = vmatpush.bf16.msrb.mxu0 %v5987_v7  ;;  %v5795_v59 = vor.u32 %v7351_v54, %v5794_v47  ;;  %v6055_v7 = vor.u32 %v7413_v12, %v6052_v58  ;;  %v7335_v43 = vld [vmem:[#allocation8 + $0x54] sm:$0xf0]  ;;  %v6098_v54 = vld [vmem:[#allocation8 + $0x328] sm:$0xf]  ;;  %v6516_v14 = vld [vmem:[#allocation8 + $0x678] sm:$0xf0] }
 0x194   :  { %3424 = vmatmul.bf16.vlgmr.msra.gmra.mxu2 %v8055_v50  ;;  %3522 = vmatmul.bf16.vlgmr.msra.gmra.mxu1 %v8055_v50  ;;  %v5731_v48 = vor.u32 %v7335_v43, %v5730_v31  ;;  %v7331_v12 = vld [vmem:[#allocation8 + $0x34] sm:$0xf0]  ;;  %v6482_v58 = vld [vmem:[#allocation8 + $0x628] sm:$0xf]  ;;  %v6099_v62 = vor.u32 %v7427_v56, %v6098_v54 }
 0x195   :  { %3570 = vmatpush.bf16.msrb.mxu1 %v6195_v44  ;;  %3528 = vmatpush.bf16.msra.mxu2 %v5811_v45  ;;  %v7527_v44 = vld [vmem:[#allocation8 + $0x654] sm:$0xf0]  ;;  %v7397_v45 = vld [vmem:[#allocation8 + $0x24c] sm:$0xf]  ;;  %v6274_v56 = vld [vmem:[#allocation8 + $0x488] sm:$0xf] }
 0x196   :  { %3603 = vmatpush.bf16.msrb.mxu3 %v6371_v32  ;;  %v6546_v32 = vld [vmem:[#allocation8 + $0x6a8] sm:$0xf]  ;;  %v6499_v49 = vor.u32 %v7527_v44, %v6498_v4  ;;  %v7479_v24 = vld [vmem:[#allocation8 + $0x4d4] sm:$0xf0]  ;;  %v7345_v44 = vld [vmem:[#allocation8 + $0xac] sm:$0xf] }
 0x197   :  { %3562 = vmatpush.bf16.msrb.mxu0 %v5971_v15  ;;  %v6547_v33 = vor.u32 %v7539_v3, %v6546_v32  ;;  %v6039_v15 = vor.u32 %v7409_v5, %v6036_v6  ;;  %v6082_v32 = vld [vmem:[#allocation8 + $0x308] sm:$0xf]  ;;  %v7423_v3 = vld [vmem:[#allocation8 + $0x314] sm:$0xf0] }
 0x198   :  { %v6466_v5 = vld [vmem:[#allocation8 + $0x608] sm:$0xf] }
 0x199   :  { %3571 = vmatpush.bf16.msrb.mxu1 %v6179_v39  ;;  %3529 = vmatpush.bf16.msra.mxu2 %v5795_v59  ;;  %v7523_v39 = vld [vmem:[#allocation8 + $0x634] sm:$0xf0]  ;;  %v7393_v59 = vld [vmem:[#allocation8 + $0x22c] sm:$0xf]  ;;  %v6242_v17 = vld [vmem:[#allocation8 + $0x448] sm:$0xf] }
 0x19a   :  { %3604 = vmatpush.bf16.msrb.mxu3 %v6355_v27  ;;  %v7535_v27 = vld [vmem:[#allocation8 + $0x694] sm:$0xf0]  ;;  %v6483_v1 = vor.u32 %v7523_v39, %v6482_v58  ;;  %v7341_v39 = vld [vmem:[#allocation8 + $0x8c] sm:$0xf] }
 0x19b   :  { %3563 = vmatpush.bf16.msrb.mxu0 %v5955_v55  ;;  %v6531_v23 = vor.u32 %v7535_v27, %v6530_v18  ;;  %v6004_v55 = vld [vmem:[#allocation8 + $0x278] sm:$0xf0]  ;;  %v7449_v18 = vld [vmem:[#allocation8 + $0x3ec] sm:$0xf] }
 0x19c   :  { %v6007_v42 = vor.u32 %v7401_v36, %v6004_v55  ;;  %v6196_v27 = vld [vmem:[#allocation8 + $0x3f8] sm:$0xf0]  ;;  %v7445_v55 = vld [vmem:[#allocation8 + $0x3cc] sm:$0xf] }
 0x19d   :  { %3572 = vmatpush.bf16.msrb.mxu1 %v6163_v8  ;;  %3530 = vmatpush.bf16.msra.mxu2 %v5779_v16  ;;  %v7519_v8 = vld [vmem:[#allocation8 + $0x614] sm:$0xf0]  ;;  %v7389_v16 = vld [vmem:[#allocation8 + $0x20c] sm:$0xf]  ;;  %v6199_v28 = vor.u32 %v7449_v18, %v6196_v27  ;;  %v5796_v36 = vld [vmem:[#allocation8 + $0xd8] sm:$0xf0] }
 0x19e   :  { %3605 = vmatpush.bf16.msrb.mxu3 %v6339_v41  ;;  %3564 = vmatmul.bf16.vlgmr.msrb.gmra.mxu0 %v8032_v60  ;;  %v6114_v41 = vld [vmem:[#allocation8 + $0x348] sm:$0xf]  ;;  %v6467_v20 = vor.u32 %v7519_v8, %v6466_v5  ;;  %v5748_v8 = vld [vmem:[#allocation8 + $0x78] sm:$0xf0]  ;;  %v7463_v18 = vld [vmem:[#allocation8 + $0x454] sm:$0xf0] }
 0x19f   :  { %3612 = vmatpush.bf16.msra.mxu0 %v6579_v46  ;;  %v5988_v46 = vld [vmem:[#allocation8 + $0x258] sm:$0xf0]  ;;  %v6115_v47 = vor.u32 %v7431_v13, %v6114_v41  ;;  %v5799_v41 = vor.u32 %v7349_v35, %v5796_v36  ;;  %v6290_v13 = vld [vmem:[#allocation8 + $0x4a8] sm:$0xf] }
 0x1a0   :  { %v5991_v57 = vor.u32 %v7397_v45, %v5988_v46  ;;  %v5780_v45 = vld [vmem:[#allocation8 + $0xb8] sm:$0xf0]  ;;  %v7441_v46 = vld [vmem:[#allocation8 + $0x3ac] sm:$0xf] }
 0x1a1   :  { %3606 = vmatmul.bf16.vlgmr.msrb.gmra.mxu3 %v8049_v21  ;;  %3573 = vmatpush.bf16.msrb.mxu1 %v6147_v19  ;;  %v7545_v19 = vld [vmem:[#allocation8 + $0x6ec] sm:$0xf]  ;;  %v5783_v54 = vor.u32 %v7345_v44, %v5780_v45 }
 0x1a2   :  { %3654 = vmatpush.bf16.msra.mxu3 %v6071_v51  ;;  %3531 = vmatpush.bf16.msra.mxu2 %v5763_v22  ;;  %v5714_v51 = vld [vmem:[#allocation8 + $0x28] sm:$0xf]  ;;  %v6580_v22 = vld [vmem:[#allocation8 + $0x6f8] sm:$0xf0]  ;;  %v7325_v44 = vld [vmem:[#allocation8 + $0xc] sm:$0xf] }
 0x1a3   :  { %3613 = vmatpush.bf16.msra.mxu0 %v6563_v61  ;;  %v5972_v61 = vld [vmem:[#allocation8 + $0x238] sm:$0xf0]  ;;  %v6583_v30 = vor.u32 %v7545_v19, %v6580_v22  ;;  %v7429_v22 = vld [vmem:[#allocation8 + $0x34c] sm:$0xf] }
 0x1a4   :  { %3480 = vmatmul.bf16.vlgmr.msrb.gmra.mxu2 %v8038_v40  ;;  %v5975_v6 = vor.u32 %v7393_v59, %v5972_v61  ;;  %v5764_v59 = vld [vmem:[#allocation8 + $0x98] sm:$0xf0]  ;;  %v7437_v61 = vld [vmem:[#allocation8 + $0x38c] sm:$0xf] }
 0x1a5   :  { %3574 = vmatpush.bf16.msrb.mxu1 %v6131_v38  ;;  %v6180_v38 = vld [vmem:[#allocation8 + $0x3d8] sm:$0xf0] }
 0x1a6   :  { %3655 = vmatpush.bf16.msra.mxu3 %v6055_v7  ;;  %3532 = vmatpush.bf16.msra.mxu2 %v5747_v0  ;;  %v5715_v7 = vor.u32 %v7331_v12, %v5714_v51  ;;  %v7541_v0 = vld [vmem:[#allocation8 + $0x6cc] sm:$0xf]  ;;  %v6183_v43 = vor.u32 %v7445_v55, %v6180_v38  ;;  %v5732_v19 = vld [vmem:[#allocation8 + $0x58] sm:$0xf0] }
 0x1a7   :  { %3614 = vmatpush.bf16.msra.mxu0 %v6547_v33  ;;  %v5956_v33 = vld [vmem:[#allocation8 + $0x218] sm:$0xf0]  ;;  %v7329_v55 = vld [vmem:[#allocation8 + $0x2c] sm:$0xf] }
 0x1a8   :  { %v5716_v38 = vld [vmem:[#allocation8 + $0x38] sm:$0xf0] }
 0x1a9   :  { %3575 = vmatpush.bf16.msrb.mxu1 %v6115_v47  ;;  %v6164_v47 = vld [vmem:[#allocation8 + $0x3b8] sm:$0xf0] }
 0x1aa   :  { %3656 = vmatpush.bf16.msra.mxu3 %v6039_v15  ;;  %3533 = vmatpush.bf16.msra.mxu2 %v5731_v48  ;;  %v6083_v15 = vor.u32 %v7423_v3, %v6082_v32  ;;  %v7537_v48 = vld [vmem:[#allocation8 + $0x6ac] sm:$0xf]  ;;  %v6167_v12 = vor.u32 %v7441_v46, %v6164_v47  ;;  %v7467_v32 = vld [vmem:[#allocation8 + $0x474] sm:$0xf0]  ;;  %v5700_v47 = vld [vmem:[#allocation8 + $0x18] sm:$0xf0] }
 0x1ab   :  { %3615 = vmatpush.bf16.msra.mxu0 %v6531_v23  ;;  %v5959_v23 = vor.u32 %v7389_v16, %v5956_v33  ;;  %v7433_v16 = vld [vmem:[#allocation8 + $0x36c] sm:$0xf]  ;;  %v6132_v33 = vld [vmem:[#allocation8 + $0x378] sm:$0xf0] }
 0x1ac   :  { %v6135_v27 = vor.u32 %v7433_v16, %v6132_v33  ;;  %v7377_v33 = vld [vmem:[#allocation8 + $0x1ac] sm:$0xf] }
 0x1ad   :  { %3576 = vmatpush.bf16.msrb.mxu1 %v6099_v62  ;;  %v6148_v62 = vld [vmem:[#allocation8 + $0x398] sm:$0xf0] }
 0x1ae   :  { %3657 = vmatpush.bf16.msra.mxu3 %v6023_v29  ;;  %3534 = vmatpush.bf16.msra.mxu2 %v5715_v7  ;;  %v6306_v29 = vld [vmem:[#allocation8 + $0x4c8] sm:$0xf]  ;;  %v5767_v7 = vor.u32 %v7341_v39, %v5764_v59  ;;  %v6151_v3 = vor.u32 %v7437_v61, %v6148_v62  ;;  %v5703_v59 = vor.u32 %v7325_v44, %v5700_v47  ;;  %v6618_v47 = vld [vmem:[#allocation11 + $0x40] sm:$0xf] }
 0x1af   :  { %3616 = vmatpush.bf16.msra.mxu0 %v6515_v34  ;;  %v6564_v34 = vld [vmem:[#allocation8 + $0x6d8] sm:$0xf0]  ;;  %v6307_v31 = vor.u32 %v7479_v24, %v6306_v29  ;;  %v6226_v24 = vld [vmem:[#allocation8 + $0x428] sm:$0xf] }
 0x1b0   :  { %v6567_v4 = vor.u32 %v7541_v0, %v6564_v34  ;;  %v7425_v0 = vld [vmem:[#allocation8 + $0x32c] sm:$0xf]  ;;  %v6100_v34 = vld [vmem:[#allocation8 + $0x338] sm:$0xf0] }
 0x1b1   :  { %3577 = vmatpush.bf16.msrb.mxu1 %v6083_v15  ;;  %v6103_v45 = vor.u32 %v7425_v0, %v6100_v34  ;;  %v7365_v34 = vld [vmem:[#allocation8 + $0x14c] sm:$0xf] }
 0x1b2   :  { %3658 = vmatpush.bf16.msra.mxu3 %v6007_v42  ;;  %3535 = vmatpush.bf16.msra.mxu2 %v5699_v10  ;;  %v7475_v42 = vld [vmem:[#allocation8 + $0x4b4] sm:$0xf0]  ;;  %v6519_v10 = vor.u32 %v7529_v52, %v6516_v14  ;;  %v6682_v52 = vld [vmem:[#allocation11 + $0xc0] sm:$0xf]  ;;  %v7574_v14 = vld [vmem:[#allocation11 + $0xcc] sm:$0xf0] }
 0x1b3   :  { %3617 = vmatpush.bf16.msra.mxu0 %v6499_v49  ;;  %v6548_v49 = vld [vmem:[#allocation8 + $0x6b8] sm:$0xf0]  ;;  %v6291_v51 = vor.u32 %v7475_v42, %v6290_v13  ;;  %v5719_v42 = vor.u32 %v7329_v55, %v5716_v38 }
 0x1b4   :  { %3578 = vmatmul.bf16.vlgmr.msrb.gmra.mxu1 %v8038_v40  ;;  %v6551_v58 = vor.u32 %v7537_v48, %v6548_v49  ;;  %v7421_v48 = vld [vmem:[#allocation8 + $0x30c] sm:$0xf]  ;;  %v6084_v49 = vld [vmem:[#allocation8 + $0x318] sm:$0xf0] }
 0x1b5   :  { %3626 = vmatpush.bf16.msra.mxu1 %v5815_v26  ;;  %3536 = vmatmul.bf16.vlgmr.msra.gmra.mxu2 %v8028_v2  ;;  %v6500_v26 = vld [vmem:[#allocation8 + $0x658] sm:$0xf0]  ;;  %v6087_v61 = vor.u32 %v7421_v48, %v6084_v49  ;;  %v7558_v48 = vld [vmem:[#allocation11 + $0x4c] sm:$0xf0] }
 0x1b6   :  { %3659 = vmatpush.bf16.msra.mxu3 %v5991_v57  ;;  %3584 = vmatpush.bf16.msrb.mxu2 %v6323_v25  ;;  %v7471_v57 = vld [vmem:[#allocation8 + $0x494] sm:$0xf0]  ;;  %v7525_v25 = vld [vmem:[#allocation8 + $0x64c] sm:$0xf]  ;;  %v5844_v49 = vld [vmem:[#allocation8 + $0x138] sm:$0xf0] }
 0x1b7   :  { %3618 = vmatpush.bf16.msra.mxu0 %v6483_v1  ;;  %v6275_v63 = vor.u32 %v7471_v57, %v6274_v56  ;;  %v6258_v1 = vld [vmem:[#allocation8 + $0x468] sm:$0xf]  ;;  %v6503_v36 = vor.u32 %v7525_v25, %v6500_v26  ;;  %v7385_v56 = vld [vmem:[#allocation8 + $0x1ec] sm:$0xf]  ;;  %v5940_v57 = vld [vmem:[#allocation8 + $0x1f8] sm:$0xf0] }
 0x1b8   :  { %v6259_v9 = vor.u32 %v7467_v32, %v6258_v1  ;;  %v7578_v1 = vld [vmem:[#allocation11 + $0xec] sm:$0xf0]  ;;  %v5924_v32 = vld [vmem:[#allocation8 + $0x1d8] sm:$0xf0]  ;;  %v7469_v25 = vld [vmem:[#allocation8 + $0x48c] sm:$0xf] }
 0x1b9   :  { %3627 = vmatpush.bf16.msra.mxu1 %v5799_v41  ;;  %v6484_v41 = vld [vmem:[#allocation8 + $0x638] sm:$0xf0] }
 0x1ba   :  { %3660 = vmatpush.bf16.msra.mxu3 %v5975_v6  ;;  %3585 = vmatpush.bf16.msrb.mxu2 %v6307_v31  ;;  %v7337_v6 = vld [vmem:[#allocation8 + $0x6c] sm:$0xf]  ;;  %v6276_v26 = vld [vmem:[#allocation8 + $0x498] sm:$0xf0] }
 0x1bb   :  { %3619 = vmatpush.bf16.msra.mxu0 %v6467_v20  ;;  %v5751_v15 = vor.u32 %v7337_v6, %v5748_v8  ;;  %v7333_v20 = vld [vmem:[#allocation8 + $0x4c] sm:$0xf] }
 0x1bc   :  { %v5735_v29 = vor.u32 %v7333_v20, %v5732_v19  ;;  %v7521_v31 = vld [vmem:[#allocation8 + $0x62c] sm:$0xf]  ;;  %v6666_v19 = vld [vmem:[#allocation11 + $0xa0] sm:$0xf] }
 0x1bd   :  { %3628 = vmatpush.bf16.msra.mxu1 %v5783_v54  ;;  %v6487_v46 = vor.u32 %v7521_v31, %v6484_v41  ;;  %v6468_v54 = vld [vmem:[#allocation8 + $0x618] sm:$0xf0]  ;;  %v7373_v20 = vld [vmem:[#allocation8 + $0x18c] sm:$0xf]  ;;  %v6634_v31 = vld [vmem:[#allocation11 + $0x60] sm:$0xf] }
 0x1be   :  { %3661 = vmatpush.bf16.msra.mxu3 %v5959_v23  ;;  %3620 = vmatmul.bf16.vlgmr.msra.gmra.mxu0 %v8055_v50  ;;  %v6116_v23 = vld [vmem:[#allocation8 + $0x358] sm:$0xf0]  ;;  %v7562_v41 = vld [vmem:[#allocation11 + $0x6c] sm:$0xf0] }
 0x1bf   :  { %3668 = vmatpush.bf16.msrb.mxu0 %v6199_v28  ;;  %3586 = vmatpush.bf16.msrb.mxu2 %v6291_v51  ;;  %v6243_v28 = vor.u32 %v7463_v18, %v6242_v17  ;;  %v6119_v35 = vor.u32 %v7429_v22, %v6116_v23  ;;  %v7517_v51 = vld [vmem:[#allocation8 + $0x60c] sm:$0xf]  ;;  %v6292_v17 = vld [vmem:[#allocation8 + $0x4b8] sm:$0xf0]  ;;  %v6683_v18 = vor.u32 %v7574_v14, %v6682_v52  ;;  %v7570_v22 = vld [vmem:[#allocation11 + $0xac] sm:$0xf0] }
 0x1c0   :  { %v6471_v62 = vor.u32 %v7517_v51, %v6468_v54  ;;  %v5892_v23 = vld [vmem:[#allocation8 + $0x198] sm:$0xf0]  ;;  %v7457_v51 = vld [vmem:[#allocation8 + $0x42c] sm:$0xf]  ;;  %v7550_v52 = vld [vmem:[#allocation11 + $0xc] sm:$0xf0] }
 0x1c1   :  { %3662 = vmatmul.bf16.vlgmr.msra.gmra.mxu3 %v8032_v60  ;;  %v7533_v60 = vld [vmem:[#allocation8 + $0x68c] sm:$0xf]  ;;  %3629 = vmatpush.bf16.msra.mxu1 %v5767_v7  ;;  %v6698_v7 = vld [vmem:[#allocation11 + $0xe0] sm:$0xf]  ;;  %v6228_v54 = vld [vmem:[#allocation8 + $0x438] sm:$0xf0] }
 0x1c2   :  { %3710 = vmatpush.bf16.msrb.mxu3 %v6583_v30  ;;  %v6535_v5 = vor.u32 %v7533_v60, %v6532_v53  ;;  %v7459_v30 = vld [vmem:[#allocation8 + $0x434] sm:$0xf0]  ;;  %v5943_v60 = vor.u32 %v7385_v56, %v5940_v57  ;;  %v6699_v6 = vor.u32 %v7578_v1, %v6698_v7  ;;  %v7357_v56 = vld [vmem:[#allocation8 + $0x10c] sm:$0xf]  ;;  %v6619_v57 = vor.u32 %v7558_v48, %v6618_v47  ;;  %v6826_v7 = vld [vmem:[#allocation11 + $0x1e0] sm:$0xf] }
 0x1c3   :  { %3669 = vmatpush.bf16.msrb.mxu0 %v6183_v43  ;;  %3587 = vmatpush.bf16.msrb.mxu2 %v6275_v63  ;;  %v6227_v13 = vor.u32 %v7459_v30, %v6226_v24  ;;  %v6210_v43 = vld [vmem:[#allocation8 + $0x408] sm:$0xf]  ;;  %v7381_v63 = vld [vmem:[#allocation8 + $0x1cc] sm:$0xf]  ;;  %v7566_v24 = vld [vmem:[#allocation11 + $0x8c] sm:$0xf0] }
 0x1c4   :  { %v5927_v8 = vor.u32 %v7381_v63, %v5924_v32  ;;  %v5876_v30 = vld [vmem:[#allocation8 + $0x178] sm:$0xf0]  ;;  %v7610_v1 = vld [vmem:[#allocation11 + $0x1ec] sm:$0xf0]  ;;  %v7493_v47 = vld [vmem:[#allocation8 + $0x54c] sm:$0xf] }
 0x1c5   :  { %3630 = vmatpush.bf16.msra.mxu1 %v5751_v15  ;;  %v7473_v15 = vld [vmem:[#allocation8 + $0x4ac] sm:$0xf]  ;;  %v6452_v63 = vld [vmem:[#allocation8 + $0x5f8] sm:$0xf0] }
 0x1c6   :  { %3711 = vmatpush.bf16.msrb.mxu3 %v6567_v4  ;;  %v7455_v4 = vld [vmem:[#allocation8 + $0x414] sm:$0xf0]  ;;  %v6436_v14 = vld [vmem:[#allocation8 + $0x5d8] sm:$0xf0] }
 0x1c7   :  { %3670 = vmatpush.bf16.msrb.mxu0 %v6167_v12  ;;  %3588 = vmatpush.bf16.msrb.mxu2 %v6259_v9  ;;  %v7481_v12 = vld [vmem:[#allocation8 + $0x4ec] sm:$0xf]  ;;  %v6211_v39 = vor.u32 %v7455_v4, %v6210_v43  ;;  %v5908_v9 = vld [vmem:[#allocation8 + $0x1b8] sm:$0xf0]  ;;  %v6635_v4 = vor.u32 %v7562_v41, %v6634_v31 }
 0x1c8   :  { %v6244_v43 = vld [vmem:[#allocation8 + $0x458] sm:$0xf0] }
 0x1c9   :  { %3631 = vmatpush.bf16.msra.mxu1 %v5735_v29  ;;  %v7369_v29 = vld [vmem:[#allocation8 + $0x16c] sm:$0xf]  ;;  %v6388_v41 = vld [vmem:[#allocation8 + $0x578] sm:$0xf0] }
 0x1ca   :  { %3712 = vmatpush.bf16.msrb.mxu3 %v6551_v58  ;;  %v6324_v58 = vld [vmem:[#allocation8 + $0x4f8] sm:$0xf0]  ;;  %v5879_v38 = vor.u32 %v7369_v29, %v5876_v30  ;;  %v8074_v29 = vpop.f32.mrf.mxu1 }
 0x1cb   :  { %3671 = vmatpush.bf16.msrb.mxu0 %v6151_v3  ;;  %3589 = vmatpush.bf16.msrb.mxu2 %v6243_v28  ;;  %v6327_v53 = vor.u32 %v7481_v12, %v6324_v58  ;;  %v7477_v3 = vld [vmem:[#allocation8 + $0x4cc] sm:$0xf]  ;;  %v5895_v28 = vor.u32 %v7373_v20, %v5892_v23  ;;  %v6231_v58 = vor.u32 %v7457_v51, %v6228_v54  ;;  %v6420_v23 = vld [vmem:[#allocation8 + $0x5b8] sm:$0xf0] }
 0x1cc   :  { %v7505_v20 = vld [vmem:[#allocation8 + $0x5ac] sm:$0xf]  ;;  %v6372_v51 = vld [vmem:[#allocation8 + $0x558] sm:$0xf0] }
 0x1cd   :  { %3632 = vmatpush.bf16.msra.mxu1 %v5719_v42  ;;  %v7461_v42 = vld [vmem:[#allocation8 + $0x44c] sm:$0xf] }
 0x1ce   :  { %3713 = vmatpush.bf16.msrb.mxu3 %v6535_v5  ;;  %v6308_v5 = vld [vmem:[#allocation8 + $0x4d8] sm:$0xf0] }
 0x1cf   :  { %3672 = vmatpush.bf16.msrb.mxu0 %v6135_v27  ;;  %3590 = vmatpush.bf16.msrb.mxu2 %v6227_v13  ;;  %v6311_v16 = vor.u32 %v7477_v3, %v6308_v5  ;;  %v5911_v27 = vor.u32 %v7377_v33, %v5908_v9  ;;  %v5860_v13 = vld [vmem:[#allocation8 + $0x158] sm:$0xf0]  ;;  %v6586_v33 = vld [vmem:[#allocation11] sm:$0xf] }
 0x1d0   :  { %v5863_v44 = vor.u32 %v7365_v34, %v5860_v13  ;;  %v6810_v9 = vld [vmem:[#allocation11 + $0x1c0] sm:$0xf]  ;;  %v6668_v34 = vld [vmem:[#allocation11 + $0xb0] sm:$0xf0] }
 0x1d1   :  { %3633 = vmatpush.bf16.msra.mxu1 %v5703_v59  ;;  %v6602_v59 = vld [vmem:[#allocation11 + $0x20] sm:$0xf] }
 0x1d2   :  { %3714 = vmatpush.bf16.msrb.mxu3 %v6519_v10  ;;  %v6295_v10 = vor.u32 %v7473_v15, %v6292_v17  ;;  %v7606_v15 = vld [vmem:[#allocation11 + $0x1cc] sm:$0xf0]  ;;  %v7576_v17 = vld [vmem:[#allocation11 + $0xe4] sm:$0xf] }
 0x1d3   :  { %3673 = vmatpush.bf16.msrb.mxu0 %v6119_v35  ;;  %3591 = vmatpush.bf16.msrb.mxu2 %v6211_v39  ;;  %v7465_v35 = vld [vmem:[#allocation8 + $0x46c] sm:$0xf]  ;;  %v5828_v39 = vld [vmem:[#allocation8 + $0x118] sm:$0xf0] }
 0x1d4   :  { %3634 = vmatmul.bf16.vlgmr.msra.gmra.mxu1 %v8028_v2  ;;  %v6667_v2 = vor.u32 %v7570_v22, %v6666_v19  ;;  %v5831_v3 = vor.u32 %v7357_v56, %v5828_v39  ;;  %v6811_v19 = vor.u32 %v7606_v15, %v6810_v9  ;;  %v8070_v22 = vpop.f32.mrf.mxu0  ;;  %v6746_v56 = vld [vmem:[#allocation11 + $0x140] sm:$0xf]  ;;  %v6375_v39 = vor.u32 %v7493_v47, %v6372_v51  ;;  %v7582_v9 = vld [vmem:[#allocation11 + $0x10c] sm:$0xf0]  ;;  %v7608_v15 = vld [vmem:[#allocation11 + $0x1e4] sm:$0xf] }
 0x1d5   :  { %3682 = vmatpush.bf16.msrb.mxu1 %v6327_v53  ;;  %v7513_v53 = vld [vmem:[#allocation8 + $0x5ec] sm:$0xf] }
 0x1d6   :  { %3715 = vmatpush.bf16.msrb.mxu3 %v6503_v36  ;;  %3592 = vmatmul.bf16.vlgmr.msrb.gmra.mxu2 %v8043_v37  ;;  %v6260_v36 = vld [vmem:[#allocation8 + $0x478] sm:$0xf0] }
 0x1d7   :  { %3674 = vmatpush.bf16.msrb.mxu0 %v6103_v45  ;;  %3640 = vmatpush.bf16.msra.mxu2 %v5943_v60  ;;  %v6263_v0 = vor.u32 %v7465_v35, %v6260_v36  ;;  %v6247_v45 = vor.u32 %v7461_v42, %v6244_v43  ;;  %v6212_v60 = vld [vmem:[#allocation8 + $0x418] sm:$0xf0]  ;;  %v6762_v42 = vld [vmem:[#allocation11 + $0x160] sm:$0xf]  ;;  %v7594_v43 = vld [vmem:[#allocation11 + $0x16c] sm:$0xf0] }
 0x1d8   :  { %v6404_v35 = vld [vmem:[#allocation8 + $0x598] sm:$0xf0]  ;;  %v6763_v48 = vor.u32 %v7594_v43, %v6762_v42  ;;  %v7596_v42 = vld [vmem:[#allocation11 + $0x184] sm:$0xf] }
 0x1d9   :  { %3683 = vmatpush.bf16.msrb.mxu1 %v6311_v16  ;;  %v6827_v16 = vor.u32 %v7610_v1, %v6826_v7  ;;  %v8080_v7 = vpop.f32.mrf.mxu3  ;;  %v7556_v1 = vld [vmem:[#allocation11 + $0x44] sm:$0xf] }
 0x1da   :  { %3716 = vmatpush.bf16.msrb.mxu3 %v6487_v46  ;;  %v7361_v46 = vld [vmem:[#allocation8 + $0x12c] sm:$0xf] }
 0x1db   :  { %3675 = vmatpush.bf16.msrb.mxu0 %v6087_v61  ;;  %3641 = vmatpush.bf16.msra.mxu2 %v5927_v8  ;;  %v5847_v12 = vor.u32 %v7361_v46, %v5844_v49  ;;  %v7554_v61 = vld [vmem:[#allocation11 + $0x2c] sm:$0xf0]  ;;  %v7509_v8 = vld [vmem:[#allocation8 + $0x5cc] sm:$0xf]  ;;  %v8078_v49 = vpop.f32.mrf.mxu1 }
 0x1dc   :  { %v6603_v32 = vor.u32 %v7554_v61, %v6602_v59  ;;  %v7489_v59 = vld [vmem:[#allocation8 + $0x52c] sm:$0xf] }
 0x1dd   :  { %3684 = vmatpush.bf16.msrb.mxu1 %v6295_v10  ;;  %v6439_v10 = vor.u32 %v7509_v8, %v6436_v14  ;;  %v6340_v8 = vld [vmem:[#allocation8 + $0x518] sm:$0xf0]  ;;  %v6714_v14 = vld [vmem:[#allocation11 + $0x100] sm:$0xf] }
 0x1de   :  { %3717 = vmatpush.bf16.msrb.mxu3 %v6471_v62  ;;  %3676 = vmatmul.bf16.vlgmr.msrb.gmra.mxu0 %v8038_v40  ;;  %v6279_v40 = vor.u32 %v7469_v25, %v6276_v26  ;;  %v7453_v62 = vld [vmem:[#allocation8 + $0x40c] sm:$0xf]  ;;  %v6794_v26 = vld [vmem:[#allocation11 + $0x1a0] sm:$0xf] }
 0x1df   :  { %4514 = vmatpush.bf16.msra.mxu0 %v6699_v6  ;;  %3642 = vmatpush.bf16.msra.mxu2 %v5911_v27  ;;  %v6215_v5 = vor.u32 %v7453_v62, %v6212_v60  ;;  %v6455_v6 = vor.u32 %v7513_v53, %v6452_v63  ;;  %v6587_v27 = vor.u32 %v7550_v52, %v6586_v33  ;;  %v6356_v62 = vld [vmem:[#allocation8 + $0x538] sm:$0xf0]  ;;  %v6730_v53 = vld [vmem:[#allocation11 + $0x120] sm:$0xf]  ;;  %v7586_v63 = vld [vmem:[#allocation11 + $0x12c] sm:$0xf0] }
 0x1e1   :  { %3718 = vmatmul.bf16.vlgmr.msrb.gmra.mxu3 %v8055_v50  ;;  %v6650_v50 = vld [vmem:[#allocation11 + $0x80] sm:$0xf]  ;;  %3685 = vmatpush.bf16.msrb.mxu1 %v6279_v40  ;;  %v6684_v40 = vld [vmem:[#allocation11 + $0xd0] sm:$0xf0] }
 0x1e2   :  { %v6651_v55 = vor.u32 %v7566_v24, %v6650_v50  ;;  %v6423_v50 = vor.u32 %v7505_v20, %v6420_v23  ;;  %v7501_v24 = vld [vmem:[#allocation8 + $0x58c] sm:$0xf]  ;;  %v8086_v23 = vld [vmem:[#allocation10] sm:$0xf] }
 0x1e3   :  { %4515 = vmatpush.bf16.msra.mxu0 %v6683_v18  ;;  %3643 = vmatpush.bf16.msra.mxu2 %v5895_v28  ;;  %v6700_v18 = vld [vmem:[#allocation11 + $0xf0] sm:$0xf0]  ;;  %v7572_v28 = vld [vmem:[#allocation11 + $0xc4] sm:$0xf] }
 0x1e4   :  { %v6703_v25 = vor.u32 %v7576_v17, %v6700_v18  ;;  %v6687_v36 = vor.u32 %v7572_v28, %v6684_v40  ;;  %v6828_v17 = vld [vmem:[#allocation11 + $0x1f0] sm:$0xf0]  ;;  %v7552_v18 = vld [vmem:[#allocation11 + $0x24] sm:$0xf] }
 0x1e5   :  { %3686 = vmatpush.bf16.msrb.mxu1 %v6263_v0  ;;  %v7568_v0 = vld [vmem:[#allocation11 + $0xa4] sm:$0xf]  ;;  %v6812_v28 = vld [vmem:[#allocation11 + $0x1d0] sm:$0xf0] }
 0x1e6   :  { %v6671_v13 = vor.u32 %v7568_v0, %v6668_v34  ;;  %v7548_v40 = vld [vmem:[#allocation11 + $0x4] sm:$0xf]  ;;  %v6796_v0 = vld [vmem:[#allocation11 + $0x1b0] sm:$0xf0]  ;;  %v6954_v34 = vld [vmem:[#allocation11 + $0x2e0] sm:$0xf] }
 0x1e7   :  { %4516 = vmatpush.bf16.msra.mxu0 %v6667_v2  ;;  %3644 = vmatpush.bf16.msra.mxu2 %v5879_v38  ;;  %v7602_v2 = vld [vmem:[#allocation11 + $0x1ac] sm:$0xf0] }
 0x1e8   :  { %v6795_v30 = vor.u32 %v7602_v2, %v6794_v26  ;;  %v7598_v38 = vld [vmem:[#allocation11 + $0x18c] sm:$0xf0]  ;;  %v7604_v2 = vld [vmem:[#allocation11 + $0x1c4] sm:$0xf] }
 0x1e9   :  { %3687 = vmatpush.bf16.msrb.mxu1 %v6247_v45  ;;  %v8076_v45 = vpop.f32.mrf.mxu0 }
 0x1eb   :  { %4517 = vmatpush.bf16.msra.mxu0 %v6651_v55  ;;  %3645 = vmatpush.bf16.msra.mxu2 %v5863_v44  ;;  %v6778_v55 = vld [vmem:[#allocation11 + $0x180] sm:$0xf]  ;;  %v6652_v44 = vld [vmem:[#allocation11 + $0x90] sm:$0xf0] }
 0x1ec   :  { %v6779_v31 = vor.u32 %v7598_v38, %v6778_v55  ;;  %v7600_v38 = vld [vmem:[#allocation11 + $0x1a4] sm:$0xf] }
 0x1ed   :  { %3688 = vmatpush.bf16.msrb.mxu1 %v6231_v58  ;;  %v6636_v58 = vld [vmem:[#allocation11 + $0x70] sm:$0xf0] }
 0x1ef   :  { %4518 = vmatpush.bf16.msra.mxu0 %v6635_v4  ;;  %3646 = vmatpush.bf16.msra.mxu2 %v5847_v12  ;;  %v7564_v4 = vld [vmem:[#allocation11 + $0x84] sm:$0xf] }
 0x1f0   :  { %v6655_v54 = vor.u32 %v7564_v4, %v6652_v44  ;;  %v7560_v12 = vld [vmem:[#allocation11 + $0x64] sm:$0xf]  ;;  %v6780_v4 = vld [vmem:[#allocation11 + $0x190] sm:$0xf0]  ;;  %v6938_v44 = vld [vmem:[#allocation11 + $0x2c0] sm:$0xf] }
 0x1f1   :  { %3689 = vmatpush.bf16.msrb.mxu1 %v6215_v5  ;;  %v6639_v60 = vor.u32 %v7560_v12, %v6636_v58  ;;  %v6359_v5 = vor.u32 %v7489_v59, %v6356_v62  ;;  %v8084_v33 = vpop.f32.mrf.mxu1  ;;  %v6783_v51 = vor.u32 %v7596_v42, %v6780_v4  ;;  %v6922_v12 = vld [vmem:[#allocation11 + $0x2a0] sm:$0xf]  ;;  %v7634_v58 = vld [vmem:[#allocation11 + $0x2ac] sm:$0xf0] }
 0x1f2   :  { %v6923_v59 = vor.u32 %v7634_v58, %v6922_v12  ;;  %v6858_v42 = vld [vmem:[#allocation11 + $0x220] sm:$0xf] }
 0x1f3   :  { %4519 = vmatpush.bf16.msra.mxu0 %v6619_v57  ;;  %3647 = vmatpush.bf16.msra.mxu2 %v5831_v3  ;;  %v7590_v57 = vld [vmem:[#allocation11 + $0x14c] sm:$0xf0]  ;;  %v8082_v3 = vpop.f32.mrf.mxu0 }
 0x1f4   :  { %3690 = vmatmul.bf16.vlgmr.msrb.gmra.mxu1 %v8043_v37  ;;  %v7497_v37 = vld [vmem:[#allocation8 + $0x56c] sm:$0xf]  ;;  %v6747_v61 = vor.u32 %v7590_v57, %v6746_v56  ;;  %v6764_v57 = vld [vmem:[#allocation11 + $0x170] sm:$0xf0] }
 0x1f5   :  { %4528 = vmatpush.bf16.msra.mxu1 %v6827_v16  ;;  %v6391_v46 = vor.u32 %v7497_v37, %v6388_v41  ;;  %v6731_v16 = vor.u32 %v7586_v63, %v6730_v53 }
 0x1f6   :  { %3648 = vmatmul.bf16.vlgmr.msra.gmra.mxu2 %v8030_v11  ;;  %v6407_v11 = vor.u32 %v7501_v24, %v6404_v35  ;;  %v3385_v24 = vpop.f32.mrf.mxu3 }
 0x1f7   :  { %4520 = vmatpush.bf16.msra.mxu0 %v6603_v32  ;;  %3696 = vmatpush.bf16.msrb.mxu2 %v6455_v6  ;;  %v6620_v32 = vld [vmem:[#allocation11 + $0x50] sm:$0xf0]  ;;  %v7485_v6 = vld [vmem:[#allocation8 + $0x50c] sm:$0xf] }
 0x1f8   :  { %v6623_v52 = vor.u32 %v7556_v1, %v6620_v32  ;;  %v6343_v20 = vor.u32 %v7485_v6, %v6340_v8  ;;  %v6748_v32 = vld [vmem:[#allocation11 + $0x150] sm:$0xf0] }
 0x1f9   :  { %4529 = vmatpush.bf16.msra.mxu1 %v6811_v19  ;;  %v6715_v19 = vor.u32 %v7582_v9, %v6714_v14  ;;  %v3413_v37 = vpop.f32.mrf.mxu1 }
 0x1fb   :  { %4521 = vmatpush.bf16.msra.mxu0 %v6587_v27  ;;  %3697 = vmatpush.bf16.msrb.mxu2 %v6439_v10  ;;  %v6604_v27 = vld [vmem:[#allocation11 + $0x30] sm:$0xf0]  ;;  %v3369_v10 = vpop.f32.mrf.mxu2  ;;  %v3399_v35 = vpop.f32.mrf.mxu0 }
 0x1fc   :  { %v6607_v26 = vor.u32 %v7552_v18, %v6604_v27  ;;  %v7626_v18 = vld [vmem:[#allocation11 + $0x26c] sm:$0xf0] }
 0x1fd   :  { %4530 = vmatpush.bf16.msra.mxu1 %v6795_v30  ;;  %v2204_v30 = vperm.slane %v8086_v23, 0 }
 0x1fe   :  { %v3439_v56 = vpop.f32.mrf.mxu3 }
 0x1ff   :  { %4570 = vmatpush.bf16.msrb.mxu0 %v6703_v25  ;;  %3698 = vmatpush.bf16.msrb.mxu2 %v6423_v50  ;;  %v6831_v25 = vor.u32 %v7608_v15, %v6828_v17  ;;  %v6588_v50 = vld [vmem:[#allocation11 + $0x10] sm:$0xf0]  ;;  %v3342_v43 = vadd.f32 %v8070_v22, %v2204_v30  ;;  %v6890_v17 = vld [vmem:[#allocation11 + $0x260] sm:$0xf] }
 0x200   :  { %v6591_v55 = vor.u32 %v7548_v40, %v6588_v50  ;;  %v6732_v15 = vld [vmem:[#allocation11 + $0x130] sm:$0xf0]  ;;  %v6891_v27 = vor.u32 %v7626_v18, %v6890_v17  ;;  %v7580_v40 = vld [vmem:[#allocation11 + $0x104] sm:$0xf] }
 0x201   :  { %4531 = vmatpush.bf16.msra.mxu1 %v6779_v31  ;;  %v3467_v62 = vpop.f32.mrf.mxu1  ;;  %v7632_v17 = vld [vmem:[#allocation11 + $0x2a4] sm:$0xf]  ;;  %v6924_v18 = vld [vmem:[#allocation11 + $0x2b0] sm:$0xf0] }
 0x203   :  { %4571 = vmatpush.bf16.msrb.mxu0 %v6687_v36  ;;  %3699 = vmatpush.bf16.msrb.mxu2 %v6407_v11  ;;  %v6815_v36 = vor.u32 %v7604_v2, %v6812_v28  ;;  %v7642_v11 = vld [vmem:[#allocation11 + $0x2ec] sm:$0xf0]  ;;  %v3371_v41 = vpop.f32.mrf.mxu2  ;;  %v6706_v2 = vld [vmem:[#allocation11 + $0xe8] sm:$0xf] }
 0x204   :  { %v6955_v31 = vor.u32 %v7642_v11, %v6954_v34  ;;  %v6690_v11 = vld [vmem:[#allocation11 + $0xc8] sm:$0xf] }
 0x205   :  { %4532 = vmatpush.bf16.msra.mxu1 %v6763_v48  ;;  %v3344_v48 = vadd.f32 %v8076_v45, %v2204_v30  ;;  %v7588_v45 = vld [vmem:[#allocation11 + $0x144] sm:$0xf]  ;;  %v7622_v30 = vld [vmem:[#allocation11 + $0x24c] sm:$0xf0] }
 0x207   :  { %4572 = vmatpush.bf16.msrb.mxu0 %v6671_v13  ;;  %3700 = vmatpush.bf16.msrb.mxu2 %v6391_v46  ;;  %v6799_v13 = vor.u32 %v7600_v38, %v6796_v0  ;;  %v7638_v46 = vld [vmem:[#allocation11 + $0x2cc] sm:$0xf0]  ;;  %v3358_v22 = vadd.f32 %v8078_v49, %v3344_v48  ;;  %v7584_v49 = vld [vmem:[#allocation11 + $0x124] sm:$0xf] }
 0x208   :  { %v6939_v47 = vor.u32 %v7638_v46, %v6938_v44  ;;  %v6735_v28 = vor.u32 %v7584_v49, %v6732_v15 }
 0x209   :  { %4533 = vmatpush.bf16.msra.mxu1 %v6747_v61  ;;  %v3372_v63 = vadd.f32 %v3371_v41, %v3358_v22 }
 0x20b   :  { %4573 = vmatpush.bf16.msrb.mxu0 %v6655_v54  ;;  %3701 = vmatpush.bf16.msrb.mxu2 %v6375_v39  ;;  %v7592_v54 = vld [vmem:[#allocation11 + $0x164] sm:$0xf]  ;;  %v3453_v39 = vpop.f32.mrf.mxu0  ;;  %v3386_v8 = vadd.f32 %v3385_v24, %v3372_v63  ;;  %v6716_v24 = vld [vmem:[#allocation11 + $0x110] sm:$0xf0]  ;;  %v6658_v63 = vld [vmem:[#allocation11 + $0x88] sm:$0xf] }
 0x20c   :  { %v6767_v53 = vor.u32 %v7592_v54, %v6764_v57  ;;  %v7614_v57 = vld [vmem:[#allocation11 + $0x20c] sm:$0xf0] }
 0x20d   :  { %4534 = vmatpush.bf16.msra.mxu1 %v6731_v16  ;;  %v3400_v14 = vadd.f32 %v3399_v35, %v3386_v8  ;;  %v3469_v35 = vpop.f32.mrf.mxu1 }
 0x20f   :  { %4574 = vmatpush.bf16.msrb.mxu0 %v6639_v60  ;;  %3702 = vmatpush.bf16.msrb.mxu2 %v6359_v5  ;;  %v7630_v5 = vld [vmem:[#allocation11 + $0x28c] sm:$0xf0] }
 0x211   :  { %4535 = vmatpush.bf16.msra.mxu1 %v6715_v19 }
 0x213   :  { %4575 = vmatpush.bf16.msrb.mxu0 %v6623_v52  ;;  %3703 = vmatpush.bf16.msrb.mxu2 %v6343_v20  ;;  %v6751_v52 = vor.u32 %v7588_v45, %v6748_v32  ;;  %v3414_v20 = vadd.f32 %v3413_v37, %v3400_v14  ;;  %v6719_v37 = vor.u32 %v7580_v40, %v6716_v24  ;;  %v7636_v32 = vld [vmem:[#allocation11 + $0x2c4] sm:$0xf]  ;;  %v6642_v14 = vld [vmem:[#allocation11 + $0x68] sm:$0xf]  ;;  %v6908_v40 = vld [vmem:[#allocation11 + $0x290] sm:$0xf0] }
 0x214   :  { %v6834_v24 = vld [vmem:[#allocation11 + $0x1e8] sm:$0xf] }
 0x215   :  { %4584 = vmatpush.bf16.msrb.mxu1 %v6831_v25  ;;  %v3455_v25 = vpop.f32.mrf.mxu0 }
 0x216   :  { %3704 = vmatmul.bf16.vlgmr.msrb.gmra.mxu2 %v8049_v21  ;;  %v3356_v21 = vadd.f32 %v8074_v29, %v3342_v43  ;;  %v6906_v29 = vld [vmem:[#allocation11 + $0x280] sm:$0xf]  ;;  %v7618_v43 = vld [vmem:[#allocation11 + $0x22c] sm:$0xf0] }
 0x217   :  { %4576 = vmatpush.bf16.msrb.mxu0 %v6607_v26  ;;  %4542 = vmatpush.bf16.msra.mxu2 %v6955_v31  ;;  %v3425_v60 = vpop.f32.mrf.mxu2  ;;  %v6907_v6 = vor.u32 %v7630_v5, %v6906_v29  ;;  %v6859_v4 = vor.u32 %v7618_v43, %v6858_v42  ;;  %v6940_v29 = vld [vmem:[#allocation11 + $0x2d0] sm:$0xf0]  ;;  %v7607_v42 = vld [vmem:[#allocation11 + $0x1d4] sm:$0xf0] }
 0x218   :  { %v3370_v61 = vadd.f32 %v3369_v10, %v3356_v21  ;;  %v3441_v10 = vpop.f32.mrf.mxu3  ;;  %v7571_v21 = vld [vmem:[#allocation11 + $0xb4] sm:$0xf0] }
 0x219   :  { %4585 = vmatpush.bf16.msrb.mxu1 %v6815_v36 }
 0x21a   :  { %v3384_v1 = vadd.f32 %v8080_v7, %v3370_v61  ;;  %v2205_v7 = vperm.slane %v8086_v23, 1 }
 0x21b   :  { %4577 = vmatpush.bf16.msrb.mxu0 %v6591_v55  ;;  %4543 = vmatpush.bf16.msra.mxu2 %v6939_v47 }
 0x21c   :  { %v3398_v16 = vadd.f32 %v8082_v3, %v3384_v1  ;;  %v7579_v3 = vld [vmem:[#allocation11 + $0xf4] sm:$0xf0]  ;;  %v3440_v55 = vadd.f32 %v3439_v56, %v2205_v7  ;;  %v6842_v56 = vld [vmem:[#allocation11 + $0x200] sm:$0xf]  ;;  %v3442_v22 = vadd.f32 %v3441_v10, %v2205_v7  ;;  %v6927_v7 = vor.u32 %v7632_v17, %v6924_v18  ;;  %v6770_v18 = vld [vmem:[#allocation11 + $0x168] sm:$0xf] }
 0x21d   :  { %4586 = vmatpush.bf16.msrb.mxu1 %v6799_v13  ;;  %v6707_v34 = vor.u32 %v7579_v3, %v6706_v2  ;;  %v7575_v13 = vld [vmem:[#allocation11 + $0xd4] sm:$0xf0]  ;;  %v3509_v12 = vpop.f32.mrf.mxu0  ;;  %v6843_v58 = vor.u32 %v7614_v57, %v6842_v56  ;;  %v6802_v56 = vld [vmem:[#allocation11 + $0x1a8] sm:$0xf]  ;;  %v2206_v17 = vperm.slane %v8086_v23, 2 }
 0x21e   :  { %v3412_v9 = vadd.f32 %v8084_v33, %v3398_v16  ;;  %v6874_v33 = vld [vmem:[#allocation11 + $0x240] sm:$0xf]  ;;  %v3454_v31 = vadd.f32 %v3453_v39, %v3440_v55  ;;  %v6691_v48 = vor.u32 %v7575_v13, %v6690_v11  ;;  %v7640_v39 = vld [vmem:[#allocation11 + $0x2e4] sm:$0xf]  ;;  %v7567_v1 = vld [vmem:[#allocation11 + $0x94] sm:$0xf0] }
 0x21f   :  { %4544 = vmatpush.bf16.msra.mxu2 %v6923_v59  ;;  %v3427_v26 = vpop.f32.mrf.mxu2  ;;  %v6875_v36 = vor.u32 %v7622_v30, %v6874_v33  ;;  %v6956_v59 = vld [vmem:[#allocation11 + $0x2f0] sm:$0xf0]  ;;  %v6659_v16 = vor.u32 %v7567_v1, %v6658_v63  ;;  %v7559_v2 = vld [vmem:[#allocation11 + $0x54] sm:$0xf0]  ;;  %v7624_v11 = vld [vmem:[#allocation11 + $0x264] sm:$0xf] }
 0x220   :  { %v3426_v19 = vadd.f32 %v3425_v60, %v3412_v9  ;;  %v3428_v50 = vadd.f32 %v3427_v26, %v3414_v20  ;;  %v3468_v44 = vadd.f32 %v3467_v62, %v3454_v31  ;;  %v3495_v46 = vpop.f32.mrf.mxu3  ;;  %v6959_v61 = vor.u32 %v7640_v39, %v6956_v59  ;;  %v3523_v62 = vpop.f32.mrf.mxu1  ;;  %v7563_v9 = vld [vmem:[#allocation11 + $0x74] sm:$0xf0]  ;;  %v6626_v26 = vld [vmem:[#allocation11 + $0x48] sm:$0xf]  ;;  %v7573_v59 = vld [vmem:[#allocation11 + $0xcc] sm:$0xf] }
 0x221   :  { %4587 = vmatpush.bf16.msrb.mxu1 %v6783_v51  ;;  %v6674_v51 = vld [vmem:[#allocation11 + $0xa8] sm:$0xf]  ;;  %v6643_v20 = vor.u32 %v7563_v9, %v6642_v14  ;;  %v7611_v33 = vld [vmem:[#allocation11 + $0x1f4] sm:$0xf0]  ;;  %v7612_v9 = vld [vmem:[#allocation11 + $0x204] sm:$0xf] }
 0x222   :  { %v3724_v38 = vmax.f32 %v3426_v19, 0.0  ;;  %v3728_v0 = vmax.f32 %v3428_v50, 0.0  ;;  %v6675_v60 = vor.u32 %v7571_v21, %v6674_v51  ;;  %v6818_v13 = vld [vmem:[#allocation11 + $0x1c8] sm:$0xf]  ;;  %v6708_v51 = vld [vmem:[#allocation11 + $0xf8] sm:$0xf0] }
 0x223   :  { %4545 = vmatpush.bf16.msra.mxu2 %v6907_v6  ;;  %v6943_v6 = vor.u32 %v7636_v32, %v6940_v29  ;;  %v6876_v21 = vld [vmem:[#allocation11 + $0x250] sm:$0xf0]  ;;  %v7603_v57 = vld [vmem:[#allocation11 + $0x1b4] sm:$0xf0] }
 0x224   :  { %v8098_v41 = vpack.c.bf16 %v3728_v0, %v3724_v38  ;;  %v6610_v38 = vld [vmem:[#allocation11 + $0x28] sm:$0xf]  ;;  %v7555_v0 = vld [vmem:[#allocation11 + $0x34] sm:$0xf0] }
 0x225   :  { %4588 = vmatpush.bf16.msrb.mxu1 %v6767_v53  ;;  %v3456_v53 = vadd.f32 %v3455_v25, %v3442_v22  ;;  %v3511_v10 = vpop.f32.mrf.mxu0  ;;  %v6803_v22 = vor.u32 %v7603_v57, %v6802_v56  ;;  %v6722_v57 = vld [vmem:[#allocation11 + $0x108] sm:$0xf] }
 0x226   :  { %4522 = vmatmul.bf16.vlgmr.msra.gmra.mxu0 %v8098_v41 }
 0x227   :  { %4546 = vmatpush.bf16.msra.mxu2 %v6891_v27  ;;  %4626 = vmatpush.bf16.msra.mxu0 %v6707_v34  ;;  %v3481_v47 = vpop.f32.mrf.mxu2  ;;  %v3470_v5 = vadd.f32 %v3469_v35, %v3456_v53  ;;  %v6627_v35 = vor.u32 %v7559_v2, %v6626_v26  ;;  %v6835_v34 = vor.u32 %v7611_v33, %v6834_v24  ;;  %v6786_v53 = vld [vmem:[#allocation11 + $0x188] sm:$0xf]  ;;  %v7565_v26 = vld [vmem:[#allocation11 + $0x8c] sm:$0xf]  ;;  %v6660_v2 = vld [vmem:[#allocation11 + $0x98] sm:$0xf0] }
 0x228   :  { %v3482_v54 = vadd.f32 %v3481_v47, %v3468_v44  ;;  %v3497_v15 = vpop.f32.mrf.mxu3  ;;  %v3525_v3 = vpop.f32.mrf.mxu1  ;;  %v6594_v44 = vld [vmem:[#allocation11 + $0x8] sm:$0xf]  ;;  %v7577_v47 = vld [vmem:[#allocation11 + $0xec] sm:$0xf]  ;;  %v6663_v24 = vor.u32 %v7565_v26, %v6660_v2  ;;  %v7050_v33 = vld [vmem:[#allocation11 + $0x3a0] sm:$0xf] }
 0x229   :  { %4589 = vmatpush.bf16.msrb.mxu1 %v6751_v52  ;;  %v6711_v39 = vor.u32 %v7577_v47, %v6708_v51  ;;  %v7557_v51 = vld [vmem:[#allocation11 + $0x4c] sm:$0xf] }
 0x22a   :  { %v3496_v45 = vadd.f32 %v3495_v46, %v3482_v54  ;;  %v7551_v46 = vld [vmem:[#allocation11 + $0x14] sm:$0xf0]  ;;  %v7620_v54 = vld [vmem:[#allocation11 + $0x244] sm:$0xf] }
 0x22b   :  { %4547 = vmatpush.bf16.msra.mxu2 %v6875_v36  ;;  %4627 = vmatpush.bf16.msra.mxu0 %v6691_v48  ;;  %v6819_v48 = vor.u32 %v7607_v42, %v6818_v13  ;;  %v7587_v13 = vld [vmem:[#allocation11 + $0x134] sm:$0xf0] }
 0x22c   :  { %v3510_v52 = vadd.f32 %v3509_v12, %v3496_v45  ;;  %v6879_v12 = vor.u32 %v7620_v54, %v6876_v21  ;;  %v7599_v45 = vld [vmem:[#allocation11 + $0x194] sm:$0xf0]  ;;  %v6628_v54 = vld [vmem:[#allocation11 + $0x58] sm:$0xf0] }
 0x22d   :  { %4590 = vmatpush.bf16.msrb.mxu1 %v6735_v28  ;;  %v7628_v28 = vld [vmem:[#allocation11 + $0x284] sm:$0xf] }
 0x22e   :  { %v3524_v19 = vadd.f32 %v3523_v62, %v3510_v52  ;;  %v6911_v30 = vor.u32 %v7628_v28, %v6908_v40  ;;  %v7616_v62 = vld [vmem:[#allocation11 + $0x224] sm:$0xf]  ;;  %v6787_v52 = vor.u32 %v7599_v45, %v6786_v53  ;;  %v6754_v40 = vld [vmem:[#allocation11 + $0x148] sm:$0xf] }
 0x22f   :  { %4548 = vmatpush.bf16.msra.mxu2 %v6859_v4  ;;  %4628 = vmatpush.bf16.msra.mxu0 %v6675_v60  ;;  %v3483_v8 = vpop.f32.mrf.mxu2  ;;  %v6611_v4 = vor.u32 %v7555_v0, %v6610_v38  ;;  %v6860_v60 = vld [vmem:[#allocation11 + $0x230] sm:$0xf0]  ;;  %v7561_v38 = vld [vmem:[#allocation11 + $0x6c] sm:$0xf]  ;;  %v6644_v0 = vld [vmem:[#allocation11 + $0x78] sm:$0xf0] }
 0x230   :  { %v3484_v49 = vadd.f32 %v3483_v8, %v3470_v5  ;;  %v3725_v36 = vmax.f32 %v3524_v19, 0.0  ;;  %v6863_v63 = vor.u32 %v7616_v62, %v6860_v60  ;;  %v3551_v1 = vpop.f32.mrf.mxu3  ;;  %v7569_v5 = vld [vmem:[#allocation11 + $0xac] sm:$0xf]  ;;  %v7674_v8 = vld [vmem:[#allocation11 + $0x3ec] sm:$0xf0] }
 0x231   :  { %4591 = vmatpush.bf16.msrb.mxu1 %v6719_v37  ;;  %v6892_v37 = vld [vmem:[#allocation11 + $0x270] sm:$0xf0]  ;;  %v7670_v19 = vld [vmem:[#allocation11 + $0x3cc] sm:$0xf0]  ;;  %v3579_v47 = vpop.f32.mrf.mxu1 }
 0x232   :  { %v3498_v27 = vadd.f32 %v3497_v15, %v3484_v49  ;;  %v6895_v43 = vor.u32 %v7624_v11, %v6892_v37  ;;  %v6676_v49 = vld [vmem:[#allocation11 + $0xb8] sm:$0xf0]  ;;  %v6844_v15 = vld [vmem:[#allocation11 + $0x210] sm:$0xf0]  ;;  %v6738_v37 = vld [vmem:[#allocation11 + $0x128] sm:$0xf] }
 0x233   :  { %4549 = vmatpush.bf16.msra.mxu2 %v6843_v58  ;;  %4629 = vmatpush.bf16.msra.mxu0 %v6659_v16  ;;  %v6595_v58 = vor.u32 %v7551_v46, %v6594_v44  ;;  %v3565_v16 = vpop.f32.mrf.mxu0  ;;  %v7034_v44 = vld [vmem:[#allocation11 + $0x380] sm:$0xf]  ;;  %v7662_v46 = vld [vmem:[#allocation11 + $0x38c] sm:$0xf0] }
 0x234   :  { %v3512_v25 = vadd.f32 %v3511_v10, %v3498_v27  ;;  %v7595_v27 = vld [vmem:[#allocation11 + $0x174] sm:$0xf0]  ;;  %v6679_v10 = vor.u32 %v7569_v5, %v6676_v49  ;;  %v7035_v21 = vor.u32 %v7662_v46, %v7034_v44  ;;  %v7658_v62 = vld [vmem:[#allocation11 + $0x36c] sm:$0xf0]  ;;  %v6962_v44 = vld [vmem:[#allocation11 + $0x2e8] sm:$0xf] }
 0x235   :  { %v7643_v46 = vld [vmem:[#allocation11 + $0x2f4] sm:$0xf0] }
 0x236   :  { %v3526_v50 = vadd.f32 %v3525_v3, %v3512_v25  ;;  %4578 = vmatmul.bf16.vlgmr.msrb.gmra.mxu0 %v8098_v41  ;;  %v6771_v25 = vor.u32 %v7595_v27, %v6770_v18  ;;  %v6596_v18 = vld [vmem:[#allocation11 + $0x18] sm:$0xf0] }
 0x237   :  { %4598 = vmatpush.bf16.msrb.mxu2 %v6959_v61  ;;  %4630 = vmatpush.bf16.msra.mxu0 %v6643_v20  ;;  %v6692_v61 = vld [vmem:[#allocation11 + $0xd8] sm:$0xf0]  ;;  %v7066_v20 = vld [vmem:[#allocation11 + $0x3c0] sm:$0xf] }
 0x238   :  { %v3729_v55 = vmax.f32 %v3526_v50, 0.0  ;;  %v3537_v32 = vpop.f32.mrf.mxu2  ;;  %v6695_v29 = vor.u32 %v7573_v59, %v6692_v61  ;;  %v7067_v3 = vor.u32 %v7670_v19, %v7066_v20  ;;  %v7591_v50 = vld [vmem:[#allocation11 + $0x154] sm:$0xf0]  ;;  %v7018_v61 = vld [vmem:[#allocation11 + $0x360] sm:$0xf] }
 0x239   :  { %v3538_v28 = vadd.f32 %v3537_v32, %v2206_v17  ;;  %v7019_v32 = vor.u32 %v7658_v62, %v7018_v61  ;;  %v7601_v20 = vld [vmem:[#allocation11 + $0x1ac] sm:$0xf]  ;;  %v6804_v19 = vld [vmem:[#allocation11 + $0x1b8] sm:$0xf0] }
 0x23a   :  { %v8102_v31 = vpack.c.bf16 %v3729_v55, %v3725_v36  ;;  %v6755_v55 = vor.u32 %v7591_v50, %v6754_v40  ;;  %v7589_v62 = vld [vmem:[#allocation11 + $0x14c] sm:$0xf] }
 0x23b   :  { %4599 = vmatpush.bf16.msrb.mxu2 %v6943_v6  ;;  %4631 = vmatpush.bf16.msra.mxu0 %v6627_v35  ;;  %v7082_v6 = vld [vmem:[#allocation11 + $0x3e0] sm:$0xf]  ;;  %v3553_v35 = vpop.f32.mrf.mxu3  ;;  %v3552_v11 = vadd.f32 %v3551_v1, %v3538_v28  ;;  %v3567_v42 = vpop.f32.mrf.mxu0  ;;  %v6612_v1 = vld [vmem:[#allocation11 + $0x38] sm:$0xf0]  ;;  %v7650_v28 = vld [vmem:[#allocation11 + $0x32c] sm:$0xf0] }
 0x23c   :  { %4536 = vmatmul.bf16.vlgmr.msra.gmra.mxu1 %v8102_v31  ;;  %v7083_v14 = vor.u32 %v7674_v8, %v7082_v6  ;;  %v7605_v8 = vld [vmem:[#allocation11 + $0x1cc] sm:$0xf] }
 0x23d   :  { %4640 = vmatpush.bf16.msra.mxu1 %v6835_v34  ;;  %v3566_v56 = vadd.f32 %v3565_v16, %v3552_v11  ;;  %v6820_v16 = vld [vmem:[#allocation11 + $0x1d8] sm:$0xf0] }
 0x23e   :  { %4556 = vmatpush.bf16.msra.mxu3 %v7083_v14 }
 0x23f   :  { %4600 = vmatpush.bf16.msrb.mxu2 %v6927_v7  ;;  %4632 = vmatpush.bf16.msra.mxu0 %v6611_v4  ;;  %v6847_v7 = vor.u32 %v7612_v9, %v6844_v15  ;;  %v6647_v4 = vor.u32 %v7561_v38, %v6644_v0  ;;  %v7002_v9 = vld [vmem:[#allocation11 + $0x340] sm:$0xf]  ;;  %v7654_v15 = vld [vmem:[#allocation11 + $0x34c] sm:$0xf0] }
 0x240   :  { %v3539_v36 = vpop.f32.mrf.mxu2  ;;  %v7003_v27 = vor.u32 %v7654_v15, %v7002_v9  ;;  %v6970_v0 = vld [vmem:[#allocation11 + $0x300] sm:$0xf]  ;;  %v7631_v9 = vld [vmem:[#allocation11 + $0x294] sm:$0xf0] }
 0x241   :  { %4641 = vmatpush.bf16.msra.mxu1 %v6819_v48  ;;  %v6739_v48 = vor.u32 %v7587_v13, %v6738_v37  ;;  %v7672_v13 = vld [vmem:[#allocation11 + $0x3e4] sm:$0xf] }
 0x242   :  { %4557 = vmatpush.bf16.msra.mxu3 %v7067_v3  ;;  %v6986_v3 = vld [vmem:[#allocation11 + $0x320] sm:$0xf] }
 0x243   :  { %4601 = vmatpush.bf16.msrb.mxu2 %v6911_v30  ;;  %4633 = vmatpush.bf16.msra.mxu0 %v6595_v58  ;;  %v7666_v30 = vld [vmem:[#allocation11 + $0x3ac] sm:$0xf0]  ;;  %v7609_v58 = vld [vmem:[#allocation11 + $0x1ec] sm:$0xf]  ;;  %v3607_v60 = vpop.f32.mrf.mxu3  ;;  %v3621_v6 = vpop.f32.mrf.mxu0  ;;  %v6987_v50 = vor.u32 %v7650_v28, %v6986_v3  ;;  %v7652_v3 = vld [vmem:[#allocation11 + $0x344] sm:$0xf] }
 0x244   :  { %v7051_v34 = vor.u32 %v7666_v30, %v7050_v33  ;;  %v6807_v33 = vor.u32 %v7601_v20, %v6804_v19  ;;  %v6898_v19 = vld [vmem:[#allocation11 + $0x268] sm:$0xf]  ;;  %v7004_v28 = vld [vmem:[#allocation11 + $0x350] sm:$0xf0] }
 0x245   :  { %4642 = vmatpush.bf16.msra.mxu1 %v6803_v22  ;;  %v6631_v22 = vor.u32 %v7557_v51, %v6628_v54  ;;  %v6772_v51 = vld [vmem:[#allocation11 + $0x178] sm:$0xf0] }
 0x246   :  { %4634 = vmatmul.bf16.vlgmr.msra.gmra.mxu0 %v8098_v41  ;;  %4558 = vmatpush.bf16.msra.mxu3 %v7051_v34  ;;  %v7646_v34 = vld [vmem:[#allocation11 + $0x30c] sm:$0xf0] }
 0x247   :  { %4602 = vmatpush.bf16.msrb.mxu2 %v6895_v43  ;;  %4682 = vmatpush.bf16.msrb.mxu0 %v6711_v39  ;;  %v3540_v43 = vadd.f32 %v3539_v36, %v2206_v17  ;;  %v6836_v39 = vld [vmem:[#allocation11 + $0x1f8] sm:$0xf0]  ;;  %v7549_v17 = vld [vmem:[#allocation11 + $0xc] sm:$0xf]  ;;  %v6971_v37 = vor.u32 %v7646_v34, %v6970_v0 }
 0x248   :  { %v6839_v5 = vor.u32 %v7609_v58, %v6836_v39  ;;  %v6599_v2 = vor.u32 %v7549_v17, %v6596_v18  ;;  %v6788_v36 = vld [vmem:[#allocation11 + $0x198] sm:$0xf0]  ;;  %v7581_v17 = vld [vmem:[#allocation11 + $0x10c] sm:$0xf] }
 0x249   :  { %4643 = vmatpush.bf16.msra.mxu1 %v6787_v52  ;;  %v3554_v59 = vadd.f32 %v3553_v35, %v3540_v43  ;;  %v7597_v35 = vld [vmem:[#allocation11 + $0x18c] sm:$0xf]  ;;  %v6724_v18 = vld [vmem:[#allocation11 + $0x118] sm:$0xf0] }
 0x24a   :  { %4559 = vmatpush.bf16.msra.mxu3 %v7035_v21  ;;  %v6727_v20 = vor.u32 %v7581_v17, %v6724_v18  ;;  %v7621_v18 = vld [vmem:[#allocation11 + $0x24c] sm:$0xf] }
 0x24b   :  { %4603 = vmatpush.bf16.msrb.mxu2 %v6879_v12  ;;  %4683 = vmatpush.bf16.msrb.mxu0 %v6695_v29  ;;  %v7583_v12 = vld [vmem:[#allocation11 + $0x114] sm:$0xf0]  ;;  %v3580_v29 = vadd.f32 %v3579_v47, %v3566_v56  ;;  %v3568_v49 = vadd.f32 %v3567_v42, %v3554_v59  ;;  %v3609_v30 = vpop.f32.mrf.mxu3  ;;  %v3623_v11 = vpop.f32.mrf.mxu0  ;;  %v7084_v42 = vld [vmem:[#allocation11 + $0x3f0] sm:$0xf0]  ;;  %v6963_v56 = vor.u32 %v7643_v46, %v6962_v44  ;;  %v6946_v59 = vld [vmem:[#allocation11 + $0x2c8] sm:$0xf] }
 0x24c   :  { %4592 = vmatmul.bf16.vlgmr.msrb.gmra.mxu1 %v8102_v31  ;;  %v6723_v45 = vor.u32 %v7583_v12, %v6722_v57  ;;  %v7087_v47 = vor.u32 %v7672_v13, %v7084_v42  ;;  %v7668_v57 = vld [vmem:[#allocation11 + $0x3c4] sm:$0xf]  ;;  %v7068_v12 = vld [vmem:[#allocation11 + $0x3d0] sm:$0xf0]  ;;  %v7641_v46 = vld [vmem:[#allocation11 + $0x2ec] sm:$0xf] }
 0x24d   :  { %4644 = vmatpush.bf16.msra.mxu1 %v6771_v25  ;;  %v7071_v61 = vor.u32 %v7668_v57, %v7068_v12  ;;  %v6972_v13 = vld [vmem:[#allocation11 + $0x310] sm:$0xf0] }
 0x24e   :  { %4560 = vmatpush.bf16.msra.mxu3 %v7019_v32  ;;  %v7635_v32 = vld [vmem:[#allocation11 + $0x2b4] sm:$0xf0] }
 0x24f   :  { %4604 = vmatpush.bf16.msrb.mxu2 %v6863_v63  ;;  %4684 = vmatpush.bf16.msrb.mxu0 %v6679_v10  ;;  %v7553_v63 = vld [vmem:[#allocation11 + $0x2c] sm:$0xf]  ;;  %v3581_v10 = vpop.f32.mrf.mxu1 }
 0x250   :  { %v6615_v14 = vor.u32 %v7553_v63, %v6612_v1  ;;  %v3582_v26 = vadd.f32 %v3581_v10, %v3568_v49  ;;  %v6930_v1 = vld [vmem:[#allocation11 + $0x2a8] sm:$0xf]  ;;  %v7020_v10 = vld [vmem:[#allocation11 + $0x370] sm:$0xf0] }
 0x251   :  { %4645 = vmatpush.bf16.msra.mxu1 %v6755_v55 }
 0x252   :  { %4561 = vmatpush.bf16.msra.mxu3 %v7003_v27 }
 0x253   :  { %4605 = vmatpush.bf16.msrb.mxu2 %v6847_v7  ;;  %4685 = vmatpush.bf16.msrb.mxu0 %v6663_v24  ;;  %v6823_v7 = vor.u32 %v7605_v8, %v6820_v16  ;;  %v6931_v8 = vor.u32 %v7635_v32, %v6930_v1  ;;  %v7660_v16 = vld [vmem:[#allocation11 + $0x384] sm:$0xf]  ;;  %v3663_v34 = vpop.f32.mrf.mxu3  ;;  %v6916_v1 = vld [vmem:[#allocation11 + $0x298] sm:$0xf0] }
 0x255   :  { %4646 = vmatpush.bf16.msra.mxu1 %v6739_v48  ;;  %v7593_v48 = vld [vmem:[#allocation11 + $0x16c] sm:$0xf] }
 0x256   :  { %4562 = vmatpush.bf16.msra.mxu3 %v6987_v50  ;;  %v6775_v39 = vor.u32 %v7593_v48, %v6772_v51  ;;  %v7623_v50 = vld [vmem:[#allocation11 + $0x254] sm:$0xf0] }
 0x257   :  { %4686 = vmatpush.bf16.msrb.mxu0 %v6647_v4  ;;  %v6791_v4 = vor.u32 %v7597_v35, %v6788_v36  ;;  %v6988_v35 = vld [vmem:[#allocation11 + $0x330] sm:$0xf0]  ;;  %v3635_v36 = vpop.f32.mrf.mxu1 }
 0x259   :  { %v3593_v53 = vpop.f32.mrf.mxu2  ;;  %4647 = vmatpush.bf16.msra.mxu1 %v6723_v45  ;;  %v7052_v45 = vld [vmem:[#allocation11 + $0x3b0] sm:$0xf0] }
 0x25a   :  { %v3594_v52 = vadd.f32 %v3593_v53, %v3580_v29  ;;  %4563 = vmatpush.bf16.msra.mxu3 %v6971_v37  ;;  %v7664_v53 = vld [vmem:[#allocation11 + $0x3a4] sm:$0xf] }
 0x25b   :  { %4687 = vmatpush.bf16.msrb.mxu0 %v6631_v22  ;;  %v7639_v22 = vld [vmem:[#allocation11 + $0x2d4] sm:$0xf0]  ;;  %v7055_v29 = vor.u32 %v7664_v53, %v7052_v45  ;;  %v7644_v37 = vld [vmem:[#allocation11 + $0x304] sm:$0xf] }
 0x25c   :  { %v3608_v25 = vadd.f32 %v3607_v60, %v3594_v52  ;;  %4648 = vmatmul.bf16.vlgmr.msra.gmra.mxu1 %v8102_v31  ;;  %v6756_v60 = vld [vmem:[#allocation11 + $0x158] sm:$0xf0]  ;;  %v7036_v52 = vld [vmem:[#allocation11 + $0x390] sm:$0xf0]  ;;  %v6975_v44 = vor.u32 %v7644_v37, %v6972_v13  ;;  %v7074_v37 = vld [vmem:[#allocation11 + $0x3c8] sm:$0xf] }
 0x25d   :  { %4696 = vmatpush.bf16.msrb.mxu1 %v6839_v5  ;;  %v6759_v63 = vor.u32 %v7589_v62, %v6756_v60  ;;  %v7585_v5 = vld [vmem:[#allocation11 + $0x12c] sm:$0xf]  ;;  %v7039_v15 = vor.u32 %v7660_v16, %v7036_v52  ;;  %v3677_v62 = vpop.f32.mrf.mxu0  ;;  %v6900_v16 = vld [vmem:[#allocation11 + $0x278] sm:$0xf0]  ;;  %v7671_v13 = vld [vmem:[#allocation11 + $0x3d4] sm:$0xf0] }
 0x25e   :  { %v3622_v55 = vadd.f32 %v3621_v6, %v3608_v25  ;;  %4612 = vmatpush.bf16.msrb.mxu3 %v7087_v47  ;;  %v6740_v6 = vld [vmem:[#allocation11 + $0x138] sm:$0xf0]  ;;  %v7627_v25 = vld [vmem:[#allocation11 + $0x274] sm:$0xf0] }
 0x25f   :  { %4688 = vmatpush.bf16.msrb.mxu0 %v6615_v14  ;;  %v6743_v49 = vor.u32 %v7585_v5, %v6740_v6  ;;  %v6914_v14 = vld [vmem:[#allocation11 + $0x288] sm:$0xf]  ;;  %v6964_v47 = vld [vmem:[#allocation11 + $0x2f8] sm:$0xf0] }
 0x260   :  { %v3726_v54 = vmax.f32 %v3622_v55, 0.0  ;;  %v6915_v27 = vor.u32 %v7631_v9, %v6914_v14  ;;  %v6866_v55 = vld [vmem:[#allocation11 + $0x228] sm:$0xf]  ;;  %v6967_v51 = vor.u32 %v7641_v46, %v6964_v47  ;;  %v7663_v47 = vld [vmem:[#allocation11 + $0x394] sm:$0xf0] }
 0x261   :  { %v3595_v40 = vpop.f32.mrf.mxu2  ;;  %4697 = vmatpush.bf16.msrb.mxu1 %v6823_v7  ;;  %v7656_v7 = vld [vmem:[#allocation11 + $0x364] sm:$0xf]  ;;  %v7042_v46 = vld [vmem:[#allocation11 + $0x388] sm:$0xf] }
 0x262   :  { %v3596_v24 = vadd.f32 %v3595_v40, %v3582_v26  ;;  %4613 = vmatpush.bf16.msrb.mxu3 %v7071_v61  ;;  %v7023_v26 = vor.u32 %v7656_v7, %v7020_v10  ;;  %v6882_v40 = vld [vmem:[#allocation11 + $0x248] sm:$0xf]  ;;  %v6932_v61 = vld [vmem:[#allocation11 + $0x2b8] sm:$0xf0] }
 0x263   :  { %4689 = vmatpush.bf16.msrb.mxu0 %v6599_v2  ;;  %v6899_v2 = vor.u32 %v7627_v25, %v6898_v19  ;;  %v7617_v25 = vld [vmem:[#allocation11 + $0x22c] sm:$0xf] }
 0x264   :  { %v3610_v38 = vadd.f32 %v3609_v30, %v3596_v24  ;;  %v7007_v24 = vor.u32 %v7652_v3, %v7004_v28  ;;  %v7648_v30 = vld [vmem:[#allocation11 + $0x324] sm:$0xf] }
 0x265   :  { %4698 = vmatpush.bf16.msrb.mxu1 %v6807_v33  ;;  %v6883_v33 = vor.u32 %v7623_v50, %v6882_v40  ;;  %v6991_v0 = vor.u32 %v7648_v30, %v6988_v35  ;;  %v3679_v14 = vpop.f32.mrf.mxu0  ;;  %v7675_v30 = vld [vmem:[#allocation11 + $0x3f4] sm:$0xf0]  ;;  %v7613_v35 = vld [vmem:[#allocation11 + $0x20c] sm:$0xf] }
 0x266   :  { %v3624_v43 = vadd.f32 %v3623_v11, %v3610_v38  ;;  %4690 = vmatmul.bf16.vlgmr.msrb.gmra.mxu0 %v8098_v41  ;;  %v6947_v41 = vor.u32 %v7639_v22, %v6946_v59  ;;  %4614 = vmatpush.bf16.msrb.mxu3 %v7055_v29  ;;  %v7619_v38 = vld [vmem:[#allocation11 + $0x234] sm:$0xf0]  ;;  %v7633_v22 = vld [vmem:[#allocation11 + $0x2ac] sm:$0xf] }
 0x267   :  { %v6867_v11 = vor.u32 %v7619_v38, %v6866_v55 }
 0x268   :  { %v3730_v21 = vmax.f32 %v3624_v43, 0.0  ;;  %v6850_v43 = vld [vmem:[#allocation11 + $0x208] sm:$0xf] }
 0x269   :  { %4699 = vmatpush.bf16.msrb.mxu1 %v6791_v4  ;;  %v7615_v4 = vld [vmem:[#allocation11 + $0x214] sm:$0xf0] }
 0x26a   :  { %v8110_v58 = vpack.c.bf16 %v3730_v21, %v3726_v54  ;;  %4615 = vmatpush.bf16.msrb.mxu3 %v7039_v15  ;;  %v6851_v48 = vor.u32 %v7615_v4, %v6850_v43  ;;  %v7637_v54 = vld [vmem:[#allocation11 + $0x2cc] sm:$0xf]  ;;  %v6948_v21 = vld [vmem:[#allocation11 + $0x2d8] sm:$0xf0]  ;;  %v7058_v43 = vld [vmem:[#allocation11 + $0x3a8] sm:$0xf] }
 0x26b   :  { %v6951_v12 = vor.u32 %v7637_v54, %v6948_v21  ;;  %v7667_v4 = vld [vmem:[#allocation11 + $0x3b4] sm:$0xf0]  ;;  %v7010_v21 = vld [vmem:[#allocation11 + $0x348] sm:$0xf] }
 0x26c   :  { %4550 = vmatmul.bf16.vlgmr.msra.gmra.mxu2 %v8110_v58 }
 0x26d   :  { %4654 = vmatpush.bf16.msra.mxu2 %v6963_v56  ;;  %4700 = vmatpush.bf16.msrb.mxu1 %v6775_v39  ;;  %v3637_v56 = vpop.f32.mrf.mxu1  ;;  %v3665_v39 = vpop.f32.mrf.mxu3 }
 0x26e   :  { %4616 = vmatpush.bf16.msrb.mxu3 %v7023_v26  ;;  %v6868_v26 = vld [vmem:[#allocation11 + $0x238] sm:$0xf0] }
 0x26f   :  { %v6871_v50 = vor.u32 %v7617_v25, %v6868_v26  ;;  %v8127_v26 = vld [vmem:[%s8142_s6] sm:$0xf]  ;;  %s7878_s6 = smov [#allocation13]  }
 0x270   :  { %s4758_s8 = sshll.u32 %s7878_s6, 4  ;;  %s4759_s8 = int_to_ptr.vmem [resolvable:$true] %s4758_s8 }
 0x271   :  { %4655 = vmatpush.bf16.msra.mxu2 %v6947_v41  ;;  %4701 = vmatpush.bf16.msrb.mxu1 %v6759_v63  ;;  %v7629_v63 = vld [vmem:[#allocation11 + $0x28c] sm:$0xf] }
 0x272   :  { %4617 = vmatpush.bf16.msrb.mxu3 %v7007_v24  ;;  %v6919_v29 = vor.u32 %v7629_v63, %v6916_v1  ;;  %v7090_v24 = vld [vmem:[#allocation11 + $0x3e8] sm:$0xf]  ;;  %v7665_v63 = vld [vmem:[#allocation11 + $0x3ac] sm:$0xf]  ;;  %v7060_v1 = vld [vmem:[#allocation11 + $0x3b8] sm:$0xf0] }
 0x275   :  { %4656 = vmatpush.bf16.msra.mxu2 %v6931_v8  ;;  %4702 = vmatpush.bf16.msrb.mxu1 %v6743_v49  ;;  %v3691_v32 = vpop.f32.mrf.mxu1  ;;  %v7625_v8 = vld [vmem:[#allocation11 + $0x26c] sm:$0xf]  ;;  %v3719_v52 = vpop.f32.mrf.mxu3 }
 0x276   :  { %4618 = vmatpush.bf16.msrb.mxu3 %v6991_v0  ;;  %v6903_v9 = vor.u32 %v7625_v8, %v6900_v16  ;;  %v7091_v0 = vor.u32 %v7675_v30, %v7090_v24  ;;  %v7657_v8 = vld [vmem:[#allocation11 + $0x36c] sm:$0xf]  ;;  %v7028_v16 = vld [vmem:[#allocation11 + $0x378] sm:$0xf0] }
 0x279   :  { %4657 = vmatpush.bf16.msra.mxu2 %v6915_v27  ;;  %4703 = vmatpush.bf16.msrb.mxu1 %v6727_v20  ;;  %v3649_v42 = vpop.f32.mrf.mxu2  ;;  %v6884_v27 = vld [vmem:[#allocation11 + $0x258] sm:$0xf0] }
 0x27a   :  { %4619 = vmatpush.bf16.msrb.mxu3 %v6975_v44  ;;  %v6887_v20 = vor.u32 %v7621_v18, %v6884_v27  ;;  %v7059_v44 = vor.u32 %v7667_v4, %v7058_v43  ;;  %v7645_v27 = vld [vmem:[#allocation11 + $0x30c] sm:$0xf] }
 0x27c   :  { %4606 = vmatmul.bf16.vlgmr.msrb.gmra.mxu2 %v8110_v58  ;;  %4704 = vmatmul.bf16.vlgmr.msrb.gmra.mxu1 %v8102_v31  ;;  %v2207_v31 = vperm.slane %v8086_v23, 3  ;;  %v6935_v23 = vor.u32 %v7633_v22, %v6932_v61  ;;  %v7647_v22 = vld [vmem:[#allocation11 + $0x314] sm:$0xf0]  ;;  %v7673_v61 = vld [vmem:[#allocation11 + $0x3ec] sm:$0xf] }
 0x27d   :  { %4658 = vmatpush.bf16.msra.mxu2 %v6899_v2  ;;  %v3693_v10 = vpop.f32.mrf.mxu1  ;;  %v3721_v40 = vpop.f32.mrf.mxu3 }
 0x27e   :  { %v3636_v57 = vadd.f32 %v3635_v36, %v2207_v31  ;;  %v3638_v41 = vadd.f32 %v3637_v56, %v2207_v31  ;;  %v6852_v36 = vld [vmem:[#allocation11 + $0x218] sm:$0xf0]  ;;  %v7043_v31 = vor.u32 %v7663_v47, %v7042_v46  ;;  %v7655_v56 = vld [vmem:[#allocation11 + $0x354] sm:$0xf0] }
 0x280   :  { %v3650_v59 = vadd.f32 %v3649_v42, %v3636_v57  ;;  %v7075_v42 = vor.u32 %v7671_v13, %v7074_v37  ;;  %v7011_v57 = vor.u32 %v7655_v56, %v7010_v21  ;;  %v3867_v37 = vperm.slane %v8127_v26, 1 }
 0x281   :  { %4659 = vmatpush.bf16.msra.mxu2 %v6883_v33  ;;  %v3651_v60 = vpop.f32.mrf.mxu2 }
 0x282   :  { %v3664_v53 = vadd.f32 %v3663_v34, %v3650_v59  ;;  %v3652_v45 = vadd.f32 %v3651_v60, %v3638_v41  ;;  %v6855_v34 = vor.u32 %v7613_v35, %v6852_v36  ;;  %v6978_v59 = vld [vmem:[#allocation11 + $0x308] sm:$0xf] }
 0x283   :  { %v6979_v60 = vor.u32 %v7647_v22, %v6978_v59 }
 0x284   :  { %v3666_v5 = vadd.f32 %v3665_v39, %v3652_v45  ;;  %v3678_v6 = vadd.f32 %v3677_v62, %v3664_v53  ;;  %v7651_v39 = vld [vmem:[#allocation11 + $0x334] sm:$0xf0]  ;;  %v7092_v62 = vld [vmem:[#allocation11 + $0x3f8] sm:$0xf0] }
 0x285   :  { %4660 = vmatpush.bf16.msra.mxu2 %v6867_v11  ;;  %v7095_v41 = vor.u32 %v7673_v61, %v7092_v62  ;;  %v7076_v53 = vld [vmem:[#allocation11 + $0x3d8] sm:$0xf0] }
 0x286   :  { %v3692_v15 = vadd.f32 %v3691_v32, %v3678_v6  ;;  %v3680_v17 = vadd.f32 %v3679_v14, %v3666_v5  ;;  %v7063_v32 = vor.u32 %v7665_v63, %v7060_v1  ;;  %v7044_v5 = vld [vmem:[#allocation11 + $0x398] sm:$0xf0] }
 0x287   :  { %v7012_v14 = vld [vmem:[#allocation11 + $0x358] sm:$0xf0] }
 0x288   :  { %v3694_v19 = vadd.f32 %v3693_v10, %v3680_v17  ;;  %v6996_v17 = vld [vmem:[#allocation11 + $0x338] sm:$0xf0] }
 0x289   :  { %4661 = vmatpush.bf16.msra.mxu2 %v6851_v48  ;;  %v7026_v48 = vld [vmem:[#allocation11 + $0x368] sm:$0xf] }
 0x28c   :  { %4662 = vmatmul.bf16.vlgmr.msra.gmra.mxu2 %v8110_v58 }
 0x28d   :  { %4710 = vmatpush.bf16.msrb.mxu2 %v6967_v51  ;;  %v7659_v51 = vld [vmem:[#allocation11 + $0x374] sm:$0xf0] }
 0x28e   :  { %v7027_v54 = vor.u32 %v7659_v51, %v7026_v48 }
 0x291   :  { %4711 = vmatpush.bf16.msrb.mxu2 %v6951_v12  ;;  %v6994_v12 = vld [vmem:[#allocation11 + $0x328] sm:$0xf] }
 0x295   :  { %4712 = vmatpush.bf16.msrb.mxu2 %v6935_v23  ;;  %v7669_v23 = vld [vmem:[#allocation11 + $0x3cc] sm:$0xf] }
 0x296   :  { %v7079_v45 = vor.u32 %v7669_v23, %v7076_v53 }
 0x299   :  { %v3705_v49 = vpop.f32.mrf.mxu2  ;;  %4713 = vmatpush.bf16.msrb.mxu2 %v6919_v29  ;;  %v7661_v29 = vld [vmem:[#allocation11 + $0x38c] sm:$0xf] }
 0x29a   :  { %v3706_v7 = vadd.f32 %v3705_v49, %v3692_v15  ;;  %v7047_v6 = vor.u32 %v7661_v29, %v7044_v5  ;;  %v7653_v49 = vld [vmem:[#allocation11 + $0x34c] sm:$0xf] }
 0x29b   :  { %v7649_v15 = vld [vmem:[#allocation11 + $0x32c] sm:$0xf] }
 0x29c   :  { %v3720_v3 = vadd.f32 %v3719_v52, %v3706_v7  ;;  %v7031_v52 = vor.u32 %v7657_v8, %v7028_v16  ;;  %v6999_v18 = vor.u32 %v7649_v15, %v6996_v17  ;;  %v6980_v7 = vld [vmem:[#allocation11 + $0x318] sm:$0xf0]  ;;  %v3869_v17 = vperm.slane %v8127_v26, 3 }
 0x29d   :  { %4714 = vmatpush.bf16.msrb.mxu2 %v6903_v9  ;;  %v7015_v9 = vor.u32 %v7653_v49, %v7012_v14  ;;  %v6983_v10 = vor.u32 %v7645_v27, %v6980_v7 }
 0x29e   :  { %v3727_v55 = vmax.f32 %v3720_v3, 0.0 }
 0x2a1   :  { %v3707_v2 = vpop.f32.mrf.mxu2  ;;  %4715 = vmatpush.bf16.msrb.mxu2 %v6887_v20 }
 0x2a2   :  { %v3708_v28 = vadd.f32 %v3707_v2, %v3694_v19  ;;  %v3866_v2 = vperm.slane %v8127_v26, 0 }
 0x2a3   :  { %v4523_v20 = vpop.f32.mrf.mxu0 }
 0x2a4   :  { %v3722_v33 = vadd.f32 %v3721_v40, %v3708_v28  ;;  %v4524_v40 = vadd.f32 %v4523_v20, %v3866_v2 }
 0x2a5   :  { %4716 = vmatpush.bf16.msrb.mxu2 %v6871_v50 }
 0x2a6   :  { %v3731_v38 = vmax.f32 %v3722_v33, 0.0 }
 0x2a8   :  { %v8117_v11 = vpack.c.bf16 %v3731_v38, %v3727_v55 }
 0x2a9   :  { %4717 = vmatpush.bf16.msrb.mxu2 %v6855_v34 }
 0x2aa   :  { %4564 = vmatmul.bf16.vlgmr.msra.gmra.mxu3 %v8117_v11 }
 0x2ab   :  { %4668 = vmatpush.bf16.msra.mxu3 %v7091_v0  ;;  %v4525_v3 = vpop.f32.mrf.mxu0 }
 0x2ac   :  { %4718 = vmatmul.bf16.vlgmr.msrb.gmra.mxu2 %v8110_v58  ;;  %v6995_v58 = vor.u32 %v7651_v39, %v6994_v12  ;;  %v4526_v55 = vadd.f32 %v4525_v3, %v3866_v2 }
 0x2af   :  { %4669 = vmatpush.bf16.msra.mxu3 %v7075_v42 }
 0x2b3   :  { %4670 = vmatpush.bf16.msra.mxu3 %v7059_v44  ;;  %v4579_v36 = vpop.f32.mrf.mxu0 }
 0x2b4   :  { %v4580_v4 = vadd.f32 %v4579_v36, %v3867_v37 }
 0x2b7   :  { %4671 = vmatpush.bf16.msra.mxu3 %v7043_v31 }
 0x2b9   :  { %v4537_v19 = vpop.f32.mrf.mxu1 }
 0x2ba   :  { %4620 = vmatmul.bf16.vlgmr.msrb.gmra.mxu3 %v8117_v11  ;;  %v4538_v24 = vadd.f32 %v4537_v19, %v4524_v40 }
 0x2bb   :  { %4672 = vmatpush.bf16.msra.mxu3 %v7027_v54  ;;  %v4581_v46 = vpop.f32.mrf.mxu0 }
 0x2bc   :  { %v4582_v56 = vadd.f32 %v4581_v46, %v3867_v37 }
 0x2bf   :  { %4673 = vmatpush.bf16.msra.mxu3 %v7011_v57 }
 0x2c1   :  { %v4539_v28 = vpop.f32.mrf.mxu1 }
 0x2c2   :  { %v4540_v34 = vadd.f32 %v4539_v28, %v4526_v55 }
 0x2c3   :  { %4674 = vmatpush.bf16.msra.mxu3 %v6995_v58  ;;  %v4635_v39 = vpop.f32.mrf.mxu0  ;;  %v3868_v58 = vperm.slane %v8127_v26, 2 }
 0x2c7   :  { %4675 = vmatpush.bf16.msra.mxu3 %v6979_v60 }
 0x2c9   :  { %v4593_v0 = vpop.f32.mrf.mxu1 }
 0x2ca   :  { %4676 = vmatmul.bf16.vlgmr.msra.gmra.mxu3 %v8117_v11  ;;  %v4594_v47 = vadd.f32 %v4593_v0, %v4580_v4 }
 0x2cb   :  { %4724 = vmatpush.bf16.msrb.mxu3 %v7095_v41  ;;  %v4636_v41 = vadd.f32 %v4635_v39, %v3868_v58  ;;  %v4637_v63 = vpop.f32.mrf.mxu0 }
 0x2cc   :  { %v4638_v5 = vadd.f32 %v4637_v63, %v3868_v58 }
 0x2cf   :  { %4725 = vmatpush.bf16.msrb.mxu3 %v7079_v45 }
 0x2d1   :  { %v4595_v31 = vpop.f32.mrf.mxu1 }
 0x2d2   :  { %v4596_v12 = vadd.f32 %v4595_v31, %v4582_v56 }
 0x2d3   :  { %4726 = vmatpush.bf16.msrb.mxu3 %v7063_v32 }
 0x2d7   :  { %4727 = vmatpush.bf16.msrb.mxu3 %v7047_v6 }
 0x2d9   :  { %v4649_v22 = vpop.f32.mrf.mxu1 }
 0x2da   :  { %v4650_v53 = vadd.f32 %v4649_v22, %v4636_v41 }
 0x2db   :  { %4728 = vmatpush.bf16.msrb.mxu3 %v7031_v52 }
 0x2df   :  { %4729 = vmatpush.bf16.msrb.mxu3 %v7015_v9 }
 0x2e1   :  { %v4651_v29 = vpop.f32.mrf.mxu1 }
 0x2e2   :  { %v4652_v16 = vadd.f32 %v4651_v29, %v4638_v5 }
 0x2e3   :  { %4730 = vmatpush.bf16.msrb.mxu3 %v6999_v18  ;;  %v4691_v15 = vpop.f32.mrf.mxu0 }
 0x2e4   :  { %v4692_v7 = vadd.f32 %v4691_v15, %v3869_v17 }
 0x2e7   :  { %4731 = vmatpush.bf16.msrb.mxu3 %v6983_v10 }
 0x2ea   :  { %4732 = vmatmul.bf16.vlgmr.msrb.gmra.mxu3 %v8117_v11 }
 0x2eb   :  { %v4693_v19 = vpop.f32.mrf.mxu0 }
 0x2ec   :  { %v4694_v28 = vadd.f32 %v4693_v19, %v3869_v17 }
 0x2ef   :  { %v4551_v25 = vpop.f32.mrf.mxu2 }
 0x2f0   :  { %v4552_v33 = vadd.f32 %v4551_v25, %v4538_v24 }
 0x2f7   :  { %v4553_v50 = vpop.f32.mrf.mxu2 }
 0x2f8   :  { %v4554_v13 = vadd.f32 %v4553_v50, %v4540_v34 }
 0x2f9   :  { %v4705_v18 = vpop.f32.mrf.mxu1 }
 0x2fa   :  { %v4706_v10 = vadd.f32 %v4705_v18, %v4692_v7 }
 0x2ff   :  { %v4607_v11 = vpop.f32.mrf.mxu2 }
 0x300   :  { %v4608_v48 = vadd.f32 %v4607_v11, %v4594_v47 }
 0x301   :  { %v4707_v3 = vpop.f32.mrf.mxu1 }
 0x302   :  { %v4708_v24 = vadd.f32 %v4707_v3, %v4694_v28 }
 0x307   :  { %v4609_v51 = vpop.f32.mrf.mxu2 }
 0x308   :  { %v4610_v59 = vadd.f32 %v4609_v51, %v4596_v12 }
 0x30f   :  { %v4663_v60 = vpop.f32.mrf.mxu2 }
 0x310   :  { %v4664_v45 = vadd.f32 %v4663_v60, %v4650_v53 }
 0x317   :  { %v4665_v8 = vpop.f32.mrf.mxu2 }
 0x318   :  { %v4666_v52 = vadd.f32 %v4665_v8, %v4652_v16 }
 0x32d   :  { %v4565_v30 = vpop.f32.mrf.mxu3 }
 0x32e   :  { %v4566_v35 = vadd.f32 %v4565_v30, %v4552_v33 }
 0x32f   :  { %v4719_v27 = vpop.f32.mrf.mxu2 }
 0x330   :  { %v4738_v38 = vmax.f32 %v4566_v35, 0.0  ;;  %v4720_v20 = vadd.f32 %v4719_v27, %v4706_v10 }
 0x332   :  { %4746 = vst [vmem:[#allocation13] sm:$0xff] %v4738_v38 }
 0x335   :  { %v4567_v42 = vpop.f32.mrf.mxu3 }
 0x336   :  { %v4568_v43 = vadd.f32 %v4567_v42, %v4554_v13 }
 0x337   :  { %v4721_v50 = vpop.f32.mrf.mxu2 }
 0x338   :  { %v4742_v44 = vmax.f32 %v4568_v43, 0.0  ;;  %v4722_v33 = vadd.f32 %v4721_v50, %v4708_v24 }
 0x33a   :  { %4750 = vst [vmem:[#allocation13 + $0x20] sm:$0xff] %v4742_v44 }
 0x33d   :  { %v4621_v54 = vpop.f32.mrf.mxu3 }
 0x33e   :  { %v4622_v21 = vadd.f32 %v4621_v54, %v4608_v48 }
 0x340   :  { %v4739_v57 = vmax.f32 %v4622_v21, 0.0 }
 0x342   :  { %4747 = vst [vmem:[#allocation13 + $0x8] sm:$0xff] %v4739_v57 }
 0x345   :  { %v4623_v61 = vpop.f32.mrf.mxu3 }
 0x346   :  { %v4624_v62 = vadd.f32 %v4623_v61, %v4610_v59 }
 0x348   :  { %v4743_v23 = vmax.f32 %v4624_v62, 0.0 }
 0x34a   :  { %4751 = vst [vmem:[#allocation13 + $0x28] sm:$0xff] %v4743_v23 }
 0x34d   :  { %v4677_v1 = vpop.f32.mrf.mxu3 }
 0x34e   :  { %v4678_v32 = vadd.f32 %v4677_v1, %v4664_v45 }
 0x350   :  { %v4740_v6 = vmax.f32 %v4678_v32, 0.0 }
 0x352   :  { %4748 = vst [vmem:[#allocation13 + $0x10] sm:$0xff] %v4740_v6 }
 0x355   :  { %v4679_v49 = vpop.f32.mrf.mxu3 }
 0x356   :  { %v4680_v14 = vadd.f32 %v4679_v49, %v4666_v52 }
 0x358   :  { %v4744_v9 = vmax.f32 %v4680_v14, 0.0 }
 0x35a   :  { %4752 = vst [vmem:[#allocation13 + $0x30] sm:$0xff] %v4744_v9 }
 0x36d   :  { %v4733_v25 = vpop.f32.mrf.mxu3 }
 0x36e   :  { %v4734_v2 = vadd.f32 %v4733_v25, %v4720_v20 }
 0x370   :  { %v4741_v40 = vmax.f32 %v4734_v2, 0.0 }
 0x372   :  { %4749 = vst [vmem:[#allocation13 + $0x18] sm:$0xff] %v4741_v40 }
 0x375   :  { %v4735_v26 = vpop.f32.mrf.mxu3 }
 0x376   :  { %v4736_v30 = vadd.f32 %v4735_v26, %v4722_v33 }
 0x378   :  { %v4745_v35 = vmax.f32 %v4736_v30, 0.0 }
 0x37a   :  { %4753 = vst [vmem:[#allocation13 + $0x38] sm:$0xff] %v4745_v35 }
 0x37b   :  { %4766 = dma.vmem_to_hbm [thread:$0]  %s4759_s8, 1024, %s4761_s11, [#allocation4], %s7879_s12, %s7879_s12, %s7880_s13  }
 0x37c   :  { %7866 = dma.done.wait [#allocation4], 1024  }
 0x37d   :  { %7867 = vsyncadd [#allocation4], 4294966272 }
 0x37e   :  { %4771 = vsyncpa [#allocation3], 1 }
 0x37f   :  { %4772 = vsyncpa [#allocation6], 1 }
 0x380   :  { %4773 = vsyncpa [#allocation9], 1 }
 0x381   :  { %4774 = vsyncpa [#allocation12], 1 }
 0x382   :  { %4775 = vsyncpa [#allocation4], 1 }

</bundles_post_ra>
